<compile_context>
chip_gen: v5e
topology: v5e:2x2
jax: 0.10.0
libtpu: 0.0.40
codegen_flags: <defaults>
</compile_context>

<pallas_src>
import functools

import jax
import jax.numpy as jnp
from jax import lax
from jax.experimental import pallas as pl
from jax.experimental.pallas import tpu as pltpu
import numpy as np


IN_DIM = 32
MEM_DIM = 32
SEQ_LEN = 8
MAX_CHILDREN = 4
LEVEL_PAD = 8                          # parents processed per serial step (chunk)
GATHER_ROWS = LEVEL_PAD * MAX_CHILDREN  # 32 staged child rows per chunk


# ---------------------------------------------------------------------------
# Pallas kernel: whole tree in one invocation, fori_loop over level chunks
# ---------------------------------------------------------------------------
def tree_lstm_kernel(
    ctbl_ref,    # SMEM (num_chunks*LEVEL_PAD*MAX_CHILDREN,) int32  slot-major child rows
    x_ref,       # VMEM (num_chunks*LEVEL_PAD, IN_DIM)             per-node-slot inputs
    wx_ref,      # VMEM (IN_DIM, 4*MEM_DIM)   [i|o|u|f]
    wh_ref,      # VMEM (MEM_DIM, 4*MEM_DIM)  [i|o|u|f]
    bx_ref,      # VMEM (1, 4*MEM_DIM)        [b_ioux | b_fx]
    bh_ref,      # VMEM (1, 4*MEM_DIM)        [b_iouh | b_fh]
    state_ref,   # VMEM out (rows_total, 2*MEM_DIM)  row = [c | h]; last slab = sentinel
    gather_ref,  # VMEM scratch (GATHER_ROWS, 2*MEM_DIM)
    *, num_chunks,
):
    m = MEM_DIM

    # Zero the resident state slab once: sentinel + not-yet-written rows must
    # read as exact zeros (the PyTorch zero child state).
    state_ref[...] = jnp.zeros_like(state_ref)

    # Hoist loop-invariant weights/biases into vregs (~10 vregs total).
    wx = wx_ref[...]
    wh = wh_ref[...]
    bx = bx_ref[...]
    bh = bh_ref[...]

    def chunk_body(l, carry):
        base = pl.multiple_of(l * LEVEL_PAD, LEVEL_PAD)   # first parent row of chunk

        # ---- Stage child states into scratch (slot-major, static dst rows) ----
        coff = base * MAX_CHILDREN
        for j in range(MAX_CHILDREN):
            for p in range(LEVEL_PAD):
                r = j * LEVEL_PAD + p
                cid = ctbl_ref[coff + r]
                gather_ref[pl.ds(r, 1), :] = state_ref[pl.ds(cid, 1), :]
        child = gather_ref[...]                            # (32, 2M)
        child_c = child[:, :m]                             # (32, M)
        child_h = child[:, m:]                             # (32, M)

        # ---- Fused, 128-lane matmuls (both gate blocks at once) ----
        x = x_ref[pl.ds(base, LEVEL_PAD), :]               # (8, IN_DIM)
        gx = jnp.dot(x, wx, preferred_element_type=jnp.float32) + bx     # (8, 4M)
        gh = jnp.dot(child_h, wh, preferred_element_type=jnp.float32)    # (32, 4M)

        # Per-parent sum over the 4 child slots: static, tile-aligned slices.
        gh_sum = gh[0:8] + gh[8:16] + gh[16:24] + gh[24:32]              # (8, 4M)

        # iou = ioux(x) + b_ioux + iouh(sum child_h) + b_iouh
        iou = gx[:, :3 * m] + gh_sum[:, :3 * m] + bh[:, :3 * m]          # (8, 3M)
        io = jax.nn.sigmoid(iou[:, :2 * m])                # i and o in one sigmoid
        i_g = io[:, :m]
        o_g = io[:, m:]
        u_g = jnp.tanh(iou[:, 2 * m:])

        # f = sigmoid(fh(child_h) + b_fh + fx(x) + b_fx); padded slots have
        # child_c == 0 so they contribute nothing to the fc sum.
        fxb = gx[:, 3 * m:] + bh[:, 3 * m:]                # (8, M)
        ghf = gh[:, 3 * m:]                                # (32, M)
        fc = (jax.nn.sigmoid(ghf[0:8] + fxb) * child_c[0:8]
              + jax.nn.sigmoid(ghf[8:16] + fxb) * child_c[8:16]
              + jax.nn.sigmoid(ghf[16:24] + fxb) * child_c[16:24]
              + jax.nn.sigmoid(ghf[24:32] + fxb) * child_c[24:32])       # (8, M)

        c = i_g * u_g + fc
        h = o_g * jnp.tanh(c)

        state_ref[pl.ds(base, LEVEL_PAD), :] = jnp.concatenate([c, h], axis=1)
        return carry

    lax.fori_loop(0, num_chunks, chunk_body, 0, unroll=True)


def make_tree_lstm(fused, num_chunks, rows_total):
    """Returns run(ctbl, xmap, inputs) -> (rows_total, 2*MEM_DIM) node states."""
    rows_x = num_chunks * LEVEL_PAD

    grid_spec = pltpu.PrefetchScalarGridSpec(
        num_scalar_prefetch=1,           # child table -> SMEM
        grid=(1,),                       # single step; node loop is in-kernel
        in_specs=[
            pl.BlockSpec((rows_x, IN_DIM), lambda i, ctbl: (0, 0)),
            pl.BlockSpec((IN_DIM, 4 * MEM_DIM), lambda i, ctbl: (0, 0)),
            pl.BlockSpec((MEM_DIM, 4 * MEM_DIM), lambda i, ctbl: (0, 0)),
            pl.BlockSpec((1, 4 * MEM_DIM), lambda i, ctbl: (0, 0)),
            pl.BlockSpec((1, 4 * MEM_DIM), lambda i, ctbl: (0, 0)),
        ],
        out_specs=pl.BlockSpec((rows_total, 2 * MEM_DIM), lambda i, ctbl: (0, 0)),
        scratch_shapes=[pltpu.VMEM((GATHER_ROWS, 2 * MEM_DIM), jnp.float32)],
    )

    call = pl.pallas_call(
        functools.partial(tree_lstm_kernel, num_chunks=num_chunks),
        out_shape=jax.ShapeDtypeStruct((rows_total, 2 * MEM_DIM), jnp.float32),
        grid_spec=grid_spec,
        compiler_params=pltpu.CompilerParams(
            dimension_semantics=("arbitrary",),
        ),
    )

    @jax.jit
    def run(ctbl, xmap, inputs):
        # Layout plumbing: gather each node slot's input row once, outside the
        # serial kernel path.
        x_nodes = jnp.take(inputs, xmap, axis=0)           # (rows_x, IN_DIM)
        return call(ctbl, x_nodes,
                    fused["wx"], fused["wh"], fused["bx"], fused["bh"])

    return run


# ---------------------------------------------------------------------------
# Host-side tree structure + level schedule (Python glue, as in PyTorch)
# ---------------------------------------------------------------------------
class Tree:
    def __init__(self, idx, children=()):
        self.idx = idx
        self.children = list(children)
        self.num_children = len(self.children)


def flatten_tree(root):
    """Post-order node list: every child appears before its parent."""
    order = []

    def visit(t):
        for c in t.children:
            visit(c)
        order.append(t)

    visit(root)
    return order


def build_schedule(root, seq_len):
    """Pack nodes into level chunks of LEVEL_PAD independent parents."""
    order = flatten_tree(root)
    level = {}
    for t in order:  # post-order => children already have levels
        if t.num_children > MAX_CHILDREN:
            raise ValueError(
                f"node has {t.num_children} children > MAX_CHILDREN={MAX_CHILDREN}")
        level[id(t)] = 0 if t.num_children == 0 else 1 + max(
            level[id(c)] for c in t.children)

    max_level = level[id(root)]
    chunks = []
    for lvl in range(max_level + 1):
        nodes_l = [t for t in order if level[id(t)] == lvl]
        for s in range(0, len(nodes_l), LEVEL_PAD):
            chunks.append(nodes_l[s:s + LEVEL_PAD])

    num_chunks = len(chunks)
    rows_total = (num_chunks + 1) * LEVEL_PAD   # + one slab for the zero sentinel
    sentinel = num_chunks * LEVEL_PAD           # never written -> stays zero

    node_row = {}
    for ci, chunk in enumerate(chunks):
        for si, t in enumerate(chunk):
            node_row[id(t)] = ci * LEVEL_PAD + si

    # Slot-major child table: entry ci*32 + j*LEVEL_PAD + si = state row of
    # child j of the si-th parent in chunk ci (sentinel if absent).
    ctbl = np.full((num_chunks * GATHER_ROWS,), sentinel, np.int32)
    xmap = np.zeros((num_chunks * LEVEL_PAD,), np.int32)
    for ci, chunk in enumerate(chunks):
        for si, t in enumerate(chunk):
            for j, c in enumerate(t.children):
                ctbl[ci * GATHER_ROWS + j * LEVEL_PAD + si] = node_row[id(c)]
            # Same clamp as the PyTorch IndexError fallback (inputs[len(inputs)-1]).
            xmap[ci * LEVEL_PAD + si] = min(t.idx, seq_len - 1)

    return (jnp.asarray(ctbl), jnp.asarray(xmap),
            num_chunks, rows_total, node_row)


# ---------------------------------------------------------------------------
# Pure-JAX reference (semantic check against the PyTorch node_forward)
# ---------------------------------------------------------------------------
def node_forward_ref(params, x, child_c, child_h):
    child_h_sum = jnp.sum(child_h, axis=0, keepdims=True)
    iou = (x @ params["w_ioux"] + params["b_ioux"]
           + child_h_sum @ params["w_iouh"] + params["b_iouh"])
    i, o, u = jnp.split(iou, 3, axis=1)
    i, o, u = jax.nn.sigmoid(i), jax.nn.sigmoid(o), jnp.tanh(u)
    fx = x @ params["w_fx"] + params["b_fx"]
    fh = child_h @ params["w_fh"] + params["b_fh"]
    f = jax.nn.sigmoid(fh + fx)
    c = i * u + jnp.sum(f * child_c, axis=0, keepdims=True)
    h = o * jnp.tanh(c)
    return c, h


# ---------------------------------------------------------------------------
# Deterministic parameter init (shapes from the module __init__)
# ---------------------------------------------------------------------------
def init_params(key):
    ks = jax.random.split(key, 8)
    scale = 0.1

    def lin(kw, kb, fan_in, fan_out):
        # stored pre-transposed: (in_features, out_features), so x @ W + b
        w = scale * jax.random.normal(kw, (fan_in, fan_out), jnp.float32)
        b = scale * jax.random.normal(kb, (1, fan_out), jnp.float32)
        return w, b

    w_ioux, b_ioux = lin(ks[0], ks[1], IN_DIM, 3 * MEM_DIM)
    w_iouh, b_iouh = lin(ks[2], ks[3], MEM_DIM, 3 * MEM_DIM)
    w_fx, b_fx = lin(ks[4], ks[5], IN_DIM, MEM_DIM)
    w_fh, b_fh = lin(ks[6], ks[7], MEM_DIM, MEM_DIM)
    return dict(w_ioux=w_ioux, b_ioux=b_ioux, w_iouh=w_iouh, b_iouh=b_iouh,
                w_fx=w_fx, b_fx=b_fx, w_fh=w_fh, b_fh=b_fh)


def fuse_params(params):
    # [i | o | u | f] along the output axis -> 128 lanes.
    return dict(
        wx=jnp.concatenate([params["w_ioux"], params["w_fx"]], axis=1),   # (IN_DIM, 128)
        wh=jnp.concatenate([params["w_iouh"], params["w_fh"]], axis=1),   # (MEM_DIM, 128)
        bx=jnp.concatenate([params["b_ioux"], params["b_fx"]], axis=1),   # (1, 128)
        bh=jnp.concatenate([params["b_iouh"], params["b_fh"]], axis=1),   # (1, 128)
    )


if __name__ == "__main__":
    key = jax.random.PRNGKey(0)
    pkey, xkey = jax.random.split(key)
    params = init_params(pkey)
    fused = fuse_params(params)
    inputs = jax.random.normal(xkey, (SEQ_LEN, IN_DIM), jnp.float32)

    # Small dependency tree over the 8-token sequence.
    #            7
    #          /   \
    #         3     6
    #        / \   / \
    #       0   1 4   5
    #             |
    #             2 (child of 4)
    t2 = Tree(2)
    t0, t1 = Tree(0), Tree(1)
    t4, t5 = Tree(4, [t2]), Tree(5)
    t3 = Tree(3, [t0, t1])
    t6 = Tree(6, [t4, t5])
    root = Tree(7, [t3, t6])

    ctbl, xmap, num_chunks, rows_total, node_row = build_schedule(root, SEQ_LEN)

    # Single Pallas call (grid=(1,)) evaluates the entire tree, level by level.
    run = make_tree_lstm(fused, num_chunks, rows_total)
    state = jax.block_until_ready(run(ctbl, xmap, inputs))   # (rows_total, 2M)

    # Pure-JAX reference tree LSTM (recursive, same input-index clamp).
    def ref_tree(tree, cache_ref):
        for ch in tree.children:
            ref_tree(ch, cache_ref)
        if tree.num_children == 0:
            cc = jnp.zeros((1, MEM_DIM), jnp.float32)
            hh = jnp.zeros((1, MEM_DIM), jnp.float32)
        else:
            cc = jnp.concatenate([cache_ref[id(c)][0] for c in tree.children], axis=0)
            hh = jnp.concatenate([cache_ref[id(c)][1] for c in tree.children], axis=0)
        x = inputs[min(tree.idx, SEQ_LEN - 1)][None, :]
        cache_ref[id(tree)] = node_forward_ref(params, x, cc, hh)
        return cache_ref[id(tree)]

    cache_ref = {}
    ref_tree(root, cache_ref)

    # Compare every real node's (c, h) against the reference.
    state_np = np.asarray(state)
    for t in flatten_tree(root):
        r = node_row[id(t)]
        c_ref, h_ref = cache_ref[id(t)]
        np.testing.assert_allclose(state_np[r, :MEM_DIM][None, :], np.asarray(c_ref),
                                   rtol=1e-5, atol=1e-5)
        np.testing.assert_allclose(state_np[r, MEM_DIM:][None, :], np.asarray(h_ref),
                                   rtol=1e-5, atol=1e-5)

    h_root = state_np[node_row[id(root)], MEM_DIM:][None, :]
    assert h_root.shape == (1, MEM_DIM)
    print("KERNEL_OK")
</pallas_src>

<mosaic_0001>
module attributes {stable_mosaic.version = 11 : i64} {
  func.func @tree_lstm_kernel(%arg0: i32, %arg1: memref<128xi32, #tpu.memory_space<smem>>, %arg2: memref<32x32xf32, #tpu.memory_space<vmem>>, %arg3: memref<32x128xf32, #tpu.memory_space<vmem>>, %arg4: memref<32x128xf32, #tpu.memory_space<vmem>>, %arg5: memref<1x128xf32, #tpu.memory_space<vmem>>, %arg6: memref<1x128xf32, #tpu.memory_space<vmem>>, %arg7: memref<40x64xf32, #tpu.memory_space<vmem>>, %arg8: memref<32x64xf32, #tpu.memory_space<vmem>>) attributes {dimension_semantics = [#tpu.dimension_semantics<arbitrary>], iteration_bounds = array<i64: 1>, scalar_prefetch = 1 : i64, scratch_operands = 1 : i64, tpu.core_type = #tpu.core_type<tc>, window_params = [{pipeline_mode = #tpu.pipeline_mode<synchronous>, transform_indices = @transform_0, window_bounds = array<i64: 32, 32>}, {pipeline_mode = #tpu.pipeline_mode<synchronous>, transform_indices = @transform_1, window_bounds = array<i64: 32, 128>}, {pipeline_mode = #tpu.pipeline_mode<synchronous>, transform_indices = @transform_2, window_bounds = array<i64: 32, 128>}, {pipeline_mode = #tpu.pipeline_mode<synchronous>, transform_indices = @transform_3, window_bounds = array<i64: 1, 128>}, {pipeline_mode = #tpu.pipeline_mode<synchronous>, transform_indices = @transform_4, window_bounds = array<i64: 1, 128>}, {pipeline_mode = #tpu.pipeline_mode<synchronous>, transform_indices = @transform_5, window_bounds = array<i64: 40, 64>}]} {
    %cst = arith.constant 0.000000e+00 : f32
    %0 = vector.broadcast %cst : f32 to vector<40x64xf32>
    %c0 = arith.constant 0 : index
    %c0_0 = arith.constant 0 : index
    %1 = vector.load %arg7[%c0, %c0_0] : memref<40x64xf32, #tpu.memory_space<vmem>>, vector<40x64xf32>
    tpu.vector_store %arg7[%c0, %c0_0], %0 {strides = array<i32>} : memref<40x64xf32, #tpu.memory_space<vmem>>, vector<40x64xf32>,
    %c0_1 = arith.constant 0 : index
    %c0_2 = arith.constant 0 : index
    %2 = vector.load %arg3[%c0_1, %c0_2] : memref<32x128xf32, #tpu.memory_space<vmem>>, vector<32x128xf32>
    %c0_3 = arith.constant 0 : index
    %c0_4 = arith.constant 0 : index
    %3 = vector.load %arg4[%c0_3, %c0_4] : memref<32x128xf32, #tpu.memory_space<vmem>>, vector<32x128xf32>
    %c0_5 = arith.constant 0 : index
    %c0_6 = arith.constant 0 : index
    %4 = vector.load %arg5[%c0_5, %c0_6] : memref<1x128xf32, #tpu.memory_space<vmem>>, vector<1x128xf32>
    %c0_7 = arith.constant 0 : index
    %c0_8 = arith.constant 0 : index
    %5 = vector.load %arg6[%c0_7, %c0_8] : memref<1x128xf32, #tpu.memory_space<vmem>>, vector<1x128xf32>
    %c0_i32 = arith.constant 0 : i32
    %c8_i32 = arith.constant 8 : i32
    %6 = arith.muli %c0_i32, %c8_i32 : i32
    %7 = tpu.assume_multiple %6, 8 : i32
    %c4_i32 = arith.constant 4 : i32
    %8 = arith.muli %7, %c4_i32 : i32
    %c0_i32_9 = arith.constant 0 : i32
    %9 = arith.addi %8, %c0_i32_9 : i32
    %10 = arith.index_cast %9 : i32 to index
    %11 = memref.load %arg1[%10] : memref<128xi32, #tpu.memory_space<smem>>
    %12 = arith.index_cast %11 : i32 to index
    %c0_10 = arith.constant 0 : index
    %13 = vector.load %arg7[%12, %c0_10] : memref<40x64xf32, #tpu.memory_space<vmem>>, vector<1x64xf32>
    %c0_11 = arith.constant 0 : index
    %c0_12 = arith.constant 0 : index
    %14 = vector.load %arg8[%c0_11, %c0_12] : memref<32x64xf32, #tpu.memory_space<vmem>>, vector<1x64xf32>
    tpu.vector_store %arg8[%c0_11, %c0_12], %13 {strides = array<i32>} : memref<32x64xf32, #tpu.memory_space<vmem>>, vector<1x64xf32>,
    %c1_i32 = arith.constant 1 : i32
    %15 = arith.addi %8, %c1_i32 : i32
    %16 = arith.index_cast %15 : i32 to index
    %17 = memref.load %arg1[%16] : memref<128xi32, #tpu.memory_space<smem>>
    %18 = arith.index_cast %17 : i32 to index
    %c0_13 = arith.constant 0 : index
    %19 = vector.load %arg7[%18, %c0_13] : memref<40x64xf32, #tpu.memory_space<vmem>>, vector<1x64xf32>
    %c1 = arith.constant 1 : index
    %c0_14 = arith.constant 0 : index
    %20 = vector.load %arg8[%c1, %c0_14] : memref<32x64xf32, #tpu.memory_space<vmem>>, vector<1x64xf32>
    tpu.vector_store %arg8[%c1, %c0_14], %19 {strides = array<i32>} : memref<32x64xf32, #tpu.memory_space<vmem>>, vector<1x64xf32>,
    %c2_i32 = arith.constant 2 : i32
    %21 = arith.addi %8, %c2_i32 : i32
    %22 = arith.index_cast %21 : i32 to index
    %23 = memref.load %arg1[%22] : memref<128xi32, #tpu.memory_space<smem>>
    %24 = arith.index_cast %23 : i32 to index
    %c0_15 = arith.constant 0 : index
    %25 = vector.load %arg7[%24, %c0_15] : memref<40x64xf32, #tpu.memory_space<vmem>>, vector<1x64xf32>
    %c2 = arith.constant 2 : index
    %c0_16 = arith.constant 0 : index
    %26 = vector.load %arg8[%c2, %c0_16] : memref<32x64xf32, #tpu.memory_space<vmem>>, vector<1x64xf32>
    tpu.vector_store %arg8[%c2, %c0_16], %25 {strides = array<i32>} : memref<32x64xf32, #tpu.memory_space<vmem>>, vector<1x64xf32>,
    %c3_i32 = arith.constant 3 : i32
    %27 = arith.addi %8, %c3_i32 : i32
    %28 = arith.index_cast %27 : i32 to index
    %29 = memref.load %arg1[%28] : memref<128xi32, #tpu.memory_space<smem>>
    %30 = arith.index_cast %29 : i32 to index
    %c0_17 = arith.constant 0 : index
    %31 = vector.load %arg7[%30, %c0_17] : memref<40x64xf32, #tpu.memory_space<vmem>>, vector<1x64xf32>
    %c3 = arith.constant 3 : index
    %c0_18 = arith.constant 0 : index
    %32 = vector.load %arg8[%c3, %c0_18] : memref<32x64xf32, #tpu.memory_space<vmem>>, vector<1x64xf32>
    tpu.vector_store %arg8[%c3, %c0_18], %31 {strides = array<i32>} : memref<32x64xf32, #tpu.memory_space<vmem>>, vector<1x64xf32>,
    %c4_i32_19 = arith.constant 4 : i32
    %33 = arith.addi %8, %c4_i32_19 : i32
    %34 = arith.index_cast %33 : i32 to index
    %35 = memref.load %arg1[%34] : memref<128xi32, #tpu.memory_space<smem>>
    %36 = arith.index_cast %35 : i32 to index
    %c0_20 = arith.constant 0 : index
    %37 = vector.load %arg7[%36, %c0_20] : memref<40x64xf32, #tpu.memory_space<vmem>>, vector<1x64xf32>
    %c4 = arith.constant 4 : index
    %c0_21 = arith.constant 0 : index
    %38 = vector.load %arg8[%c4, %c0_21] : memref<32x64xf32, #tpu.memory_space<vmem>>, vector<1x64xf32>
    tpu.vector_store %arg8[%c4, %c0_21], %37 {strides = array<i32>} : memref<32x64xf32, #tpu.memory_space<vmem>>, vector<1x64xf32>,
    %c5_i32 = arith.constant 5 : i32
    %39 = arith.addi %8, %c5_i32 : i32
    %40 = arith.index_cast %39 : i32 to index
    %41 = memref.load %arg1[%40] : memref<128xi32, #tpu.memory_space<smem>>
    %42 = arith.index_cast %41 : i32 to index
    %c0_22 = arith.constant 0 : index
    %43 = vector.load %arg7[%42, %c0_22] : memref<40x64xf32, #tpu.memory_space<vmem>>, vector<1x64xf32>
    %c5 = arith.constant 5 : index
    %c0_23 = arith.constant 0 : index
    %44 = vector.load %arg8[%c5, %c0_23] : memref<32x64xf32, #tpu.memory_space<vmem>>, vector<1x64xf32>
    tpu.vector_store %arg8[%c5, %c0_23], %43 {strides = array<i32>} : memref<32x64xf32, #tpu.memory_space<vmem>>, vector<1x64xf32>,
    %c6_i32 = arith.constant 6 : i32
    %45 = arith.addi %8, %c6_i32 : i32
    %46 = arith.index_cast %45 : i32 to index
    %47 = memref.load %arg1[%46] : memref<128xi32, #tpu.memory_space<smem>>
    %48 = arith.index_cast %47 : i32 to index
    %c0_24 = arith.constant 0 : index
    %49 = vector.load %arg7[%48, %c0_24] : memref<40x64xf32, #tpu.memory_space<vmem>>, vector<1x64xf32>
    %c6 = arith.constant 6 : index
    %c0_25 = arith.constant 0 : index
    %50 = vector.load %arg8[%c6, %c0_25] : memref<32x64xf32, #tpu.memory_space<vmem>>, vector<1x64xf32>
    tpu.vector_store %arg8[%c6, %c0_25], %49 {strides = array<i32>} : memref<32x64xf32, #tpu.memory_space<vmem>>, vector<1x64xf32>,
    %c7_i32 = arith.constant 7 : i32
    %51 = arith.addi %8, %c7_i32 : i32
    %52 = arith.index_cast %51 : i32 to index
    %53 = memref.load %arg1[%52] : memref<128xi32, #tpu.memory_space<smem>>
    %54 = arith.index_cast %53 : i32 to index
    %c0_26 = arith.constant 0 : index
    %55 = vector.load %arg7[%54, %c0_26] : memref<40x64xf32, #tpu.memory_space<vmem>>, vector<1x64xf32>
    %c7 = arith.constant 7 : index
    %c0_27 = arith.constant 0 : index
    %56 = vector.load %arg8[%c7, %c0_27] : memref<32x64xf32, #tpu.memory_space<vmem>>, vector<1x64xf32>
    tpu.vector_store %arg8[%c7, %c0_27], %55 {strides = array<i32>} : memref<32x64xf32, #tpu.memory_space<vmem>>, vector<1x64xf32>,
    %c8_i32_28 = arith.constant 8 : i32
    %57 = arith.addi %8, %c8_i32_28 : i32
    %58 = arith.index_cast %57 : i32 to index
    %59 = memref.load %arg1[%58] : memref<128xi32, #tpu.memory_space<smem>>
    %60 = arith.index_cast %59 : i32 to index
    %c0_29 = arith.constant 0 : index
    %61 = vector.load %arg7[%60, %c0_29] : memref<40x64xf32, #tpu.memory_space<vmem>>, vector<1x64xf32>
    %c8 = arith.constant 8 : index
    %c0_30 = arith.constant 0 : index
    %62 = vector.load %arg8[%c8, %c0_30] : memref<32x64xf32, #tpu.memory_space<vmem>>, vector<1x64xf32>
    tpu.vector_store %arg8[%c8, %c0_30], %61 {strides = array<i32>} : memref<32x64xf32, #tpu.memory_space<vmem>>, vector<1x64xf32>,
    %c9_i32 = arith.constant 9 : i32
    %63 = arith.addi %8, %c9_i32 : i32
    %64 = arith.index_cast %63 : i32 to index
    %65 = memref.load %arg1[%64] : memref<128xi32, #tpu.memory_space<smem>>
    %66 = arith.index_cast %65 : i32 to index
    %c0_31 = arith.constant 0 : index
    %67 = vector.load %arg7[%66, %c0_31] : memref<40x64xf32, #tpu.memory_space<vmem>>, vector<1x64xf32>
    %c9 = arith.constant 9 : index
    %c0_32 = arith.constant 0 : index
    %68 = vector.load %arg8[%c9, %c0_32] : memref<32x64xf32, #tpu.memory_space<vmem>>, vector<1x64xf32>
    tpu.vector_store %arg8[%c9, %c0_32], %67 {strides = array<i32>} : memref<32x64xf32, #tpu.memory_space<vmem>>, vector<1x64xf32>,
    %c10_i32 = arith.constant 10 : i32
    %69 = arith.addi %8, %c10_i32 : i32
    %70 = arith.index_cast %69 : i32 to index
    %71 = memref.load %arg1[%70] : memref<128xi32, #tpu.memory_space<smem>>
    %72 = arith.index_cast %71 : i32 to index
    %c0_33 = arith.constant 0 : index
    %73 = vector.load %arg7[%72, %c0_33] : memref<40x64xf32, #tpu.memory_space<vmem>>, vector<1x64xf32>
    %c10 = arith.constant 10 : index
    %c0_34 = arith.constant 0 : index
    %74 = vector.load %arg8[%c10, %c0_34] : memref<32x64xf32, #tpu.memory_space<vmem>>, vector<1x64xf32>
    tpu.vector_store %arg8[%c10, %c0_34], %73 {strides = array<i32>} : memref<32x64xf32, #tpu.memory_space<vmem>>, vector<1x64xf32>,
    %c11_i32 = arith.constant 11 : i32
    %75 = arith.addi %8, %c11_i32 : i32
    %76 = arith.index_cast %75 : i32 to index
    %77 = memref.load %arg1[%76] : memref<128xi32, #tpu.memory_space<smem>>
    %78 = arith.index_cast %77 : i32 to index
    %c0_35 = arith.constant 0 : index
    %79 = vector.load %arg7[%78, %c0_35] : memref<40x64xf32, #tpu.memory_space<vmem>>, vector<1x64xf32>
    %c11 = arith.constant 11 : index
    %c0_36 = arith.constant 0 : index
    %80 = vector.load %arg8[%c11, %c0_36] : memref<32x64xf32, #tpu.memory_space<vmem>>, vector<1x64xf32>
    tpu.vector_store %arg8[%c11, %c0_36], %79 {strides = array<i32>} : memref<32x64xf32, #tpu.memory_space<vmem>>, vector<1x64xf32>,
    %c12_i32 = arith.constant 12 : i32
    %81 = arith.addi %8, %c12_i32 : i32
    %82 = arith.index_cast %81 : i32 to index
    %83 = memref.load %arg1[%82] : memref<128xi32, #tpu.memory_space<smem>>
    %84 = arith.index_cast %83 : i32 to index
    %c0_37 = arith.constant 0 : index
    %85 = vector.load %arg7[%84, %c0_37] : memref<40x64xf32, #tpu.memory_space<vmem>>, vector<1x64xf32>
    %c12 = arith.constant 12 : index
    %c0_38 = arith.constant 0 : index
    %86 = vector.load %arg8[%c12, %c0_38] : memref<32x64xf32, #tpu.memory_space<vmem>>, vector<1x64xf32>
    tpu.vector_store %arg8[%c12, %c0_38], %85 {strides = array<i32>} : memref<32x64xf32, #tpu.memory_space<vmem>>, vector<1x64xf32>,
    %c13_i32 = arith.constant 13 : i32
    %87 = arith.addi %8, %c13_i32 : i32
    %88 = arith.index_cast %87 : i32 to index
    %89 = memref.load %arg1[%88] : memref<128xi32, #tpu.memory_space<smem>>
    %90 = arith.index_cast %89 : i32 to index
    %c0_39 = arith.constant 0 : index
    %91 = vector.load %arg7[%90, %c0_39] : memref<40x64xf32, #tpu.memory_space<vmem>>, vector<1x64xf32>
    %c13 = arith.constant 13 : index
    %c0_40 = arith.constant 0 : index
    %92 = vector.load %arg8[%c13, %c0_40] : memref<32x64xf32, #tpu.memory_space<vmem>>, vector<1x64xf32>
    tpu.vector_store %arg8[%c13, %c0_40], %91 {strides = array<i32>} : memref<32x64xf32, #tpu.memory_space<vmem>>, vector<1x64xf32>,
    %c14_i32 = arith.constant 14 : i32
    %93 = arith.addi %8, %c14_i32 : i32
    %94 = arith.index_cast %93 : i32 to index
    %95 = memref.load %arg1[%94] : memref<128xi32, #tpu.memory_space<smem>>
    %96 = arith.index_cast %95 : i32 to index
    %c0_41 = arith.constant 0 : index
    %97 = vector.load %arg7[%96, %c0_41] : memref<40x64xf32, #tpu.memory_space<vmem>>, vector<1x64xf32>
    %c14 = arith.constant 14 : index
    %c0_42 = arith.constant 0 : index
    %98 = vector.load %arg8[%c14, %c0_42] : memref<32x64xf32, #tpu.memory_space<vmem>>, vector<1x64xf32>
    tpu.vector_store %arg8[%c14, %c0_42], %97 {strides = array<i32>} : memref<32x64xf32, #tpu.memory_space<vmem>>, vector<1x64xf32>,
    %c15_i32 = arith.constant 15 : i32
    %99 = arith.addi %8, %c15_i32 : i32
    %100 = arith.index_cast %99 : i32 to index
    %101 = memref.load %arg1[%100] : memref<128xi32, #tpu.memory_space<smem>>
    %102 = arith.index_cast %101 : i32 to index
    %c0_43 = arith.constant 0 : index
    %103 = vector.load %arg7[%102, %c0_43] : memref<40x64xf32, #tpu.memory_space<vmem>>, vector<1x64xf32>
    %c15 = arith.constant 15 : index
    %c0_44 = arith.constant 0 : index
    %104 = vector.load %arg8[%c15, %c0_44] : memref<32x64xf32, #tpu.memory_space<vmem>>, vector<1x64xf32>
    tpu.vector_store %arg8[%c15, %c0_44], %103 {strides = array<i32>} : memref<32x64xf32, #tpu.memory_space<vmem>>, vector<1x64xf32>,
    %c16_i32 = arith.constant 16 : i32
    %105 = arith.addi %8, %c16_i32 : i32
    %106 = arith.index_cast %105 : i32 to index
    %107 = memref.load %arg1[%106] : memref<128xi32, #tpu.memory_space<smem>>
    %108 = arith.index_cast %107 : i32 to index
    %c0_45 = arith.constant 0 : index
    %109 = vector.load %arg7[%108, %c0_45] : memref<40x64xf32, #tpu.memory_space<vmem>>, vector<1x64xf32>
    %c16 = arith.constant 16 : index
    %c0_46 = arith.constant 0 : index
    %110 = vector.load %arg8[%c16, %c0_46] : memref<32x64xf32, #tpu.memory_space<vmem>>, vector<1x64xf32>
    tpu.vector_store %arg8[%c16, %c0_46], %109 {strides = array<i32>} : memref<32x64xf32, #tpu.memory_space<vmem>>, vector<1x64xf32>,
    %c17_i32 = arith.constant 17 : i32
    %111 = arith.addi %8, %c17_i32 : i32
    %112 = arith.index_cast %111 : i32 to index
    %113 = memref.load %arg1[%112] : memref<128xi32, #tpu.memory_space<smem>>
    %114 = arith.index_cast %113 : i32 to index
    %c0_47 = arith.constant 0 : index
    %115 = vector.load %arg7[%114, %c0_47] : memref<40x64xf32, #tpu.memory_space<vmem>>, vector<1x64xf32>
    %c17 = arith.constant 17 : index
    %c0_48 = arith.constant 0 : index
    %116 = vector.load %arg8[%c17, %c0_48] : memref<32x64xf32, #tpu.memory_space<vmem>>, vector<1x64xf32>
    tpu.vector_store %arg8[%c17, %c0_48], %115 {strides = array<i32>} : memref<32x64xf32, #tpu.memory_space<vmem>>, vector<1x64xf32>,
    %c18_i32 = arith.constant 18 : i32
    %117 = arith.addi %8, %c18_i32 : i32
    %118 = arith.index_cast %117 : i32 to index
    %119 = memref.load %arg1[%118] : memref<128xi32, #tpu.memory_space<smem>>
    %120 = arith.index_cast %119 : i32 to index
    %c0_49 = arith.constant 0 : index
    %121 = vector.load %arg7[%120, %c0_49] : memref<40x64xf32, #tpu.memory_space<vmem>>, vector<1x64xf32>
    %c18 = arith.constant 18 : index
    %c0_50 = arith.constant 0 : index
    %122 = vector.load %arg8[%c18, %c0_50] : memref<32x64xf32, #tpu.memory_space<vmem>>, vector<1x64xf32>
    tpu.vector_store %arg8[%c18, %c0_50], %121 {strides = array<i32>} : memref<32x64xf32, #tpu.memory_space<vmem>>, vector<1x64xf32>,
    %c19_i32 = arith.constant 19 : i32
    %123 = arith.addi %8, %c19_i32 : i32
    %124 = arith.index_cast %123 : i32 to index
    %125 = memref.load %arg1[%124] : memref<128xi32, #tpu.memory_space<smem>>
    %126 = arith.index_cast %125 : i32 to index
    %c0_51 = arith.constant 0 : index
    %127 = vector.load %arg7[%126, %c0_51] : memref<40x64xf32, #tpu.memory_space<vmem>>, vector<1x64xf32>
    %c19 = arith.constant 19 : index
    %c0_52 = arith.constant 0 : index
    %128 = vector.load %arg8[%c19, %c0_52] : memref<32x64xf32, #tpu.memory_space<vmem>>, vector<1x64xf32>
    tpu.vector_store %arg8[%c19, %c0_52], %127 {strides = array<i32>} : memref<32x64xf32, #tpu.memory_space<vmem>>, vector<1x64xf32>,
    %c20_i32 = arith.constant 20 : i32
    %129 = arith.addi %8, %c20_i32 : i32
    %130 = arith.index_cast %129 : i32 to index
    %131 = memref.load %arg1[%130] : memref<128xi32, #tpu.memory_space<smem>>
    %132 = arith.index_cast %131 : i32 to index
    %c0_53 = arith.constant 0 : index
    %133 = vector.load %arg7[%132, %c0_53] : memref<40x64xf32, #tpu.memory_space<vmem>>, vector<1x64xf32>
    %c20 = arith.constant 20 : index
    %c0_54 = arith.constant 0 : index
    %134 = vector.load %arg8[%c20, %c0_54] : memref<32x64xf32, #tpu.memory_space<vmem>>, vector<1x64xf32>
    tpu.vector_store %arg8[%c20, %c0_54], %133 {strides = array<i32>} : memref<32x64xf32, #tpu.memory_space<vmem>>, vector<1x64xf32>,
    %c21_i32 = arith.constant 21 : i32
    %135 = arith.addi %8, %c21_i32 : i32
    %136 = arith.index_cast %135 : i32 to index
    %137 = memref.load %arg1[%136] : memref<128xi32, #tpu.memory_space<smem>>
    %138 = arith.index_cast %137 : i32 to index
    %c0_55 = arith.constant 0 : index
    %139 = vector.load %arg7[%138, %c0_55] : memref<40x64xf32, #tpu.memory_space<vmem>>, vector<1x64xf32>
    %c21 = arith.constant 21 : index
    %c0_56 = arith.constant 0 : index
    %140 = vector.load %arg8[%c21, %c0_56] : memref<32x64xf32, #tpu.memory_space<vmem>>, vector<1x64xf32>
    tpu.vector_store %arg8[%c21, %c0_56], %139 {strides = array<i32>} : memref<32x64xf32, #tpu.memory_space<vmem>>, vector<1x64xf32>,
    %c22_i32 = arith.constant 22 : i32
    %141 = arith.addi %8, %c22_i32 : i32
    %142 = arith.index_cast %141 : i32 to index
    %143 = memref.load %arg1[%142] : memref<128xi32, #tpu.memory_space<smem>>
    %144 = arith.index_cast %143 : i32 to index
    %c0_57 = arith.constant 0 : index
    %145 = vector.load %arg7[%144, %c0_57] : memref<40x64xf32, #tpu.memory_space<vmem>>, vector<1x64xf32>
    %c22 = arith.constant 22 : index
    %c0_58 = arith.constant 0 : index
    %146 = vector.load %arg8[%c22, %c0_58] : memref<32x64xf32, #tpu.memory_space<vmem>>, vector<1x64xf32>
    tpu.vector_store %arg8[%c22, %c0_58], %145 {strides = array<i32>} : memref<32x64xf32, #tpu.memory_space<vmem>>, vector<1x64xf32>,
    %c23_i32 = arith.constant 23 : i32
    %147 = arith.addi %8, %c23_i32 : i32
    %148 = arith.index_cast %147 : i32 to index
    %149 = memref.load %arg1[%148] : memref<128xi32, #tpu.memory_space<smem>>
    %150 = arith.index_cast %149 : i32 to index
    %c0_59 = arith.constant 0 : index
    %151 = vector.load %arg7[%150, %c0_59] : memref<40x64xf32, #tpu.memory_space<vmem>>, vector<1x64xf32>
    %c23 = arith.constant 23 : index
    %c0_60 = arith.constant 0 : index
    %152 = vector.load %arg8[%c23, %c0_60] : memref<32x64xf32, #tpu.memory_space<vmem>>, vector<1x64xf32>
    tpu.vector_store %arg8[%c23, %c0_60], %151 {strides = array<i32>} : memref<32x64xf32, #tpu.memory_space<vmem>>, vector<1x64xf32>,
    %c24_i32 = arith.constant 24 : i32
    %153 = arith.addi %8, %c24_i32 : i32
    %154 = arith.index_cast %153 : i32 to index
    %155 = memref.load %arg1[%154] : memref<128xi32, #tpu.memory_space<smem>>
    %156 = arith.index_cast %155 : i32 to index
    %c0_61 = arith.constant 0 : index
    %157 = vector.load %arg7[%156, %c0_61] : memref<40x64xf32, #tpu.memory_space<vmem>>, vector<1x64xf32>
    %c24 = arith.constant 24 : index
    %c0_62 = arith.constant 0 : index
    %158 = vector.load %arg8[%c24, %c0_62] : memref<32x64xf32, #tpu.memory_space<vmem>>, vector<1x64xf32>
    tpu.vector_store %arg8[%c24, %c0_62], %157 {strides = array<i32>} : memref<32x64xf32, #tpu.memory_space<vmem>>, vector<1x64xf32>,
    %c25_i32 = arith.constant 25 : i32
    %159 = arith.addi %8, %c25_i32 : i32
    %160 = arith.index_cast %159 : i32 to index
    %161 = memref.load %arg1[%160] : memref<128xi32, #tpu.memory_space<smem>>
    %162 = arith.index_cast %161 : i32 to index
    %c0_63 = arith.constant 0 : index
    %163 = vector.load %arg7[%162, %c0_63] : memref<40x64xf32, #tpu.memory_space<vmem>>, vector<1x64xf32>
    %c25 = arith.constant 25 : index
    %c0_64 = arith.constant 0 : index
    %164 = vector.load %arg8[%c25, %c0_64] : memref<32x64xf32, #tpu.memory_space<vmem>>, vector<1x64xf32>
    tpu.vector_store %arg8[%c25, %c0_64], %163 {strides = array<i32>} : memref<32x64xf32, #tpu.memory_space<vmem>>, vector<1x64xf32>,
    %c26_i32 = arith.constant 26 : i32
    %165 = arith.addi %8, %c26_i32 : i32
    %166 = arith.index_cast %165 : i32 to index
    %167 = memref.load %arg1[%166] : memref<128xi32, #tpu.memory_space<smem>>
    %168 = arith.index_cast %167 : i32 to index
    %c0_65 = arith.constant 0 : index
    %169 = vector.load %arg7[%168, %c0_65] : memref<40x64xf32, #tpu.memory_space<vmem>>, vector<1x64xf32>
    %c26 = arith.constant 26 : index
    %c0_66 = arith.constant 0 : index
    %170 = vector.load %arg8[%c26, %c0_66] : memref<32x64xf32, #tpu.memory_space<vmem>>, vector<1x64xf32>
    tpu.vector_store %arg8[%c26, %c0_66], %169 {strides = array<i32>} : memref<32x64xf32, #tpu.memory_space<vmem>>, vector<1x64xf32>,
    %c27_i32 = arith.constant 27 : i32
    %171 = arith.addi %8, %c27_i32 : i32
    %172 = arith.index_cast %171 : i32 to index
    %173 = memref.load %arg1[%172] : memref<128xi32, #tpu.memory_space<smem>>
    %174 = arith.index_cast %173 : i32 to index
    %c0_67 = arith.constant 0 : index
    %175 = vector.load %arg7[%174, %c0_67] : memref<40x64xf32, #tpu.memory_space<vmem>>, vector<1x64xf32>
    %c27 = arith.constant 27 : index
    %c0_68 = arith.constant 0 : index
    %176 = vector.load %arg8[%c27, %c0_68] : memref<32x64xf32, #tpu.memory_space<vmem>>, vector<1x64xf32>
    tpu.vector_store %arg8[%c27, %c0_68], %175 {strides = array<i32>} : memref<32x64xf32, #tpu.memory_space<vmem>>, vector<1x64xf32>,
    %c28_i32 = arith.constant 28 : i32
    %177 = arith.addi %8, %c28_i32 : i32
    %178 = arith.index_cast %177 : i32 to index
    %179 = memref.load %arg1[%178] : memref<128xi32, #tpu.memory_space<smem>>
    %180 = arith.index_cast %179 : i32 to index
    %c0_69 = arith.constant 0 : index
    %181 = vector.load %arg7[%180, %c0_69] : memref<40x64xf32, #tpu.memory_space<vmem>>, vector<1x64xf32>
    %c28 = arith.constant 28 : index
    %c0_70 = arith.constant 0 : index
    %182 = vector.load %arg8[%c28, %c0_70] : memref<32x64xf32, #tpu.memory_space<vmem>>, vector<1x64xf32>
    tpu.vector_store %arg8[%c28, %c0_70], %181 {strides = array<i32>} : memref<32x64xf32, #tpu.memory_space<vmem>>, vector<1x64xf32>,
    %c29_i32 = arith.constant 29 : i32
    %183 = arith.addi %8, %c29_i32 : i32
    %184 = arith.index_cast %183 : i32 to index
    %185 = memref.load %arg1[%184] : memref<128xi32, #tpu.memory_space<smem>>
    %186 = arith.index_cast %185 : i32 to index
    %c0_71 = arith.constant 0 : index
    %187 = vector.load %arg7[%186, %c0_71] : memref<40x64xf32, #tpu.memory_space<vmem>>, vector<1x64xf32>
    %c29 = arith.constant 29 : index
    %c0_72 = arith.constant 0 : index
    %188 = vector.load %arg8[%c29, %c0_72] : memref<32x64xf32, #tpu.memory_space<vmem>>, vector<1x64xf32>
    tpu.vector_store %arg8[%c29, %c0_72], %187 {strides = array<i32>} : memref<32x64xf32, #tpu.memory_space<vmem>>, vector<1x64xf32>,
    %c30_i32 = arith.constant 30 : i32
    %189 = arith.addi %8, %c30_i32 : i32
    %190 = arith.index_cast %189 : i32 to index
    %191 = memref.load %arg1[%190] : memref<128xi32, #tpu.memory_space<smem>>
    %192 = arith.index_cast %191 : i32 to index
    %c0_73 = arith.constant 0 : index
    %193 = vector.load %arg7[%192, %c0_73] : memref<40x64xf32, #tpu.memory_space<vmem>>, vector<1x64xf32>
    %c30 = arith.constant 30 : index
    %c0_74 = arith.constant 0 : index
    %194 = vector.load %arg8[%c30, %c0_74] : memref<32x64xf32, #tpu.memory_space<vmem>>, vector<1x64xf32>
    tpu.vector_store %arg8[%c30, %c0_74], %193 {strides = array<i32>} : memref<32x64xf32, #tpu.memory_space<vmem>>, vector<1x64xf32>,
    %c31_i32 = arith.constant 31 : i32
    %195 = arith.addi %8, %c31_i32 : i32
    %196 = arith.index_cast %195 : i32 to index
    %197 = memref.load %arg1[%196] : memref<128xi32, #tpu.memory_space<smem>>
    %198 = arith.index_cast %197 : i32 to index
    %c0_75 = arith.constant 0 : index
    %199 = vector.load %arg7[%198, %c0_75] : memref<40x64xf32, #tpu.memory_space<vmem>>, vector<1x64xf32>
    %c31 = arith.constant 31 : index
    %c0_76 = arith.constant 0 : index
    %200 = vector.load %arg8[%c31, %c0_76] : memref<32x64xf32, #tpu.memory_space<vmem>>, vector<1x64xf32>
    tpu.vector_store %arg8[%c31, %c0_76], %199 {strides = array<i32>} : memref<32x64xf32, #tpu.memory_space<vmem>>, vector<1x64xf32>,
    %c0_77 = arith.constant 0 : index
    %c0_78 = arith.constant 0 : index
    %201 = vector.load %arg8[%c0_77, %c0_78] : memref<32x64xf32, #tpu.memory_space<vmem>>, vector<32x64xf32>
    %202 = vector.extract_strided_slice %201 {offsets = [0, 0], sizes = [32, 32], strides = [1, 1]} : vector<32x64xf32> to vector<32x32xf32>
    %203 = vector.extract_strided_slice %201 {offsets = [0, 32], sizes = [32, 32], strides = [1, 1]} : vector<32x64xf32> to vector<32x32xf32>
    %204 = arith.index_cast %7 : i32 to index
    %c0_79 = arith.constant 0 : index
    %205 = vector.load %arg2[%204, %c0_79] : memref<32x32xf32, #tpu.memory_space<vmem>>, vector<8x32xf32>
    %cst_80 = arith.constant dense<0.000000e+00> : vector<8x128xf32>
    %206 = tpu.matmul %205, %2, %cst_80 {dimension_numbers = #tpu.dot_dimension_numbers<[1], [0], [0], [1], [0, 0, 1, 1], [], []>} : vector<8x32xf32>, vector<32x128xf32>, vector<8x128xf32> -> vector<8x128xf32>
    %207 = vector.broadcast %4 : vector<1x128xf32> to vector<8x128xf32>
    %208 = arith.addf %206, %207 : vector<8x128xf32>
    %cst_81 = arith.constant dense<0.000000e+00> : vector<32x128xf32>
    %209 = tpu.matmul %203, %3, %cst_81 {dimension_numbers = #tpu.dot_dimension_numbers<[1], [0], [0], [1], [0, 0, 1, 1], [], []>} : vector<32x32xf32>, vector<32x128xf32>, vector<32x128xf32> -> vector<32x128xf32>
    %210 = vector.extract_strided_slice %209 {offsets = [0, 0], sizes = [8, 128], strides = [1, 1]} : vector<32x128xf32> to vector<8x128xf32>
    %211 = vector.extract_strided_slice %209 {offsets = [8, 0], sizes = [8, 128], strides = [1, 1]} : vector<32x128xf32> to vector<8x128xf32>
    %212 = arith.addf %210, %211 : vector<8x128xf32>
    %213 = vector.extract_strided_slice %209 {offsets = [16, 0], sizes = [8, 128], strides = [1, 1]} : vector<32x128xf32> to vector<8x128xf32>
    %214 = arith.addf %212, %213 : vector<8x128xf32>
    %215 = vector.extract_strided_slice %209 {offsets = [24, 0], sizes = [8, 128], strides = [1, 1]} : vector<32x128xf32> to vector<8x128xf32>
    %216 = arith.addf %214, %215 : vector<8x128xf32>
    %217 = vector.extract_strided_slice %208 {offsets = [0, 0], sizes = [8, 96], strides = [1, 1]} : vector<8x128xf32> to vector<8x96xf32>
    %218 = vector.extract_strided_slice %216 {offsets = [0, 0], sizes = [8, 96], strides = [1, 1]} : vector<8x128xf32> to vector<8x96xf32>
    %219 = arith.addf %217, %218 : vector<8x96xf32>
    %220 = vector.extract_strided_slice %5 {offsets = [0, 0], sizes = [1, 96], strides = [1, 1]} : vector<1x128xf32> to vector<1x96xf32>
    %221 = vector.broadcast %220 : vector<1x96xf32> to vector<8x96xf32>
    %222 = arith.addf %219, %221 : vector<8x96xf32>
    %223 = vector.extract_strided_slice %222 {offsets = [0, 0], sizes = [8, 64], strides = [1, 1]} : vector<8x96xf32> to vector<8x64xf32>
    %224 = arith.negf %223 : vector<8x64xf32>
    %225 = math.exp %224 : vector<8x64xf32>
    %cst_82 = arith.constant 1.000000e+00 : f32
    %226 = vector.broadcast %cst_82 : f32 to vector<8x64xf32>
    %227 = arith.addf %226, %225 : vector<8x64xf32>
    %228 = arith.divf %226, %227 : vector<8x64xf32>
    %229 = vector.extract_strided_slice %228 {offsets = [0, 0], sizes = [8, 32], strides = [1, 1]} : vector<8x64xf32> to vector<8x32xf32>
    %230 = vector.extract_strided_slice %228 {offsets = [0, 32], sizes = [8, 32], strides = [1, 1]} : vector<8x64xf32> to vector<8x32xf32>
    %231 = vector.extract_strided_slice %222 {offsets = [0, 64], sizes = [8, 32], strides = [1, 1]} : vector<8x96xf32> to vector<8x32xf32>
    %232 = math.tanh %231 : vector<8x32xf32>
    %233 = vector.extract_strided_slice %208 {offsets = [0, 96], sizes = [8, 32], strides = [1, 1]} : vector<8x128xf32> to vector<8x32xf32>
    %234 = vector.extract_strided_slice %5 {offsets = [0, 96], sizes = [1, 32], strides = [1, 1]} : vector<1x128xf32> to vector<1x32xf32>
    %235 = vector.broadcast %234 : vector<1x32xf32> to vector<8x32xf32>
    %236 = arith.addf %233, %235 : vector<8x32xf32>
    %237 = vector.extract_strided_slice %209 {offsets = [0, 96], sizes = [32, 32], strides = [1, 1]} : vector<32x128xf32> to vector<32x32xf32>
    %238 = vector.extract_strided_slice %237 {offsets = [0, 0], sizes = [8, 32], strides = [1, 1]} : vector<32x32xf32> to vector<8x32xf32>
    %239 = arith.addf %238, %236 : vector<8x32xf32>
    %240 = arith.negf %239 : vector<8x32xf32>
    %241 = math.exp %240 : vector<8x32xf32>
    %cst_83 = arith.constant 1.000000e+00 : f32
    %242 = vector.broadcast %cst_83 : f32 to vector<8x32xf32>
    %243 = arith.addf %242, %241 : vector<8x32xf32>
    %244 = arith.divf %242, %243 : vector<8x32xf32>
    %245 = vector.extract_strided_slice %202 {offsets = [0, 0], sizes = [8, 32], strides = [1, 1]} : vector<32x32xf32> to vector<8x32xf32>
    %246 = arith.mulf %244, %245 : vector<8x32xf32>
    %247 = vector.extract_strided_slice %237 {offsets = [8, 0], sizes = [8, 32], strides = [1, 1]} : vector<32x32xf32> to vector<8x32xf32>
    %248 = arith.addf %247, %236 : vector<8x32xf32>
    %249 = arith.negf %248 : vector<8x32xf32>
    %250 = math.exp %249 : vector<8x32xf32>
    %cst_84 = arith.constant 1.000000e+00 : f32
    %251 = vector.broadcast %cst_84 : f32 to vector<8x32xf32>
    %252 = arith.addf %251, %250 : vector<8x32xf32>
    %253 = arith.divf %251, %252 : vector<8x32xf32>
    %254 = vector.extract_strided_slice %202 {offsets = [8, 0], sizes = [8, 32], strides = [1, 1]} : vector<32x32xf32> to vector<8x32xf32>
    %255 = arith.mulf %253, %254 : vector<8x32xf32>
    %256 = arith.addf %246, %255 : vector<8x32xf32>
    %257 = vector.extract_strided_slice %237 {offsets = [16, 0], sizes = [8, 32], strides = [1, 1]} : vector<32x32xf32> to vector<8x32xf32>
    %258 = arith.addf %257, %236 : vector<8x32xf32>
    %259 = arith.negf %258 : vector<8x32xf32>
    %260 = math.exp %259 : vector<8x32xf32>
    %cst_85 = arith.constant 1.000000e+00 : f32
    %261 = vector.broadcast %cst_85 : f32 to vector<8x32xf32>
    %262 = arith.addf %261, %260 : vector<8x32xf32>
    %263 = arith.divf %261, %262 : vector<8x32xf32>
    %264 = vector.extract_strided_slice %202 {offsets = [16, 0], sizes = [8, 32], strides = [1, 1]} : vector<32x32xf32> to vector<8x32xf32>
    %265 = arith.mulf %263, %264 : vector<8x32xf32>
    %266 = arith.addf %256, %265 : vector<8x32xf32>
    %267 = vector.extract_strided_slice %237 {offsets = [24, 0], sizes = [8, 32], strides = [1, 1]} : vector<32x32xf32> to vector<8x32xf32>
    %268 = arith.addf %267, %236 : vector<8x32xf32>
    %269 = arith.negf %268 : vector<8x32xf32>
    %270 = math.exp %269 : vector<8x32xf32>
    %cst_86 = arith.constant 1.000000e+00 : f32
    %271 = vector.broadcast %cst_86 : f32 to vector<8x32xf32>
    %272 = arith.addf %271, %270 : vector<8x32xf32>
    %273 = arith.divf %271, %272 : vector<8x32xf32>
    %274 = vector.extract_strided_slice %202 {offsets = [24, 0], sizes = [8, 32], strides = [1, 1]} : vector<32x32xf32> to vector<8x32xf32>
    %275 = arith.mulf %273, %274 : vector<8x32xf32>
    %276 = arith.addf %266, %275 : vector<8x32xf32>
    %277 = arith.mulf %229, %232 : vector<8x32xf32>
    %278 = arith.addf %277, %276 : vector<8x32xf32>
    %279 = math.tanh %278 : vector<8x32xf32>
    %280 = arith.mulf %230, %279 : vector<8x32xf32>
    %281 = tpu.concatenate %278, %280 in 1 : vector<8x32xf32>, vector<8x32xf32> -> vector<8x64xf32>
    %282 = arith.index_cast %7 : i32 to index
    %c0_87 = arith.constant 0 : index
    %283 = vector.load %arg7[%282, %c0_87] : memref<40x64xf32, #tpu.memory_space<vmem>>, vector<8x64xf32>
    tpu.vector_store %arg7[%282, %c0_87], %281 {strides = array<i32>} : memref<40x64xf32, #tpu.memory_space<vmem>>, vector<8x64xf32>,
    %c1_i32_88 = arith.constant 1 : i32
    %c8_i32_89 = arith.constant 8 : i32
    %284 = arith.muli %c1_i32_88, %c8_i32_89 : i32
    %285 = tpu.assume_multiple %284, 8 : i32
    %c4_i32_90 = arith.constant 4 : i32
    %286 = arith.muli %285, %c4_i32_90 : i32
    %c0_i32_91 = arith.constant 0 : i32
    %287 = arith.addi %286, %c0_i32_91 : i32
    %288 = arith.index_cast %287 : i32 to index
    %289 = memref.load %arg1[%288] : memref<128xi32, #tpu.memory_space<smem>>
    %290 = arith.index_cast %289 : i32 to index
    %c0_92 = arith.constant 0 : index
    %291 = vector.load %arg7[%290, %c0_92] : memref<40x64xf32, #tpu.memory_space<vmem>>, vector<1x64xf32>
    %c0_93 = arith.constant 0 : index
    %c0_94 = arith.constant 0 : index
    %292 = vector.load %arg8[%c0_93, %c0_94] : memref<32x64xf32, #tpu.memory_space<vmem>>, vector<1x64xf32>
    tpu.vector_store %arg8[%c0_93, %c0_94], %291 {strides = array<i32>} : memref<32x64xf32, #tpu.memory_space<vmem>>, vector<1x64xf32>,
    %c1_i32_95 = arith.constant 1 : i32
    %293 = arith.addi %286, %c1_i32_95 : i32
    %294 = arith.index_cast %293 : i32 to index
    %295 = memref.load %arg1[%294] : memref<128xi32, #tpu.memory_space<smem>>
    %296 = arith.index_cast %295 : i32 to index
    %c0_96 = arith.constant 0 : index
    %297 = vector.load %arg7[%296, %c0_96] : memref<40x64xf32, #tpu.memory_space<vmem>>, vector<1x64xf32>
    %c1_97 = arith.constant 1 : index
    %c0_98 = arith.constant 0 : index
    %298 = vector.load %arg8[%c1_97, %c0_98] : memref<32x64xf32, #tpu.memory_space<vmem>>, vector<1x64xf32>
    tpu.vector_store %arg8[%c1_97, %c0_98], %297 {strides = array<i32>} : memref<32x64xf32, #tpu.memory_space<vmem>>, vector<1x64xf32>,
    %c2_i32_99 = arith.constant 2 : i32
    %299 = arith.addi %286, %c2_i32_99 : i32
    %300 = arith.index_cast %299 : i32 to index
    %301 = memref.load %arg1[%300] : memref<128xi32, #tpu.memory_space<smem>>
    %302 = arith.index_cast %301 : i32 to index
    %c0_100 = arith.constant 0 : index
    %303 = vector.load %arg7[%302, %c0_100] : memref<40x64xf32, #tpu.memory_space<vmem>>, vector<1x64xf32>
    %c2_101 = arith.constant 2 : index
    %c0_102 = arith.constant 0 : index
    %304 = vector.load %arg8[%c2_101, %c0_102] : memref<32x64xf32, #tpu.memory_space<vmem>>, vector<1x64xf32>
    tpu.vector_store %arg8[%c2_101, %c0_102], %303 {strides = array<i32>} : memref<32x64xf32, #tpu.memory_space<vmem>>, vector<1x64xf32>,
    %c3_i32_103 = arith.constant 3 : i32
    %305 = arith.addi %286, %c3_i32_103 : i32
    %306 = arith.index_cast %305 : i32 to index
    %307 = memref.load %arg1[%306] : memref<128xi32, #tpu.memory_space<smem>>
    %308 = arith.index_cast %307 : i32 to index
    %c0_104 = arith.constant 0 : index
    %309 = vector.load %arg7[%308, %c0_104] : memref<40x64xf32, #tpu.memory_space<vmem>>, vector<1x64xf32>
    %c3_105 = arith.constant 3 : index
    %c0_106 = arith.constant 0 : index
    %310 = vector.load %arg8[%c3_105, %c0_106] : memref<32x64xf32, #tpu.memory_space<vmem>>, vector<1x64xf32>
    tpu.vector_store %arg8[%c3_105, %c0_106], %309 {strides = array<i32>} : memref<32x64xf32, #tpu.memory_space<vmem>>, vector<1x64xf32>,
    %c4_i32_107 = arith.constant 4 : i32
    %311 = arith.addi %286, %c4_i32_107 : i32
    %312 = arith.index_cast %311 : i32 to index
    %313 = memref.load %arg1[%312] : memref<128xi32, #tpu.memory_space<smem>>
    %314 = arith.index_cast %313 : i32 to index
    %c0_108 = arith.constant 0 : index
    %315 = vector.load %arg7[%314, %c0_108] : memref<40x64xf32, #tpu.memory_space<vmem>>, vector<1x64xf32>
    %c4_109 = arith.constant 4 : index
    %c0_110 = arith.constant 0 : index
    %316 = vector.load %arg8[%c4_109, %c0_110] : memref<32x64xf32, #tpu.memory_space<vmem>>, vector<1x64xf32>
    tpu.vector_store %arg8[%c4_109, %c0_110], %315 {strides = array<i32>} : memref<32x64xf32, #tpu.memory_space<vmem>>, vector<1x64xf32>,
    %c5_i32_111 = arith.constant 5 : i32
    %317 = arith.addi %286, %c5_i32_111 : i32
    %318 = arith.index_cast %317 : i32 to index
    %319 = memref.load %arg1[%318] : memref<128xi32, #tpu.memory_space<smem>>
    %320 = arith.index_cast %319 : i32 to index
    %c0_112 = arith.constant 0 : index
    %321 = vector.load %arg7[%320, %c0_112] : memref<40x64xf32, #tpu.memory_space<vmem>>, vector<1x64xf32>
    %c5_113 = arith.constant 5 : index
    %c0_114 = arith.constant 0 : index
    %322 = vector.load %arg8[%c5_113, %c0_114] : memref<32x64xf32, #tpu.memory_space<vmem>>, vector<1x64xf32>
    tpu.vector_store %arg8[%c5_113, %c0_114], %321 {strides = array<i32>} : memref<32x64xf32, #tpu.memory_space<vmem>>, vector<1x64xf32>,
    %c6_i32_115 = arith.constant 6 : i32
    %323 = arith.addi %286, %c6_i32_115 : i32
    %324 = arith.index_cast %323 : i32 to index
    %325 = memref.load %arg1[%324] : memref<128xi32, #tpu.memory_space<smem>>
    %326 = arith.index_cast %325 : i32 to index
    %c0_116 = arith.constant 0 : index
    %327 = vector.load %arg7[%326, %c0_116] : memref<40x64xf32, #tpu.memory_space<vmem>>, vector<1x64xf32>
    %c6_117 = arith.constant 6 : index
    %c0_118 = arith.constant 0 : index
    %328 = vector.load %arg8[%c6_117, %c0_118] : memref<32x64xf32, #tpu.memory_space<vmem>>, vector<1x64xf32>
    tpu.vector_store %arg8[%c6_117, %c0_118], %327 {strides = array<i32>} : memref<32x64xf32, #tpu.memory_space<vmem>>, vector<1x64xf32>,
    %c7_i32_119 = arith.constant 7 : i32
    %329 = arith.addi %286, %c7_i32_119 : i32
    %330 = arith.index_cast %329 : i32 to index
    %331 = memref.load %arg1[%330] : memref<128xi32, #tpu.memory_space<smem>>
    %332 = arith.index_cast %331 : i32 to index
    %c0_120 = arith.constant 0 : index
    %333 = vector.load %arg7[%332, %c0_120] : memref<40x64xf32, #tpu.memory_space<vmem>>, vector<1x64xf32>
    %c7_121 = arith.constant 7 : index
    %c0_122 = arith.constant 0 : index
    %334 = vector.load %arg8[%c7_121, %c0_122] : memref<32x64xf32, #tpu.memory_space<vmem>>, vector<1x64xf32>
    tpu.vector_store %arg8[%c7_121, %c0_122], %333 {strides = array<i32>} : memref<32x64xf32, #tpu.memory_space<vmem>>, vector<1x64xf32>,
    %c8_i32_123 = arith.constant 8 : i32
    %335 = arith.addi %286, %c8_i32_123 : i32
    %336 = arith.index_cast %335 : i32 to index
    %337 = memref.load %arg1[%336] : memref<128xi32, #tpu.memory_space<smem>>
    %338 = arith.index_cast %337 : i32 to index
    %c0_124 = arith.constant 0 : index
    %339 = vector.load %arg7[%338, %c0_124] : memref<40x64xf32, #tpu.memory_space<vmem>>, vector<1x64xf32>
    %c8_125 = arith.constant 8 : index
    %c0_126 = arith.constant 0 : index
    %340 = vector.load %arg8[%c8_125, %c0_126] : memref<32x64xf32, #tpu.memory_space<vmem>>, vector<1x64xf32>
    tpu.vector_store %arg8[%c8_125, %c0_126], %339 {strides = array<i32>} : memref<32x64xf32, #tpu.memory_space<vmem>>, vector<1x64xf32>,
    %c9_i32_127 = arith.constant 9 : i32
    %341 = arith.addi %286, %c9_i32_127 : i32
    %342 = arith.index_cast %341 : i32 to index
    %343 = memref.load %arg1[%342] : memref<128xi32, #tpu.memory_space<smem>>
    %344 = arith.index_cast %343 : i32 to index
    %c0_128 = arith.constant 0 : index
    %345 = vector.load %arg7[%344, %c0_128] : memref<40x64xf32, #tpu.memory_space<vmem>>, vector<1x64xf32>
    %c9_129 = arith.constant 9 : index
    %c0_130 = arith.constant 0 : index
    %346 = vector.load %arg8[%c9_129, %c0_130] : memref<32x64xf32, #tpu.memory_space<vmem>>, vector<1x64xf32>
    tpu.vector_store %arg8[%c9_129, %c0_130], %345 {strides = array<i32>} : memref<32x64xf32, #tpu.memory_space<vmem>>, vector<1x64xf32>,
    %c10_i32_131 = arith.constant 10 : i32
    %347 = arith.addi %286, %c10_i32_131 : i32
    %348 = arith.index_cast %347 : i32 to index
    %349 = memref.load %arg1[%348] : memref<128xi32, #tpu.memory_space<smem>>
    %350 = arith.index_cast %349 : i32 to index
    %c0_132 = arith.constant 0 : index
    %351 = vector.load %arg7[%350, %c0_132] : memref<40x64xf32, #tpu.memory_space<vmem>>, vector<1x64xf32>
    %c10_133 = arith.constant 10 : index
    %c0_134 = arith.constant 0 : index
    %352 = vector.load %arg8[%c10_133, %c0_134] : memref<32x64xf32, #tpu.memory_space<vmem>>, vector<1x64xf32>
    tpu.vector_store %arg8[%c10_133, %c0_134], %351 {strides = array<i32>} : memref<32x64xf32, #tpu.memory_space<vmem>>, vector<1x64xf32>,
    %c11_i32_135 = arith.constant 11 : i32
    %353 = arith.addi %286, %c11_i32_135 : i32
    %354 = arith.index_cast %353 : i32 to index
    %355 = memref.load %arg1[%354] : memref<128xi32, #tpu.memory_space<smem>>
    %356 = arith.index_cast %355 : i32 to index
    %c0_136 = arith.constant 0 : index
    %357 = vector.load %arg7[%356, %c0_136] : memref<40x64xf32, #tpu.memory_space<vmem>>, vector<1x64xf32>
    %c11_137 = arith.constant 11 : index
    %c0_138 = arith.constant 0 : index
    %358 = vector.load %arg8[%c11_137, %c0_138] : memref<32x64xf32, #tpu.memory_space<vmem>>, vector<1x64xf32>
    tpu.vector_store %arg8[%c11_137, %c0_138], %357 {strides = array<i32>} : memref<32x64xf32, #tpu.memory_space<vmem>>, vector<1x64xf32>,
    %c12_i32_139 = arith.constant 12 : i32
    %359 = arith.addi %286, %c12_i32_139 : i32
    %360 = arith.index_cast %359 : i32 to index
    %361 = memref.load %arg1[%360] : memref<128xi32, #tpu.memory_space<smem>>
    %362 = arith.index_cast %361 : i32 to index
    %c0_140 = arith.constant 0 : index
    %363 = vector.load %arg7[%362, %c0_140] : memref<40x64xf32, #tpu.memory_space<vmem>>, vector<1x64xf32>
    %c12_141 = arith.constant 12 : index
    %c0_142 = arith.constant 0 : index
    %364 = vector.load %arg8[%c12_141, %c0_142] : memref<32x64xf32, #tpu.memory_space<vmem>>, vector<1x64xf32>
    tpu.vector_store %arg8[%c12_141, %c0_142], %363 {strides = array<i32>} : memref<32x64xf32, #tpu.memory_space<vmem>>, vector<1x64xf32>,
    %c13_i32_143 = arith.constant 13 : i32
    %365 = arith.addi %286, %c13_i32_143 : i32
    %366 = arith.index_cast %365 : i32 to index
    %367 = memref.load %arg1[%366] : memref<128xi32, #tpu.memory_space<smem>>
    %368 = arith.index_cast %367 : i32 to index
    %c0_144 = arith.constant 0 : index
    %369 = vector.load %arg7[%368, %c0_144] : memref<40x64xf32, #tpu.memory_space<vmem>>, vector<1x64xf32>
    %c13_145 = arith.constant 13 : index
    %c0_146 = arith.constant 0 : index
    %370 = vector.load %arg8[%c13_145, %c0_146] : memref<32x64xf32, #tpu.memory_space<vmem>>, vector<1x64xf32>
    tpu.vector_store %arg8[%c13_145, %c0_146], %369 {strides = array<i32>} : memref<32x64xf32, #tpu.memory_space<vmem>>, vector<1x64xf32>,
    %c14_i32_147 = arith.constant 14 : i32
    %371 = arith.addi %286, %c14_i32_147 : i32
    %372 = arith.index_cast %371 : i32 to index
    %373 = memref.load %arg1[%372] : memref<128xi32, #tpu.memory_space<smem>>
    %374 = arith.index_cast %373 : i32 to index
    %c0_148 = arith.constant 0 : index
    %375 = vector.load %arg7[%374, %c0_148] : memref<40x64xf32, #tpu.memory_space<vmem>>, vector<1x64xf32>
    %c14_149 = arith.constant 14 : index
    %c0_150 = arith.constant 0 : index
    %376 = vector.load %arg8[%c14_149, %c0_150] : memref<32x64xf32, #tpu.memory_space<vmem>>, vector<1x64xf32>
    tpu.vector_store %arg8[%c14_149, %c0_150], %375 {strides = array<i32>} : memref<32x64xf32, #tpu.memory_space<vmem>>, vector<1x64xf32>,
    %c15_i32_151 = arith.constant 15 : i32
    %377 = arith.addi %286, %c15_i32_151 : i32
    %378 = arith.index_cast %377 : i32 to index
    %379 = memref.load %arg1[%378] : memref<128xi32, #tpu.memory_space<smem>>
    %380 = arith.index_cast %379 : i32 to index
    %c0_152 = arith.constant 0 : index
    %381 = vector.load %arg7[%380, %c0_152] : memref<40x64xf32, #tpu.memory_space<vmem>>, vector<1x64xf32>
    %c15_153 = arith.constant 15 : index
    %c0_154 = arith.constant 0 : index
    %382 = vector.load %arg8[%c15_153, %c0_154] : memref<32x64xf32, #tpu.memory_space<vmem>>, vector<1x64xf32>
    tpu.vector_store %arg8[%c15_153, %c0_154], %381 {strides = array<i32>} : memref<32x64xf32, #tpu.memory_space<vmem>>, vector<1x64xf32>,
    %c16_i32_155 = arith.constant 16 : i32
    %383 = arith.addi %286, %c16_i32_155 : i32
    %384 = arith.index_cast %383 : i32 to index
    %385 = memref.load %arg1[%384] : memref<128xi32, #tpu.memory_space<smem>>
    %386 = arith.index_cast %385 : i32 to index
    %c0_156 = arith.constant 0 : index
    %387 = vector.load %arg7[%386, %c0_156] : memref<40x64xf32, #tpu.memory_space<vmem>>, vector<1x64xf32>
    %c16_157 = arith.constant 16 : index
    %c0_158 = arith.constant 0 : index
    %388 = vector.load %arg8[%c16_157, %c0_158] : memref<32x64xf32, #tpu.memory_space<vmem>>, vector<1x64xf32>
    tpu.vector_store %arg8[%c16_157, %c0_158], %387 {strides = array<i32>} : memref<32x64xf32, #tpu.memory_space<vmem>>, vector<1x64xf32>,
    %c17_i32_159 = arith.constant 17 : i32
    %389 = arith.addi %286, %c17_i32_159 : i32
    %390 = arith.index_cast %389 : i32 to index
    %391 = memref.load %arg1[%390] : memref<128xi32, #tpu.memory_space<smem>>
    %392 = arith.index_cast %391 : i32 to index
    %c0_160 = arith.constant 0 : index
    %393 = vector.load %arg7[%392, %c0_160] : memref<40x64xf32, #tpu.memory_space<vmem>>, vector<1x64xf32>
    %c17_161 = arith.constant 17 : index
    %c0_162 = arith.constant 0 : index
    %394 = vector.load %arg8[%c17_161, %c0_162] : memref<32x64xf32, #tpu.memory_space<vmem>>, vector<1x64xf32>
    tpu.vector_store %arg8[%c17_161, %c0_162], %393 {strides = array<i32>} : memref<32x64xf32, #tpu.memory_space<vmem>>, vector<1x64xf32>,
    %c18_i32_163 = arith.constant 18 : i32
    %395 = arith.addi %286, %c18_i32_163 : i32
    %396 = arith.index_cast %395 : i32 to index
    %397 = memref.load %arg1[%396] : memref<128xi32, #tpu.memory_space<smem>>
    %398 = arith.index_cast %397 : i32 to index
    %c0_164 = arith.constant 0 : index
    %399 = vector.load %arg7[%398, %c0_164] : memref<40x64xf32, #tpu.memory_space<vmem>>, vector<1x64xf32>
    %c18_165 = arith.constant 18 : index
    %c0_166 = arith.constant 0 : index
    %400 = vector.load %arg8[%c18_165, %c0_166] : memref<32x64xf32, #tpu.memory_space<vmem>>, vector<1x64xf32>
    tpu.vector_store %arg8[%c18_165, %c0_166], %399 {strides = array<i32>} : memref<32x64xf32, #tpu.memory_space<vmem>>, vector<1x64xf32>,
    %c19_i32_167 = arith.constant 19 : i32
    %401 = arith.addi %286, %c19_i32_167 : i32
    %402 = arith.index_cast %401 : i32 to index
    %403 = memref.load %arg1[%402] : memref<128xi32, #tpu.memory_space<smem>>
    %404 = arith.index_cast %403 : i32 to index
    %c0_168 = arith.constant 0 : index
    %405 = vector.load %arg7[%404, %c0_168] : memref<40x64xf32, #tpu.memory_space<vmem>>, vector<1x64xf32>
    %c19_169 = arith.constant 19 : index
    %c0_170 = arith.constant 0 : index
    %406 = vector.load %arg8[%c19_169, %c0_170] : memref<32x64xf32, #tpu.memory_space<vmem>>, vector<1x64xf32>
    tpu.vector_store %arg8[%c19_169, %c0_170], %405 {strides = array<i32>} : memref<32x64xf32, #tpu.memory_space<vmem>>, vector<1x64xf32>,
    %c20_i32_171 = arith.constant 20 : i32
    %407 = arith.addi %286, %c20_i32_171 : i32
    %408 = arith.index_cast %407 : i32 to index
    %409 = memref.load %arg1[%408] : memref<128xi32, #tpu.memory_space<smem>>
    %410 = arith.index_cast %409 : i32 to index
    %c0_172 = arith.constant 0 : index
    %411 = vector.load %arg7[%410, %c0_172] : memref<40x64xf32, #tpu.memory_space<vmem>>, vector<1x64xf32>
    %c20_173 = arith.constant 20 : index
    %c0_174 = arith.constant 0 : index
    %412 = vector.load %arg8[%c20_173, %c0_174] : memref<32x64xf32, #tpu.memory_space<vmem>>, vector<1x64xf32>
    tpu.vector_store %arg8[%c20_173, %c0_174], %411 {strides = array<i32>} : memref<32x64xf32, #tpu.memory_space<vmem>>, vector<1x64xf32>,
    %c21_i32_175 = arith.constant 21 : i32
    %413 = arith.addi %286, %c21_i32_175 : i32
    %414 = arith.index_cast %413 : i32 to index
    %415 = memref.load %arg1[%414] : memref<128xi32, #tpu.memory_space<smem>>
    %416 = arith.index_cast %415 : i32 to index
    %c0_176 = arith.constant 0 : index
    %417 = vector.load %arg7[%416, %c0_176] : memref<40x64xf32, #tpu.memory_space<vmem>>, vector<1x64xf32>
    %c21_177 = arith.constant 21 : index
    %c0_178 = arith.constant 0 : index
    %418 = vector.load %arg8[%c21_177, %c0_178] : memref<32x64xf32, #tpu.memory_space<vmem>>, vector<1x64xf32>
    tpu.vector_store %arg8[%c21_177, %c0_178], %417 {strides = array<i32>} : memref<32x64xf32, #tpu.memory_space<vmem>>, vector<1x64xf32>,
    %c22_i32_179 = arith.constant 22 : i32
    %419 = arith.addi %286, %c22_i32_179 : i32
    %420 = arith.index_cast %419 : i32 to index
    %421 = memref.load %arg1[%420] : memref<128xi32, #tpu.memory_space<smem>>
    %422 = arith.index_cast %421 : i32 to index
    %c0_180 = arith.constant 0 : index
    %423 = vector.load %arg7[%422, %c0_180] : memref<40x64xf32, #tpu.memory_space<vmem>>, vector<1x64xf32>
    %c22_181 = arith.constant 22 : index
    %c0_182 = arith.constant 0 : index
    %424 = vector.load %arg8[%c22_181, %c0_182] : memref<32x64xf32, #tpu.memory_space<vmem>>, vector<1x64xf32>
    tpu.vector_store %arg8[%c22_181, %c0_182], %423 {strides = array<i32>} : memref<32x64xf32, #tpu.memory_space<vmem>>, vector<1x64xf32>,
    %c23_i32_183 = arith.constant 23 : i32
    %425 = arith.addi %286, %c23_i32_183 : i32
    %426 = arith.index_cast %425 : i32 to index
    %427 = memref.load %arg1[%426] : memref<128xi32, #tpu.memory_space<smem>>
    %428 = arith.index_cast %427 : i32 to index
    %c0_184 = arith.constant 0 : index
    %429 = vector.load %arg7[%428, %c0_184] : memref<40x64xf32, #tpu.memory_space<vmem>>, vector<1x64xf32>
    %c23_185 = arith.constant 23 : index
    %c0_186 = arith.constant 0 : index
    %430 = vector.load %arg8[%c23_185, %c0_186] : memref<32x64xf32, #tpu.memory_space<vmem>>, vector<1x64xf32>
    tpu.vector_store %arg8[%c23_185, %c0_186], %429 {strides = array<i32>} : memref<32x64xf32, #tpu.memory_space<vmem>>, vector<1x64xf32>,
    %c24_i32_187 = arith.constant 24 : i32
    %431 = arith.addi %286, %c24_i32_187 : i32
    %432 = arith.index_cast %431 : i32 to index
    %433 = memref.load %arg1[%432] : memref<128xi32, #tpu.memory_space<smem>>
    %434 = arith.index_cast %433 : i32 to index
    %c0_188 = arith.constant 0 : index
    %435 = vector.load %arg7[%434, %c0_188] : memref<40x64xf32, #tpu.memory_space<vmem>>, vector<1x64xf32>
    %c24_189 = arith.constant 24 : index
    %c0_190 = arith.constant 0 : index
    %436 = vector.load %arg8[%c24_189, %c0_190] : memref<32x64xf32, #tpu.memory_space<vmem>>, vector<1x64xf32>
    tpu.vector_store %arg8[%c24_189, %c0_190], %435 {strides = array<i32>} : memref<32x64xf32, #tpu.memory_space<vmem>>, vector<1x64xf32>,
    %c25_i32_191 = arith.constant 25 : i32
    %437 = arith.addi %286, %c25_i32_191 : i32
    %438 = arith.index_cast %437 : i32 to index
    %439 = memref.load %arg1[%438] : memref<128xi32, #tpu.memory_space<smem>>
    %440 = arith.index_cast %439 : i32 to index
    %c0_192 = arith.constant 0 : index
    %441 = vector.load %arg7[%440, %c0_192] : memref<40x64xf32, #tpu.memory_space<vmem>>, vector<1x64xf32>
    %c25_193 = arith.constant 25 : index
    %c0_194 = arith.constant 0 : index
    %442 = vector.load %arg8[%c25_193, %c0_194] : memref<32x64xf32, #tpu.memory_space<vmem>>, vector<1x64xf32>
    tpu.vector_store %arg8[%c25_193, %c0_194], %441 {strides = array<i32>} : memref<32x64xf32, #tpu.memory_space<vmem>>, vector<1x64xf32>,
    %c26_i32_195 = arith.constant 26 : i32
    %443 = arith.addi %286, %c26_i32_195 : i32
    %444 = arith.index_cast %443 : i32 to index
    %445 = memref.load %arg1[%444] : memref<128xi32, #tpu.memory_space<smem>>
    %446 = arith.index_cast %445 : i32 to index
    %c0_196 = arith.constant 0 : index
    %447 = vector.load %arg7[%446, %c0_196] : memref<40x64xf32, #tpu.memory_space<vmem>>, vector<1x64xf32>
    %c26_197 = arith.constant 26 : index
    %c0_198 = arith.constant 0 : index
    %448 = vector.load %arg8[%c26_197, %c0_198] : memref<32x64xf32, #tpu.memory_space<vmem>>, vector<1x64xf32>
    tpu.vector_store %arg8[%c26_197, %c0_198], %447 {strides = array<i32>} : memref<32x64xf32, #tpu.memory_space<vmem>>, vector<1x64xf32>,
    %c27_i32_199 = arith.constant 27 : i32
    %449 = arith.addi %286, %c27_i32_199 : i32
    %450 = arith.index_cast %449 : i32 to index
    %451 = memref.load %arg1[%450] : memref<128xi32, #tpu.memory_space<smem>>
    %452 = arith.index_cast %451 : i32 to index
    %c0_200 = arith.constant 0 : index
    %453 = vector.load %arg7[%452, %c0_200] : memref<40x64xf32, #tpu.memory_space<vmem>>, vector<1x64xf32>
    %c27_201 = arith.constant 27 : index
    %c0_202 = arith.constant 0 : index
    %454 = vector.load %arg8[%c27_201, %c0_202] : memref<32x64xf32, #tpu.memory_space<vmem>>, vector<1x64xf32>
    tpu.vector_store %arg8[%c27_201, %c0_202], %453 {strides = array<i32>} : memref<32x64xf32, #tpu.memory_space<vmem>>, vector<1x64xf32>,
    %c28_i32_203 = arith.constant 28 : i32
    %455 = arith.addi %286, %c28_i32_203 : i32
    %456 = arith.index_cast %455 : i32 to index
    %457 = memref.load %arg1[%456] : memref<128xi32, #tpu.memory_space<smem>>
    %458 = arith.index_cast %457 : i32 to index
    %c0_204 = arith.constant 0 : index
    %459 = vector.load %arg7[%458, %c0_204] : memref<40x64xf32, #tpu.memory_space<vmem>>, vector<1x64xf32>
    %c28_205 = arith.constant 28 : index
    %c0_206 = arith.constant 0 : index
    %460 = vector.load %arg8[%c28_205, %c0_206] : memref<32x64xf32, #tpu.memory_space<vmem>>, vector<1x64xf32>
    tpu.vector_store %arg8[%c28_205, %c0_206], %459 {strides = array<i32>} : memref<32x64xf32, #tpu.memory_space<vmem>>, vector<1x64xf32>,
    %c29_i32_207 = arith.constant 29 : i32
    %461 = arith.addi %286, %c29_i32_207 : i32
    %462 = arith.index_cast %461 : i32 to index
    %463 = memref.load %arg1[%462] : memref<128xi32, #tpu.memory_space<smem>>
    %464 = arith.index_cast %463 : i32 to index
    %c0_208 = arith.constant 0 : index
    %465 = vector.load %arg7[%464, %c0_208] : memref<40x64xf32, #tpu.memory_space<vmem>>, vector<1x64xf32>
    %c29_209 = arith.constant 29 : index
    %c0_210 = arith.constant 0 : index
    %466 = vector.load %arg8[%c29_209, %c0_210] : memref<32x64xf32, #tpu.memory_space<vmem>>, vector<1x64xf32>
    tpu.vector_store %arg8[%c29_209, %c0_210], %465 {strides = array<i32>} : memref<32x64xf32, #tpu.memory_space<vmem>>, vector<1x64xf32>,
    %c30_i32_211 = arith.constant 30 : i32
    %467 = arith.addi %286, %c30_i32_211 : i32
    %468 = arith.index_cast %467 : i32 to index
    %469 = memref.load %arg1[%468] : memref<128xi32, #tpu.memory_space<smem>>
    %470 = arith.index_cast %469 : i32 to index
    %c0_212 = arith.constant 0 : index
    %471 = vector.load %arg7[%470, %c0_212] : memref<40x64xf32, #tpu.memory_space<vmem>>, vector<1x64xf32>
    %c30_213 = arith.constant 30 : index
    %c0_214 = arith.constant 0 : index
    %472 = vector.load %arg8[%c30_213, %c0_214] : memref<32x64xf32, #tpu.memory_space<vmem>>, vector<1x64xf32>
    tpu.vector_store %arg8[%c30_213, %c0_214], %471 {strides = array<i32>} : memref<32x64xf32, #tpu.memory_space<vmem>>, vector<1x64xf32>,
    %c31_i32_215 = arith.constant 31 : i32
    %473 = arith.addi %286, %c31_i32_215 : i32
    %474 = arith.index_cast %473 : i32 to index
    %475 = memref.load %arg1[%474] : memref<128xi32, #tpu.memory_space<smem>>
    %476 = arith.index_cast %475 : i32 to index
    %c0_216 = arith.constant 0 : index
    %477 = vector.load %arg7[%476, %c0_216] : memref<40x64xf32, #tpu.memory_space<vmem>>, vector<1x64xf32>
    %c31_217 = arith.constant 31 : index
    %c0_218 = arith.constant 0 : index
    %478 = vector.load %arg8[%c31_217, %c0_218] : memref<32x64xf32, #tpu.memory_space<vmem>>, vector<1x64xf32>
    tpu.vector_store %arg8[%c31_217, %c0_218], %477 {strides = array<i32>} : memref<32x64xf32, #tpu.memory_space<vmem>>, vector<1x64xf32>,
    %c0_219 = arith.constant 0 : index
    %c0_220 = arith.constant 0 : index
    %479 = vector.load %arg8[%c0_219, %c0_220] : memref<32x64xf32, #tpu.memory_space<vmem>>, vector<32x64xf32>
    %480 = vector.extract_strided_slice %479 {offsets = [0, 0], sizes = [32, 32], strides = [1, 1]} : vector<32x64xf32> to vector<32x32xf32>
    %481 = vector.extract_strided_slice %479 {offsets = [0, 32], sizes = [32, 32], strides = [1, 1]} : vector<32x64xf32> to vector<32x32xf32>
    %482 = arith.index_cast %285 : i32 to index
    %c0_221 = arith.constant 0 : index
    %483 = vector.load %arg2[%482, %c0_221] : memref<32x32xf32, #tpu.memory_space<vmem>>, vector<8x32xf32>
    %cst_222 = arith.constant dense<0.000000e+00> : vector<8x128xf32>
    %484 = tpu.matmul %483, %2, %cst_222 {dimension_numbers = #tpu.dot_dimension_numbers<[1], [0], [0], [1], [0, 0, 1, 1], [], []>} : vector<8x32xf32>, vector<32x128xf32>, vector<8x128xf32> -> vector<8x128xf32>
    %485 = vector.broadcast %4 : vector<1x128xf32> to vector<8x128xf32>
    %486 = arith.addf %484, %485 : vector<8x128xf32>
    %cst_223 = arith.constant dense<0.000000e+00> : vector<32x128xf32>
    %487 = tpu.matmul %481, %3, %cst_223 {dimension_numbers = #tpu.dot_dimension_numbers<[1], [0], [0], [1], [0, 0, 1, 1], [], []>} : vector<32x32xf32>, vector<32x128xf32>, vector<32x128xf32> -> vector<32x128xf32>
    %488 = vector.extract_strided_slice %487 {offsets = [0, 0], sizes = [8, 128], strides = [1, 1]} : vector<32x128xf32> to vector<8x128xf32>
    %489 = vector.extract_strided_slice %487 {offsets = [8, 0], sizes = [8, 128], strides = [1, 1]} : vector<32x128xf32> to vector<8x128xf32>
    %490 = arith.addf %488, %489 : vector<8x128xf32>
    %491 = vector.extract_strided_slice %487 {offsets = [16, 0], sizes = [8, 128], strides = [1, 1]} : vector<32x128xf32> to vector<8x128xf32>
    %492 = arith.addf %490, %491 : vector<8x128xf32>
    %493 = vector.extract_strided_slice %487 {offsets = [24, 0], sizes = [8, 128], strides = [1, 1]} : vector<32x128xf32> to vector<8x128xf32>
    %494 = arith.addf %492, %493 : vector<8x128xf32>
    %495 = vector.extract_strided_slice %486 {offsets = [0, 0], sizes = [8, 96], strides = [1, 1]} : vector<8x128xf32> to vector<8x96xf32>
    %496 = vector.extract_strided_slice %494 {offsets = [0, 0], sizes = [8, 96], strides = [1, 1]} : vector<8x128xf32> to vector<8x96xf32>
    %497 = arith.addf %495, %496 : vector<8x96xf32>
    %498 = vector.extract_strided_slice %5 {offsets = [0, 0], sizes = [1, 96], strides = [1, 1]} : vector<1x128xf32> to vector<1x96xf32>
    %499 = vector.broadcast %498 : vector<1x96xf32> to vector<8x96xf32>
    %500 = arith.addf %497, %499 : vector<8x96xf32>
    %501 = vector.extract_strided_slice %500 {offsets = [0, 0], sizes = [8, 64], strides = [1, 1]} : vector<8x96xf32> to vector<8x64xf32>
    %502 = arith.negf %501 : vector<8x64xf32>
    %503 = math.exp %502 : vector<8x64xf32>
    %cst_224 = arith.constant 1.000000e+00 : f32
    %504 = vector.broadcast %cst_224 : f32 to vector<8x64xf32>
    %505 = arith.addf %504, %503 : vector<8x64xf32>
    %506 = arith.divf %504, %505 : vector<8x64xf32>
    %507 = vector.extract_strided_slice %506 {offsets = [0, 0], sizes = [8, 32], strides = [1, 1]} : vector<8x64xf32> to vector<8x32xf32>
    %508 = vector.extract_strided_slice %506 {offsets = [0, 32], sizes = [8, 32], strides = [1, 1]} : vector<8x64xf32> to vector<8x32xf32>
    %509 = vector.extract_strided_slice %500 {offsets = [0, 64], sizes = [8, 32], strides = [1, 1]} : vector<8x96xf32> to vector<8x32xf32>
    %510 = math.tanh %509 : vector<8x32xf32>
    %511 = vector.extract_strided_slice %486 {offsets = [0, 96], sizes = [8, 32], strides = [1, 1]} : vector<8x128xf32> to vector<8x32xf32>
    %512 = vector.extract_strided_slice %5 {offsets = [0, 96], sizes = [1, 32], strides = [1, 1]} : vector<1x128xf32> to vector<1x32xf32>
    %513 = vector.broadcast %512 : vector<1x32xf32> to vector<8x32xf32>
    %514 = arith.addf %511, %513 : vector<8x32xf32>
    %515 = vector.extract_strided_slice %487 {offsets = [0, 96], sizes = [32, 32], strides = [1, 1]} : vector<32x128xf32> to vector<32x32xf32>
    %516 = vector.extract_strided_slice %515 {offsets = [0, 0], sizes = [8, 32], strides = [1, 1]} : vector<32x32xf32> to vector<8x32xf32>
    %517 = arith.addf %516, %514 : vector<8x32xf32>
    %518 = arith.negf %517 : vector<8x32xf32>
    %519 = math.exp %518 : vector<8x32xf32>
    %cst_225 = arith.constant 1.000000e+00 : f32
    %520 = vector.broadcast %cst_225 : f32 to vector<8x32xf32>
    %521 = arith.addf %520, %519 : vector<8x32xf32>
    %522 = arith.divf %520, %521 : vector<8x32xf32>
    %523 = vector.extract_strided_slice %480 {offsets = [0, 0], sizes = [8, 32], strides = [1, 1]} : vector<32x32xf32> to vector<8x32xf32>
    %524 = arith.mulf %522, %523 : vector<8x32xf32>
    %525 = vector.extract_strided_slice %515 {offsets = [8, 0], sizes = [8, 32], strides = [1, 1]} : vector<32x32xf32> to vector<8x32xf32>
    %526 = arith.addf %525, %514 : vector<8x32xf32>
    %527 = arith.negf %526 : vector<8x32xf32>
    %528 = math.exp %527 : vector<8x32xf32>
    %cst_226 = arith.constant 1.000000e+00 : f32
    %529 = vector.broadcast %cst_226 : f32 to vector<8x32xf32>
    %530 = arith.addf %529, %528 : vector<8x32xf32>
    %531 = arith.divf %529, %530 : vector<8x32xf32>
    %532 = vector.extract_strided_slice %480 {offsets = [8, 0], sizes = [8, 32], strides = [1, 1]} : vector<32x32xf32> to vector<8x32xf32>
    %533 = arith.mulf %531, %532 : vector<8x32xf32>
    %534 = arith.addf %524, %533 : vector<8x32xf32>
    %535 = vector.extract_strided_slice %515 {offsets = [16, 0], sizes = [8, 32], strides = [1, 1]} : vector<32x32xf32> to vector<8x32xf32>
    %536 = arith.addf %535, %514 : vector<8x32xf32>
    %537 = arith.negf %536 : vector<8x32xf32>
    %538 = math.exp %537 : vector<8x32xf32>
    %cst_227 = arith.constant 1.000000e+00 : f32
    %539 = vector.broadcast %cst_227 : f32 to vector<8x32xf32>
    %540 = arith.addf %539, %538 : vector<8x32xf32>
    %541 = arith.divf %539, %540 : vector<8x32xf32>
    %542 = vector.extract_strided_slice %480 {offsets = [16, 0], sizes = [8, 32], strides = [1, 1]} : vector<32x32xf32> to vector<8x32xf32>
    %543 = arith.mulf %541, %542 : vector<8x32xf32>
    %544 = arith.addf %534, %543 : vector<8x32xf32>
    %545 = vector.extract_strided_slice %515 {offsets = [24, 0], sizes = [8, 32], strides = [1, 1]} : vector<32x32xf32> to vector<8x32xf32>
    %546 = arith.addf %545, %514 : vector<8x32xf32>
    %547 = arith.negf %546 : vector<8x32xf32>
    %548 = math.exp %547 : vector<8x32xf32>
    %cst_228 = arith.constant 1.000000e+00 : f32
    %549 = vector.broadcast %cst_228 : f32 to vector<8x32xf32>
    %550 = arith.addf %549, %548 : vector<8x32xf32>
    %551 = arith.divf %549, %550 : vector<8x32xf32>
    %552 = vector.extract_strided_slice %480 {offsets = [24, 0], sizes = [8, 32], strides = [1, 1]} : vector<32x32xf32> to vector<8x32xf32>
    %553 = arith.mulf %551, %552 : vector<8x32xf32>
    %554 = arith.addf %544, %553 : vector<8x32xf32>
    %555 = arith.mulf %507, %510 : vector<8x32xf32>
    %556 = arith.addf %555, %554 : vector<8x32xf32>
    %557 = math.tanh %556 : vector<8x32xf32>
    %558 = arith.mulf %508, %557 : vector<8x32xf32>
    %559 = tpu.concatenate %556, %558 in 1 : vector<8x32xf32>, vector<8x32xf32> -> vector<8x64xf32>
    %560 = arith.index_cast %285 : i32 to index
    %c0_229 = arith.constant 0 : index
    %561 = vector.load %arg7[%560, %c0_229] : memref<40x64xf32, #tpu.memory_space<vmem>>, vector<8x64xf32>
    tpu.vector_store %arg7[%560, %c0_229], %559 {strides = array<i32>} : memref<40x64xf32, #tpu.memory_space<vmem>>, vector<8x64xf32>,
    %c2_i32_230 = arith.constant 2 : i32
    %c8_i32_231 = arith.constant 8 : i32
    %562 = arith.muli %c2_i32_230, %c8_i32_231 : i32
    %563 = tpu.assume_multiple %562, 8 : i32
    %c4_i32_232 = arith.constant 4 : i32
    %564 = arith.muli %563, %c4_i32_232 : i32
    %c0_i32_233 = arith.constant 0 : i32
    %565 = arith.addi %564, %c0_i32_233 : i32
    %566 = arith.index_cast %565 : i32 to index
    %567 = memref.load %arg1[%566] : memref<128xi32, #tpu.memory_space<smem>>
    %568 = arith.index_cast %567 : i32 to index
    %c0_234 = arith.constant 0 : index
    %569 = vector.load %arg7[%568, %c0_234] : memref<40x64xf32, #tpu.memory_space<vmem>>, vector<1x64xf32>
    %c0_235 = arith.constant 0 : index
    %c0_236 = arith.constant 0 : index
    %570 = vector.load %arg8[%c0_235, %c0_236] : memref<32x64xf32, #tpu.memory_space<vmem>>, vector<1x64xf32>
    tpu.vector_store %arg8[%c0_235, %c0_236], %569 {strides = array<i32>} : memref<32x64xf32, #tpu.memory_space<vmem>>, vector<1x64xf32>,
    %c1_i32_237 = arith.constant 1 : i32
    %571 = arith.addi %564, %c1_i32_237 : i32
    %572 = arith.index_cast %571 : i32 to index
    %573 = memref.load %arg1[%572] : memref<128xi32, #tpu.memory_space<smem>>
    %574 = arith.index_cast %573 : i32 to index
    %c0_238 = arith.constant 0 : index
    %575 = vector.load %arg7[%574, %c0_238] : memref<40x64xf32, #tpu.memory_space<vmem>>, vector<1x64xf32>
    %c1_239 = arith.constant 1 : index
    %c0_240 = arith.constant 0 : index
    %576 = vector.load %arg8[%c1_239, %c0_240] : memref<32x64xf32, #tpu.memory_space<vmem>>, vector<1x64xf32>
    tpu.vector_store %arg8[%c1_239, %c0_240], %575 {strides = array<i32>} : memref<32x64xf32, #tpu.memory_space<vmem>>, vector<1x64xf32>,
    %c2_i32_241 = arith.constant 2 : i32
    %577 = arith.addi %564, %c2_i32_241 : i32
    %578 = arith.index_cast %577 : i32 to index
    %579 = memref.load %arg1[%578] : memref<128xi32, #tpu.memory_space<smem>>
    %580 = arith.index_cast %579 : i32 to index
    %c0_242 = arith.constant 0 : index
    %581 = vector.load %arg7[%580, %c0_242] : memref<40x64xf32, #tpu.memory_space<vmem>>, vector<1x64xf32>
    %c2_243 = arith.constant 2 : index
    %c0_244 = arith.constant 0 : index
    %582 = vector.load %arg8[%c2_243, %c0_244] : memref<32x64xf32, #tpu.memory_space<vmem>>, vector<1x64xf32>
    tpu.vector_store %arg8[%c2_243, %c0_244], %581 {strides = array<i32>} : memref<32x64xf32, #tpu.memory_space<vmem>>, vector<1x64xf32>,
    %c3_i32_245 = arith.constant 3 : i32
    %583 = arith.addi %564, %c3_i32_245 : i32
    %584 = arith.index_cast %583 : i32 to index
    %585 = memref.load %arg1[%584] : memref<128xi32, #tpu.memory_space<smem>>
    %586 = arith.index_cast %585 : i32 to index
    %c0_246 = arith.constant 0 : index
    %587 = vector.load %arg7[%586, %c0_246] : memref<40x64xf32, #tpu.memory_space<vmem>>, vector<1x64xf32>
    %c3_247 = arith.constant 3 : index
    %c0_248 = arith.constant 0 : index
    %588 = vector.load %arg8[%c3_247, %c0_248] : memref<32x64xf32, #tpu.memory_space<vmem>>, vector<1x64xf32>
    tpu.vector_store %arg8[%c3_247, %c0_248], %587 {strides = array<i32>} : memref<32x64xf32, #tpu.memory_space<vmem>>, vector<1x64xf32>,
    %c4_i32_249 = arith.constant 4 : i32
    %589 = arith.addi %564, %c4_i32_249 : i32
    %590 = arith.index_cast %589 : i32 to index
    %591 = memref.load %arg1[%590] : memref<128xi32, #tpu.memory_space<smem>>
    %592 = arith.index_cast %591 : i32 to index
    %c0_250 = arith.constant 0 : index
    %593 = vector.load %arg7[%592, %c0_250] : memref<40x64xf32, #tpu.memory_space<vmem>>, vector<1x64xf32>
    %c4_251 = arith.constant 4 : index
    %c0_252 = arith.constant 0 : index
    %594 = vector.load %arg8[%c4_251, %c0_252] : memref<32x64xf32, #tpu.memory_space<vmem>>, vector<1x64xf32>
    tpu.vector_store %arg8[%c4_251, %c0_252], %593 {strides = array<i32>} : memref<32x64xf32, #tpu.memory_space<vmem>>, vector<1x64xf32>,
    %c5_i32_253 = arith.constant 5 : i32
    %595 = arith.addi %564, %c5_i32_253 : i32
    %596 = arith.index_cast %595 : i32 to index
    %597 = memref.load %arg1[%596] : memref<128xi32, #tpu.memory_space<smem>>
    %598 = arith.index_cast %597 : i32 to index
    %c0_254 = arith.constant 0 : index
    %599 = vector.load %arg7[%598, %c0_254] : memref<40x64xf32, #tpu.memory_space<vmem>>, vector<1x64xf32>
    %c5_255 = arith.constant 5 : index
    %c0_256 = arith.constant 0 : index
    %600 = vector.load %arg8[%c5_255, %c0_256] : memref<32x64xf32, #tpu.memory_space<vmem>>, vector<1x64xf32>
    tpu.vector_store %arg8[%c5_255, %c0_256], %599 {strides = array<i32>} : memref<32x64xf32, #tpu.memory_space<vmem>>, vector<1x64xf32>,
    %c6_i32_257 = arith.constant 6 : i32
    %601 = arith.addi %564, %c6_i32_257 : i32
    %602 = arith.index_cast %601 : i32 to index
    %603 = memref.load %arg1[%602] : memref<128xi32, #tpu.memory_space<smem>>
    %604 = arith.index_cast %603 : i32 to index
    %c0_258 = arith.constant 0 : index
    %605 = vector.load %arg7[%604, %c0_258] : memref<40x64xf32, #tpu.memory_space<vmem>>, vector<1x64xf32>
    %c6_259 = arith.constant 6 : index
    %c0_260 = arith.constant 0 : index
    %606 = vector.load %arg8[%c6_259, %c0_260] : memref<32x64xf32, #tpu.memory_space<vmem>>, vector<1x64xf32>
    tpu.vector_store %arg8[%c6_259, %c0_260], %605 {strides = array<i32>} : memref<32x64xf32, #tpu.memory_space<vmem>>, vector<1x64xf32>,
    %c7_i32_261 = arith.constant 7 : i32
    %607 = arith.addi %564, %c7_i32_261 : i32
    %608 = arith.index_cast %607 : i32 to index
    %609 = memref.load %arg1[%608] : memref<128xi32, #tpu.memory_space<smem>>
    %610 = arith.index_cast %609 : i32 to index
    %c0_262 = arith.constant 0 : index
    %611 = vector.load %arg7[%610, %c0_262] : memref<40x64xf32, #tpu.memory_space<vmem>>, vector<1x64xf32>
    %c7_263 = arith.constant 7 : index
    %c0_264 = arith.constant 0 : index
    %612 = vector.load %arg8[%c7_263, %c0_264] : memref<32x64xf32, #tpu.memory_space<vmem>>, vector<1x64xf32>
    tpu.vector_store %arg8[%c7_263, %c0_264], %611 {strides = array<i32>} : memref<32x64xf32, #tpu.memory_space<vmem>>, vector<1x64xf32>,
    %c8_i32_265 = arith.constant 8 : i32
    %613 = arith.addi %564, %c8_i32_265 : i32
    %614 = arith.index_cast %613 : i32 to index
    %615 = memref.load %arg1[%614] : memref<128xi32, #tpu.memory_space<smem>>
    %616 = arith.index_cast %615 : i32 to index
    %c0_266 = arith.constant 0 : index
    %617 = vector.load %arg7[%616, %c0_266] : memref<40x64xf32, #tpu.memory_space<vmem>>, vector<1x64xf32>
    %c8_267 = arith.constant 8 : index
    %c0_268 = arith.constant 0 : index
    %618 = vector.load %arg8[%c8_267, %c0_268] : memref<32x64xf32, #tpu.memory_space<vmem>>, vector<1x64xf32>
    tpu.vector_store %arg8[%c8_267, %c0_268], %617 {strides = array<i32>} : memref<32x64xf32, #tpu.memory_space<vmem>>, vector<1x64xf32>,
    %c9_i32_269 = arith.constant 9 : i32
    %619 = arith.addi %564, %c9_i32_269 : i32
    %620 = arith.index_cast %619 : i32 to index
    %621 = memref.load %arg1[%620] : memref<128xi32, #tpu.memory_space<smem>>
    %622 = arith.index_cast %621 : i32 to index
    %c0_270 = arith.constant 0 : index
    %623 = vector.load %arg7[%622, %c0_270] : memref<40x64xf32, #tpu.memory_space<vmem>>, vector<1x64xf32>
    %c9_271 = arith.constant 9 : index
    %c0_272 = arith.constant 0 : index
    %624 = vector.load %arg8[%c9_271, %c0_272] : memref<32x64xf32, #tpu.memory_space<vmem>>, vector<1x64xf32>
    tpu.vector_store %arg8[%c9_271, %c0_272], %623 {strides = array<i32>} : memref<32x64xf32, #tpu.memory_space<vmem>>, vector<1x64xf32>,
    %c10_i32_273 = arith.constant 10 : i32
    %625 = arith.addi %564, %c10_i32_273 : i32
    %626 = arith.index_cast %625 : i32 to index
    %627 = memref.load %arg1[%626] : memref<128xi32, #tpu.memory_space<smem>>
    %628 = arith.index_cast %627 : i32 to index
    %c0_274 = arith.constant 0 : index
    %629 = vector.load %arg7[%628, %c0_274] : memref<40x64xf32, #tpu.memory_space<vmem>>, vector<1x64xf32>
    %c10_275 = arith.constant 10 : index
    %c0_276 = arith.constant 0 : index
    %630 = vector.load %arg8[%c10_275, %c0_276] : memref<32x64xf32, #tpu.memory_space<vmem>>, vector<1x64xf32>
    tpu.vector_store %arg8[%c10_275, %c0_276], %629 {strides = array<i32>} : memref<32x64xf32, #tpu.memory_space<vmem>>, vector<1x64xf32>,
    %c11_i32_277 = arith.constant 11 : i32
    %631 = arith.addi %564, %c11_i32_277 : i32
    %632 = arith.index_cast %631 : i32 to index
    %633 = memref.load %arg1[%632] : memref<128xi32, #tpu.memory_space<smem>>
    %634 = arith.index_cast %633 : i32 to index
    %c0_278 = arith.constant 0 : index
    %635 = vector.load %arg7[%634, %c0_278] : memref<40x64xf32, #tpu.memory_space<vmem>>, vector<1x64xf32>
    %c11_279 = arith.constant 11 : index
    %c0_280 = arith.constant 0 : index
    %636 = vector.load %arg8[%c11_279, %c0_280] : memref<32x64xf32, #tpu.memory_space<vmem>>, vector<1x64xf32>
    tpu.vector_store %arg8[%c11_279, %c0_280], %635 {strides = array<i32>} : memref<32x64xf32, #tpu.memory_space<vmem>>, vector<1x64xf32>,
    %c12_i32_281 = arith.constant 12 : i32
    %637 = arith.addi %564, %c12_i32_281 : i32
    %638 = arith.index_cast %637 : i32 to index
    %639 = memref.load %arg1[%638] : memref<128xi32, #tpu.memory_space<smem>>
    %640 = arith.index_cast %639 : i32 to index
    %c0_282 = arith.constant 0 : index
    %641 = vector.load %arg7[%640, %c0_282] : memref<40x64xf32, #tpu.memory_space<vmem>>, vector<1x64xf32>
    %c12_283 = arith.constant 12 : index
    %c0_284 = arith.constant 0 : index
    %642 = vector.load %arg8[%c12_283, %c0_284] : memref<32x64xf32, #tpu.memory_space<vmem>>, vector<1x64xf32>
    tpu.vector_store %arg8[%c12_283, %c0_284], %641 {strides = array<i32>} : memref<32x64xf32, #tpu.memory_space<vmem>>, vector<1x64xf32>,
    %c13_i32_285 = arith.constant 13 : i32
    %643 = arith.addi %564, %c13_i32_285 : i32
    %644 = arith.index_cast %643 : i32 to index
    %645 = memref.load %arg1[%644] : memref<128xi32, #tpu.memory_space<smem>>
    %646 = arith.index_cast %645 : i32 to index
    %c0_286 = arith.constant 0 : index
    %647 = vector.load %arg7[%646, %c0_286] : memref<40x64xf32, #tpu.memory_space<vmem>>, vector<1x64xf32>
    %c13_287 = arith.constant 13 : index
    %c0_288 = arith.constant 0 : index
    %648 = vector.load %arg8[%c13_287, %c0_288] : memref<32x64xf32, #tpu.memory_space<vmem>>, vector<1x64xf32>
    tpu.vector_store %arg8[%c13_287, %c0_288], %647 {strides = array<i32>} : memref<32x64xf32, #tpu.memory_space<vmem>>, vector<1x64xf32>,
    %c14_i32_289 = arith.constant 14 : i32
    %649 = arith.addi %564, %c14_i32_289 : i32
    %650 = arith.index_cast %649 : i32 to index
    %651 = memref.load %arg1[%650] : memref<128xi32, #tpu.memory_space<smem>>
    %652 = arith.index_cast %651 : i32 to index
    %c0_290 = arith.constant 0 : index
    %653 = vector.load %arg7[%652, %c0_290] : memref<40x64xf32, #tpu.memory_space<vmem>>, vector<1x64xf32>
    %c14_291 = arith.constant 14 : index
    %c0_292 = arith.constant 0 : index
    %654 = vector.load %arg8[%c14_291, %c0_292] : memref<32x64xf32, #tpu.memory_space<vmem>>, vector<1x64xf32>
    tpu.vector_store %arg8[%c14_291, %c0_292], %653 {strides = array<i32>} : memref<32x64xf32, #tpu.memory_space<vmem>>, vector<1x64xf32>,
    %c15_i32_293 = arith.constant 15 : i32
    %655 = arith.addi %564, %c15_i32_293 : i32
    %656 = arith.index_cast %655 : i32 to index
    %657 = memref.load %arg1[%656] : memref<128xi32, #tpu.memory_space<smem>>
    %658 = arith.index_cast %657 : i32 to index
    %c0_294 = arith.constant 0 : index
    %659 = vector.load %arg7[%658, %c0_294] : memref<40x64xf32, #tpu.memory_space<vmem>>, vector<1x64xf32>
    %c15_295 = arith.constant 15 : index
    %c0_296 = arith.constant 0 : index
    %660 = vector.load %arg8[%c15_295, %c0_296] : memref<32x64xf32, #tpu.memory_space<vmem>>, vector<1x64xf32>
    tpu.vector_store %arg8[%c15_295, %c0_296], %659 {strides = array<i32>} : memref<32x64xf32, #tpu.memory_space<vmem>>, vector<1x64xf32>,
    %c16_i32_297 = arith.constant 16 : i32
    %661 = arith.addi %564, %c16_i32_297 : i32
    %662 = arith.index_cast %661 : i32 to index
    %663 = memref.load %arg1[%662] : memref<128xi32, #tpu.memory_space<smem>>
    %664 = arith.index_cast %663 : i32 to index
    %c0_298 = arith.constant 0 : index
    %665 = vector.load %arg7[%664, %c0_298] : memref<40x64xf32, #tpu.memory_space<vmem>>, vector<1x64xf32>
    %c16_299 = arith.constant 16 : index
    %c0_300 = arith.constant 0 : index
    %666 = vector.load %arg8[%c16_299, %c0_300] : memref<32x64xf32, #tpu.memory_space<vmem>>, vector<1x64xf32>
    tpu.vector_store %arg8[%c16_299, %c0_300], %665 {strides = array<i32>} : memref<32x64xf32, #tpu.memory_space<vmem>>, vector<1x64xf32>,
    %c17_i32_301 = arith.constant 17 : i32
    %667 = arith.addi %564, %c17_i32_301 : i32
    %668 = arith.index_cast %667 : i32 to index
    %669 = memref.load %arg1[%668] : memref<128xi32, #tpu.memory_space<smem>>
    %670 = arith.index_cast %669 : i32 to index
    %c0_302 = arith.constant 0 : index
    %671 = vector.load %arg7[%670, %c0_302] : memref<40x64xf32, #tpu.memory_space<vmem>>, vector<1x64xf32>
    %c17_303 = arith.constant 17 : index
    %c0_304 = arith.constant 0 : index
    %672 = vector.load %arg8[%c17_303, %c0_304] : memref<32x64xf32, #tpu.memory_space<vmem>>, vector<1x64xf32>
    tpu.vector_store %arg8[%c17_303, %c0_304], %671 {strides = array<i32>} : memref<32x64xf32, #tpu.memory_space<vmem>>, vector<1x64xf32>,
    %c18_i32_305 = arith.constant 18 : i32
    %673 = arith.addi %564, %c18_i32_305 : i32
    %674 = arith.index_cast %673 : i32 to index
    %675 = memref.load %arg1[%674] : memref<128xi32, #tpu.memory_space<smem>>
    %676 = arith.index_cast %675 : i32 to index
    %c0_306 = arith.constant 0 : index
    %677 = vector.load %arg7[%676, %c0_306] : memref<40x64xf32, #tpu.memory_space<vmem>>, vector<1x64xf32>
    %c18_307 = arith.constant 18 : index
    %c0_308 = arith.constant 0 : index
    %678 = vector.load %arg8[%c18_307, %c0_308] : memref<32x64xf32, #tpu.memory_space<vmem>>, vector<1x64xf32>
    tpu.vector_store %arg8[%c18_307, %c0_308], %677 {strides = array<i32>} : memref<32x64xf32, #tpu.memory_space<vmem>>, vector<1x64xf32>,
    %c19_i32_309 = arith.constant 19 : i32
    %679 = arith.addi %564, %c19_i32_309 : i32
    %680 = arith.index_cast %679 : i32 to index
    %681 = memref.load %arg1[%680] : memref<128xi32, #tpu.memory_space<smem>>
    %682 = arith.index_cast %681 : i32 to index
    %c0_310 = arith.constant 0 : index
    %683 = vector.load %arg7[%682, %c0_310] : memref<40x64xf32, #tpu.memory_space<vmem>>, vector<1x64xf32>
    %c19_311 = arith.constant 19 : index
    %c0_312 = arith.constant 0 : index
    %684 = vector.load %arg8[%c19_311, %c0_312] : memref<32x64xf32, #tpu.memory_space<vmem>>, vector<1x64xf32>
    tpu.vector_store %arg8[%c19_311, %c0_312], %683 {strides = array<i32>} : memref<32x64xf32, #tpu.memory_space<vmem>>, vector<1x64xf32>,
    %c20_i32_313 = arith.constant 20 : i32
    %685 = arith.addi %564, %c20_i32_313 : i32
    %686 = arith.index_cast %685 : i32 to index
    %687 = memref.load %arg1[%686] : memref<128xi32, #tpu.memory_space<smem>>
    %688 = arith.index_cast %687 : i32 to index
    %c0_314 = arith.constant 0 : index
    %689 = vector.load %arg7[%688, %c0_314] : memref<40x64xf32, #tpu.memory_space<vmem>>, vector<1x64xf32>
    %c20_315 = arith.constant 20 : index
    %c0_316 = arith.constant 0 : index
    %690 = vector.load %arg8[%c20_315, %c0_316] : memref<32x64xf32, #tpu.memory_space<vmem>>, vector<1x64xf32>
    tpu.vector_store %arg8[%c20_315, %c0_316], %689 {strides = array<i32>} : memref<32x64xf32, #tpu.memory_space<vmem>>, vector<1x64xf32>,
    %c21_i32_317 = arith.constant 21 : i32
    %691 = arith.addi %564, %c21_i32_317 : i32
    %692 = arith.index_cast %691 : i32 to index
    %693 = memref.load %arg1[%692] : memref<128xi32, #tpu.memory_space<smem>>
    %694 = arith.index_cast %693 : i32 to index
    %c0_318 = arith.constant 0 : index
    %695 = vector.load %arg7[%694, %c0_318] : memref<40x64xf32, #tpu.memory_space<vmem>>, vector<1x64xf32>
    %c21_319 = arith.constant 21 : index
    %c0_320 = arith.constant 0 : index
    %696 = vector.load %arg8[%c21_319, %c0_320] : memref<32x64xf32, #tpu.memory_space<vmem>>, vector<1x64xf32>
    tpu.vector_store %arg8[%c21_319, %c0_320], %695 {strides = array<i32>} : memref<32x64xf32, #tpu.memory_space<vmem>>, vector<1x64xf32>,
    %c22_i32_321 = arith.constant 22 : i32
    %697 = arith.addi %564, %c22_i32_321 : i32
    %698 = arith.index_cast %697 : i32 to index
    %699 = memref.load %arg1[%698] : memref<128xi32, #tpu.memory_space<smem>>
    %700 = arith.index_cast %699 : i32 to index
    %c0_322 = arith.constant 0 : index
    %701 = vector.load %arg7[%700, %c0_322] : memref<40x64xf32, #tpu.memory_space<vmem>>, vector<1x64xf32>
    %c22_323 = arith.constant 22 : index
    %c0_324 = arith.constant 0 : index
    %702 = vector.load %arg8[%c22_323, %c0_324] : memref<32x64xf32, #tpu.memory_space<vmem>>, vector<1x64xf32>
    tpu.vector_store %arg8[%c22_323, %c0_324], %701 {strides = array<i32>} : memref<32x64xf32, #tpu.memory_space<vmem>>, vector<1x64xf32>,
    %c23_i32_325 = arith.constant 23 : i32
    %703 = arith.addi %564, %c23_i32_325 : i32
    %704 = arith.index_cast %703 : i32 to index
    %705 = memref.load %arg1[%704] : memref<128xi32, #tpu.memory_space<smem>>
    %706 = arith.index_cast %705 : i32 to index
    %c0_326 = arith.constant 0 : index
    %707 = vector.load %arg7[%706, %c0_326] : memref<40x64xf32, #tpu.memory_space<vmem>>, vector<1x64xf32>
    %c23_327 = arith.constant 23 : index
    %c0_328 = arith.constant 0 : index
    %708 = vector.load %arg8[%c23_327, %c0_328] : memref<32x64xf32, #tpu.memory_space<vmem>>, vector<1x64xf32>
    tpu.vector_store %arg8[%c23_327, %c0_328], %707 {strides = array<i32>} : memref<32x64xf32, #tpu.memory_space<vmem>>, vector<1x64xf32>,
    %c24_i32_329 = arith.constant 24 : i32
    %709 = arith.addi %564, %c24_i32_329 : i32
    %710 = arith.index_cast %709 : i32 to index
    %711 = memref.load %arg1[%710] : memref<128xi32, #tpu.memory_space<smem>>
    %712 = arith.index_cast %711 : i32 to index
    %c0_330 = arith.constant 0 : index
    %713 = vector.load %arg7[%712, %c0_330] : memref<40x64xf32, #tpu.memory_space<vmem>>, vector<1x64xf32>
    %c24_331 = arith.constant 24 : index
    %c0_332 = arith.constant 0 : index
    %714 = vector.load %arg8[%c24_331, %c0_332] : memref<32x64xf32, #tpu.memory_space<vmem>>, vector<1x64xf32>
    tpu.vector_store %arg8[%c24_331, %c0_332], %713 {strides = array<i32>} : memref<32x64xf32, #tpu.memory_space<vmem>>, vector<1x64xf32>,
    %c25_i32_333 = arith.constant 25 : i32
    %715 = arith.addi %564, %c25_i32_333 : i32
    %716 = arith.index_cast %715 : i32 to index
    %717 = memref.load %arg1[%716] : memref<128xi32, #tpu.memory_space<smem>>
    %718 = arith.index_cast %717 : i32 to index
    %c0_334 = arith.constant 0 : index
    %719 = vector.load %arg7[%718, %c0_334] : memref<40x64xf32, #tpu.memory_space<vmem>>, vector<1x64xf32>
    %c25_335 = arith.constant 25 : index
    %c0_336 = arith.constant 0 : index
    %720 = vector.load %arg8[%c25_335, %c0_336] : memref<32x64xf32, #tpu.memory_space<vmem>>, vector<1x64xf32>
    tpu.vector_store %arg8[%c25_335, %c0_336], %719 {strides = array<i32>} : memref<32x64xf32, #tpu.memory_space<vmem>>, vector<1x64xf32>,
    %c26_i32_337 = arith.constant 26 : i32
    %721 = arith.addi %564, %c26_i32_337 : i32
    %722 = arith.index_cast %721 : i32 to index
    %723 = memref.load %arg1[%722] : memref<128xi32, #tpu.memory_space<smem>>
    %724 = arith.index_cast %723 : i32 to index
    %c0_338 = arith.constant 0 : index
    %725 = vector.load %arg7[%724, %c0_338] : memref<40x64xf32, #tpu.memory_space<vmem>>, vector<1x64xf32>
    %c26_339 = arith.constant 26 : index
    %c0_340 = arith.constant 0 : index
    %726 = vector.load %arg8[%c26_339, %c0_340] : memref<32x64xf32, #tpu.memory_space<vmem>>, vector<1x64xf32>
    tpu.vector_store %arg8[%c26_339, %c0_340], %725 {strides = array<i32>} : memref<32x64xf32, #tpu.memory_space<vmem>>, vector<1x64xf32>,
    %c27_i32_341 = arith.constant 27 : i32
    %727 = arith.addi %564, %c27_i32_341 : i32
    %728 = arith.index_cast %727 : i32 to index
    %729 = memref.load %arg1[%728] : memref<128xi32, #tpu.memory_space<smem>>
    %730 = arith.index_cast %729 : i32 to index
    %c0_342 = arith.constant 0 : index
    %731 = vector.load %arg7[%730, %c0_342] : memref<40x64xf32, #tpu.memory_space<vmem>>, vector<1x64xf32>
    %c27_343 = arith.constant 27 : index
    %c0_344 = arith.constant 0 : index
    %732 = vector.load %arg8[%c27_343, %c0_344] : memref<32x64xf32, #tpu.memory_space<vmem>>, vector<1x64xf32>
    tpu.vector_store %arg8[%c27_343, %c0_344], %731 {strides = array<i32>} : memref<32x64xf32, #tpu.memory_space<vmem>>, vector<1x64xf32>,
    %c28_i32_345 = arith.constant 28 : i32
    %733 = arith.addi %564, %c28_i32_345 : i32
    %734 = arith.index_cast %733 : i32 to index
    %735 = memref.load %arg1[%734] : memref<128xi32, #tpu.memory_space<smem>>
    %736 = arith.index_cast %735 : i32 to index
    %c0_346 = arith.constant 0 : index
    %737 = vector.load %arg7[%736, %c0_346] : memref<40x64xf32, #tpu.memory_space<vmem>>, vector<1x64xf32>
    %c28_347 = arith.constant 28 : index
    %c0_348 = arith.constant 0 : index
    %738 = vector.load %arg8[%c28_347, %c0_348] : memref<32x64xf32, #tpu.memory_space<vmem>>, vector<1x64xf32>
    tpu.vector_store %arg8[%c28_347, %c0_348], %737 {strides = array<i32>} : memref<32x64xf32, #tpu.memory_space<vmem>>, vector<1x64xf32>,
    %c29_i32_349 = arith.constant 29 : i32
    %739 = arith.addi %564, %c29_i32_349 : i32
    %740 = arith.index_cast %739 : i32 to index
    %741 = memref.load %arg1[%740] : memref<128xi32, #tpu.memory_space<smem>>
    %742 = arith.index_cast %741 : i32 to index
    %c0_350 = arith.constant 0 : index
    %743 = vector.load %arg7[%742, %c0_350] : memref<40x64xf32, #tpu.memory_space<vmem>>, vector<1x64xf32>
    %c29_351 = arith.constant 29 : index
    %c0_352 = arith.constant 0 : index
    %744 = vector.load %arg8[%c29_351, %c0_352] : memref<32x64xf32, #tpu.memory_space<vmem>>, vector<1x64xf32>
    tpu.vector_store %arg8[%c29_351, %c0_352], %743 {strides = array<i32>} : memref<32x64xf32, #tpu.memory_space<vmem>>, vector<1x64xf32>,
    %c30_i32_353 = arith.constant 30 : i32
    %745 = arith.addi %564, %c30_i32_353 : i32
    %746 = arith.index_cast %745 : i32 to index
    %747 = memref.load %arg1[%746] : memref<128xi32, #tpu.memory_space<smem>>
    %748 = arith.index_cast %747 : i32 to index
    %c0_354 = arith.constant 0 : index
    %749 = vector.load %arg7[%748, %c0_354] : memref<40x64xf32, #tpu.memory_space<vmem>>, vector<1x64xf32>
    %c30_355 = arith.constant 30 : index
    %c0_356 = arith.constant 0 : index
    %750 = vector.load %arg8[%c30_355, %c0_356] : memref<32x64xf32, #tpu.memory_space<vmem>>, vector<1x64xf32>
    tpu.vector_store %arg8[%c30_355, %c0_356], %749 {strides = array<i32>} : memref<32x64xf32, #tpu.memory_space<vmem>>, vector<1x64xf32>,
    %c31_i32_357 = arith.constant 31 : i32
    %751 = arith.addi %564, %c31_i32_357 : i32
    %752 = arith.index_cast %751 : i32 to index
    %753 = memref.load %arg1[%752] : memref<128xi32, #tpu.memory_space<smem>>
    %754 = arith.index_cast %753 : i32 to index
    %c0_358 = arith.constant 0 : index
    %755 = vector.load %arg7[%754, %c0_358] : memref<40x64xf32, #tpu.memory_space<vmem>>, vector<1x64xf32>
    %c31_359 = arith.constant 31 : index
    %c0_360 = arith.constant 0 : index
    %756 = vector.load %arg8[%c31_359, %c0_360] : memref<32x64xf32, #tpu.memory_space<vmem>>, vector<1x64xf32>
    tpu.vector_store %arg8[%c31_359, %c0_360], %755 {strides = array<i32>} : memref<32x64xf32, #tpu.memory_space<vmem>>, vector<1x64xf32>,
    %c0_361 = arith.constant 0 : index
    %c0_362 = arith.constant 0 : index
    %757 = vector.load %arg8[%c0_361, %c0_362] : memref<32x64xf32, #tpu.memory_space<vmem>>, vector<32x64xf32>
    %758 = vector.extract_strided_slice %757 {offsets = [0, 0], sizes = [32, 32], strides = [1, 1]} : vector<32x64xf32> to vector<32x32xf32>
    %759 = vector.extract_strided_slice %757 {offsets = [0, 32], sizes = [32, 32], strides = [1, 1]} : vector<32x64xf32> to vector<32x32xf32>
    %760 = arith.index_cast %563 : i32 to index
    %c0_363 = arith.constant 0 : index
    %761 = vector.load %arg2[%760, %c0_363] : memref<32x32xf32, #tpu.memory_space<vmem>>, vector<8x32xf32>
    %cst_364 = arith.constant dense<0.000000e+00> : vector<8x128xf32>
    %762 = tpu.matmul %761, %2, %cst_364 {dimension_numbers = #tpu.dot_dimension_numbers<[1], [0], [0], [1], [0, 0, 1, 1], [], []>} : vector<8x32xf32>, vector<32x128xf32>, vector<8x128xf32> -> vector<8x128xf32>
    %763 = vector.broadcast %4 : vector<1x128xf32> to vector<8x128xf32>
    %764 = arith.addf %762, %763 : vector<8x128xf32>
    %cst_365 = arith.constant dense<0.000000e+00> : vector<32x128xf32>
    %765 = tpu.matmul %759, %3, %cst_365 {dimension_numbers = #tpu.dot_dimension_numbers<[1], [0], [0], [1], [0, 0, 1, 1], [], []>} : vector<32x32xf32>, vector<32x128xf32>, vector<32x128xf32> -> vector<32x128xf32>
    %766 = vector.extract_strided_slice %765 {offsets = [0, 0], sizes = [8, 128], strides = [1, 1]} : vector<32x128xf32> to vector<8x128xf32>
    %767 = vector.extract_strided_slice %765 {offsets = [8, 0], sizes = [8, 128], strides = [1, 1]} : vector<32x128xf32> to vector<8x128xf32>
    %768 = arith.addf %766, %767 : vector<8x128xf32>
    %769 = vector.extract_strided_slice %765 {offsets = [16, 0], sizes = [8, 128], strides = [1, 1]} : vector<32x128xf32> to vector<8x128xf32>
    %770 = arith.addf %768, %769 : vector<8x128xf32>
    %771 = vector.extract_strided_slice %765 {offsets = [24, 0], sizes = [8, 128], strides = [1, 1]} : vector<32x128xf32> to vector<8x128xf32>
    %772 = arith.addf %770, %771 : vector<8x128xf32>
    %773 = vector.extract_strided_slice %764 {offsets = [0, 0], sizes = [8, 96], strides = [1, 1]} : vector<8x128xf32> to vector<8x96xf32>
    %774 = vector.extract_strided_slice %772 {offsets = [0, 0], sizes = [8, 96], strides = [1, 1]} : vector<8x128xf32> to vector<8x96xf32>
    %775 = arith.addf %773, %774 : vector<8x96xf32>
    %776 = vector.extract_strided_slice %5 {offsets = [0, 0], sizes = [1, 96], strides = [1, 1]} : vector<1x128xf32> to vector<1x96xf32>
    %777 = vector.broadcast %776 : vector<1x96xf32> to vector<8x96xf32>
    %778 = arith.addf %775, %777 : vector<8x96xf32>
    %779 = vector.extract_strided_slice %778 {offsets = [0, 0], sizes = [8, 64], strides = [1, 1]} : vector<8x96xf32> to vector<8x64xf32>
    %780 = arith.negf %779 : vector<8x64xf32>
    %781 = math.exp %780 : vector<8x64xf32>
    %cst_366 = arith.constant 1.000000e+00 : f32
    %782 = vector.broadcast %cst_366 : f32 to vector<8x64xf32>
    %783 = arith.addf %782, %781 : vector<8x64xf32>
    %784 = arith.divf %782, %783 : vector<8x64xf32>
    %785 = vector.extract_strided_slice %784 {offsets = [0, 0], sizes = [8, 32], strides = [1, 1]} : vector<8x64xf32> to vector<8x32xf32>
    %786 = vector.extract_strided_slice %784 {offsets = [0, 32], sizes = [8, 32], strides = [1, 1]} : vector<8x64xf32> to vector<8x32xf32>
    %787 = vector.extract_strided_slice %778 {offsets = [0, 64], sizes = [8, 32], strides = [1, 1]} : vector<8x96xf32> to vector<8x32xf32>
    %788 = math.tanh %787 : vector<8x32xf32>
    %789 = vector.extract_strided_slice %764 {offsets = [0, 96], sizes = [8, 32], strides = [1, 1]} : vector<8x128xf32> to vector<8x32xf32>
    %790 = vector.extract_strided_slice %5 {offsets = [0, 96], sizes = [1, 32], strides = [1, 1]} : vector<1x128xf32> to vector<1x32xf32>
    %791 = vector.broadcast %790 : vector<1x32xf32> to vector<8x32xf32>
    %792 = arith.addf %789, %791 : vector<8x32xf32>
    %793 = vector.extract_strided_slice %765 {offsets = [0, 96], sizes = [32, 32], strides = [1, 1]} : vector<32x128xf32> to vector<32x32xf32>
    %794 = vector.extract_strided_slice %793 {offsets = [0, 0], sizes = [8, 32], strides = [1, 1]} : vector<32x32xf32> to vector<8x32xf32>
    %795 = arith.addf %794, %792 : vector<8x32xf32>
    %796 = arith.negf %795 : vector<8x32xf32>
    %797 = math.exp %796 : vector<8x32xf32>
    %cst_367 = arith.constant 1.000000e+00 : f32
    %798 = vector.broadcast %cst_367 : f32 to vector<8x32xf32>
    %799 = arith.addf %798, %797 : vector<8x32xf32>
    %800 = arith.divf %798, %799 : vector<8x32xf32>
    %801 = vector.extract_strided_slice %758 {offsets = [0, 0], sizes = [8, 32], strides = [1, 1]} : vector<32x32xf32> to vector<8x32xf32>
    %802 = arith.mulf %800, %801 : vector<8x32xf32>
    %803 = vector.extract_strided_slice %793 {offsets = [8, 0], sizes = [8, 32], strides = [1, 1]} : vector<32x32xf32> to vector<8x32xf32>
    %804 = arith.addf %803, %792 : vector<8x32xf32>
    %805 = arith.negf %804 : vector<8x32xf32>
    %806 = math.exp %805 : vector<8x32xf32>
    %cst_368 = arith.constant 1.000000e+00 : f32
    %807 = vector.broadcast %cst_368 : f32 to vector<8x32xf32>
    %808 = arith.addf %807, %806 : vector<8x32xf32>
    %809 = arith.divf %807, %808 : vector<8x32xf32>
    %810 = vector.extract_strided_slice %758 {offsets = [8, 0], sizes = [8, 32], strides = [1, 1]} : vector<32x32xf32> to vector<8x32xf32>
    %811 = arith.mulf %809, %810 : vector<8x32xf32>
    %812 = arith.addf %802, %811 : vector<8x32xf32>
    %813 = vector.extract_strided_slice %793 {offsets = [16, 0], sizes = [8, 32], strides = [1, 1]} : vector<32x32xf32> to vector<8x32xf32>
    %814 = arith.addf %813, %792 : vector<8x32xf32>
    %815 = arith.negf %814 : vector<8x32xf32>
    %816 = math.exp %815 : vector<8x32xf32>
    %cst_369 = arith.constant 1.000000e+00 : f32
    %817 = vector.broadcast %cst_369 : f32 to vector<8x32xf32>
    %818 = arith.addf %817, %816 : vector<8x32xf32>
    %819 = arith.divf %817, %818 : vector<8x32xf32>
    %820 = vector.extract_strided_slice %758 {offsets = [16, 0], sizes = [8, 32], strides = [1, 1]} : vector<32x32xf32> to vector<8x32xf32>
    %821 = arith.mulf %819, %820 : vector<8x32xf32>
    %822 = arith.addf %812, %821 : vector<8x32xf32>
    %823 = vector.extract_strided_slice %793 {offsets = [24, 0], sizes = [8, 32], strides = [1, 1]} : vector<32x32xf32> to vector<8x32xf32>
    %824 = arith.addf %823, %792 : vector<8x32xf32>
    %825 = arith.negf %824 : vector<8x32xf32>
    %826 = math.exp %825 : vector<8x32xf32>
    %cst_370 = arith.constant 1.000000e+00 : f32
    %827 = vector.broadcast %cst_370 : f32 to vector<8x32xf32>
    %828 = arith.addf %827, %826 : vector<8x32xf32>
    %829 = arith.divf %827, %828 : vector<8x32xf32>
    %830 = vector.extract_strided_slice %758 {offsets = [24, 0], sizes = [8, 32], strides = [1, 1]} : vector<32x32xf32> to vector<8x32xf32>
    %831 = arith.mulf %829, %830 : vector<8x32xf32>
    %832 = arith.addf %822, %831 : vector<8x32xf32>
    %833 = arith.mulf %785, %788 : vector<8x32xf32>
    %834 = arith.addf %833, %832 : vector<8x32xf32>
    %835 = math.tanh %834 : vector<8x32xf32>
    %836 = arith.mulf %786, %835 : vector<8x32xf32>
    %837 = tpu.concatenate %834, %836 in 1 : vector<8x32xf32>, vector<8x32xf32> -> vector<8x64xf32>
    %838 = arith.index_cast %563 : i32 to index
    %c0_371 = arith.constant 0 : index
    %839 = vector.load %arg7[%838, %c0_371] : memref<40x64xf32, #tpu.memory_space<vmem>>, vector<8x64xf32>
    tpu.vector_store %arg7[%838, %c0_371], %837 {strides = array<i32>} : memref<40x64xf32, #tpu.memory_space<vmem>>, vector<8x64xf32>,
    %c3_i32_372 = arith.constant 3 : i32
    %c8_i32_373 = arith.constant 8 : i32
    %840 = arith.muli %c3_i32_372, %c8_i32_373 : i32
    %841 = tpu.assume_multiple %840, 8 : i32
    %c4_i32_374 = arith.constant 4 : i32
    %842 = arith.muli %841, %c4_i32_374 : i32
    %c0_i32_375 = arith.constant 0 : i32
    %843 = arith.addi %842, %c0_i32_375 : i32
    %844 = arith.index_cast %843 : i32 to index
    %845 = memref.load %arg1[%844] : memref<128xi32, #tpu.memory_space<smem>>
    %846 = arith.index_cast %845 : i32 to index
    %c0_376 = arith.constant 0 : index
    %847 = vector.load %arg7[%846, %c0_376] : memref<40x64xf32, #tpu.memory_space<vmem>>, vector<1x64xf32>
    %c0_377 = arith.constant 0 : index
    %c0_378 = arith.constant 0 : index
    %848 = vector.load %arg8[%c0_377, %c0_378] : memref<32x64xf32, #tpu.memory_space<vmem>>, vector<1x64xf32>
    tpu.vector_store %arg8[%c0_377, %c0_378], %847 {strides = array<i32>} : memref<32x64xf32, #tpu.memory_space<vmem>>, vector<1x64xf32>,
    %c1_i32_379 = arith.constant 1 : i32
    %849 = arith.addi %842, %c1_i32_379 : i32
    %850 = arith.index_cast %849 : i32 to index
    %851 = memref.load %arg1[%850] : memref<128xi32, #tpu.memory_space<smem>>
    %852 = arith.index_cast %851 : i32 to index
    %c0_380 = arith.constant 0 : index
    %853 = vector.load %arg7[%852, %c0_380] : memref<40x64xf32, #tpu.memory_space<vmem>>, vector<1x64xf32>
    %c1_381 = arith.constant 1 : index
    %c0_382 = arith.constant 0 : index
    %854 = vector.load %arg8[%c1_381, %c0_382] : memref<32x64xf32, #tpu.memory_space<vmem>>, vector<1x64xf32>
    tpu.vector_store %arg8[%c1_381, %c0_382], %853 {strides = array<i32>} : memref<32x64xf32, #tpu.memory_space<vmem>>, vector<1x64xf32>,
    %c2_i32_383 = arith.constant 2 : i32
    %855 = arith.addi %842, %c2_i32_383 : i32
    %856 = arith.index_cast %855 : i32 to index
    %857 = memref.load %arg1[%856] : memref<128xi32, #tpu.memory_space<smem>>
    %858 = arith.index_cast %857 : i32 to index
    %c0_384 = arith.constant 0 : index
    %859 = vector.load %arg7[%858, %c0_384] : memref<40x64xf32, #tpu.memory_space<vmem>>, vector<1x64xf32>
    %c2_385 = arith.constant 2 : index
    %c0_386 = arith.constant 0 : index
    %860 = vector.load %arg8[%c2_385, %c0_386] : memref<32x64xf32, #tpu.memory_space<vmem>>, vector<1x64xf32>
    tpu.vector_store %arg8[%c2_385, %c0_386], %859 {strides = array<i32>} : memref<32x64xf32, #tpu.memory_space<vmem>>, vector<1x64xf32>,
    %c3_i32_387 = arith.constant 3 : i32
    %861 = arith.addi %842, %c3_i32_387 : i32
    %862 = arith.index_cast %861 : i32 to index
    %863 = memref.load %arg1[%862] : memref<128xi32, #tpu.memory_space<smem>>
    %864 = arith.index_cast %863 : i32 to index
    %c0_388 = arith.constant 0 : index
    %865 = vector.load %arg7[%864, %c0_388] : memref<40x64xf32, #tpu.memory_space<vmem>>, vector<1x64xf32>
    %c3_389 = arith.constant 3 : index
    %c0_390 = arith.constant 0 : index
    %866 = vector.load %arg8[%c3_389, %c0_390] : memref<32x64xf32, #tpu.memory_space<vmem>>, vector<1x64xf32>
    tpu.vector_store %arg8[%c3_389, %c0_390], %865 {strides = array<i32>} : memref<32x64xf32, #tpu.memory_space<vmem>>, vector<1x64xf32>,
    %c4_i32_391 = arith.constant 4 : i32
    %867 = arith.addi %842, %c4_i32_391 : i32
    %868 = arith.index_cast %867 : i32 to index
    %869 = memref.load %arg1[%868] : memref<128xi32, #tpu.memory_space<smem>>
    %870 = arith.index_cast %869 : i32 to index
    %c0_392 = arith.constant 0 : index
    %871 = vector.load %arg7[%870, %c0_392] : memref<40x64xf32, #tpu.memory_space<vmem>>, vector<1x64xf32>
    %c4_393 = arith.constant 4 : index
    %c0_394 = arith.constant 0 : index
    %872 = vector.load %arg8[%c4_393, %c0_394] : memref<32x64xf32, #tpu.memory_space<vmem>>, vector<1x64xf32>
    tpu.vector_store %arg8[%c4_393, %c0_394], %871 {strides = array<i32>} : memref<32x64xf32, #tpu.memory_space<vmem>>, vector<1x64xf32>,
    %c5_i32_395 = arith.constant 5 : i32
    %873 = arith.addi %842, %c5_i32_395 : i32
    %874 = arith.index_cast %873 : i32 to index
    %875 = memref.load %arg1[%874] : memref<128xi32, #tpu.memory_space<smem>>
    %876 = arith.index_cast %875 : i32 to index
    %c0_396 = arith.constant 0 : index
    %877 = vector.load %arg7[%876, %c0_396] : memref<40x64xf32, #tpu.memory_space<vmem>>, vector<1x64xf32>
    %c5_397 = arith.constant 5 : index
    %c0_398 = arith.constant 0 : index
    %878 = vector.load %arg8[%c5_397, %c0_398] : memref<32x64xf32, #tpu.memory_space<vmem>>, vector<1x64xf32>
    tpu.vector_store %arg8[%c5_397, %c0_398], %877 {strides = array<i32>} : memref<32x64xf32, #tpu.memory_space<vmem>>, vector<1x64xf32>,
    %c6_i32_399 = arith.constant 6 : i32
    %879 = arith.addi %842, %c6_i32_399 : i32
    %880 = arith.index_cast %879 : i32 to index
    %881 = memref.load %arg1[%880] : memref<128xi32, #tpu.memory_space<smem>>
    %882 = arith.index_cast %881 : i32 to index
    %c0_400 = arith.constant 0 : index
    %883 = vector.load %arg7[%882, %c0_400] : memref<40x64xf32, #tpu.memory_space<vmem>>, vector<1x64xf32>
    %c6_401 = arith.constant 6 : index
    %c0_402 = arith.constant 0 : index
    %884 = vector.load %arg8[%c6_401, %c0_402] : memref<32x64xf32, #tpu.memory_space<vmem>>, vector<1x64xf32>
    tpu.vector_store %arg8[%c6_401, %c0_402], %883 {strides = array<i32>} : memref<32x64xf32, #tpu.memory_space<vmem>>, vector<1x64xf32>,
    %c7_i32_403 = arith.constant 7 : i32
    %885 = arith.addi %842, %c7_i32_403 : i32
    %886 = arith.index_cast %885 : i32 to index
    %887 = memref.load %arg1[%886] : memref<128xi32, #tpu.memory_space<smem>>
    %888 = arith.index_cast %887 : i32 to index
    %c0_404 = arith.constant 0 : index
    %889 = vector.load %arg7[%888, %c0_404] : memref<40x64xf32, #tpu.memory_space<vmem>>, vector<1x64xf32>
    %c7_405 = arith.constant 7 : index
    %c0_406 = arith.constant 0 : index
    %890 = vector.load %arg8[%c7_405, %c0_406] : memref<32x64xf32, #tpu.memory_space<vmem>>, vector<1x64xf32>
    tpu.vector_store %arg8[%c7_405, %c0_406], %889 {strides = array<i32>} : memref<32x64xf32, #tpu.memory_space<vmem>>, vector<1x64xf32>,
    %c8_i32_407 = arith.constant 8 : i32
    %891 = arith.addi %842, %c8_i32_407 : i32
    %892 = arith.index_cast %891 : i32 to index
    %893 = memref.load %arg1[%892] : memref<128xi32, #tpu.memory_space<smem>>
    %894 = arith.index_cast %893 : i32 to index
    %c0_408 = arith.constant 0 : index
    %895 = vector.load %arg7[%894, %c0_408] : memref<40x64xf32, #tpu.memory_space<vmem>>, vector<1x64xf32>
    %c8_409 = arith.constant 8 : index
    %c0_410 = arith.constant 0 : index
    %896 = vector.load %arg8[%c8_409, %c0_410] : memref<32x64xf32, #tpu.memory_space<vmem>>, vector<1x64xf32>
    tpu.vector_store %arg8[%c8_409, %c0_410], %895 {strides = array<i32>} : memref<32x64xf32, #tpu.memory_space<vmem>>, vector<1x64xf32>,
    %c9_i32_411 = arith.constant 9 : i32
    %897 = arith.addi %842, %c9_i32_411 : i32
    %898 = arith.index_cast %897 : i32 to index
    %899 = memref.load %arg1[%898] : memref<128xi32, #tpu.memory_space<smem>>
    %900 = arith.index_cast %899 : i32 to index
    %c0_412 = arith.constant 0 : index
    %901 = vector.load %arg7[%900, %c0_412] : memref<40x64xf32, #tpu.memory_space<vmem>>, vector<1x64xf32>
    %c9_413 = arith.constant 9 : index
    %c0_414 = arith.constant 0 : index
    %902 = vector.load %arg8[%c9_413, %c0_414] : memref<32x64xf32, #tpu.memory_space<vmem>>, vector<1x64xf32>
    tpu.vector_store %arg8[%c9_413, %c0_414], %901 {strides = array<i32>} : memref<32x64xf32, #tpu.memory_space<vmem>>, vector<1x64xf32>,
    %c10_i32_415 = arith.constant 10 : i32
    %903 = arith.addi %842, %c10_i32_415 : i32
    %904 = arith.index_cast %903 : i32 to index
    %905 = memref.load %arg1[%904] : memref<128xi32, #tpu.memory_space<smem>>
    %906 = arith.index_cast %905 : i32 to index
    %c0_416 = arith.constant 0 : index
    %907 = vector.load %arg7[%906, %c0_416] : memref<40x64xf32, #tpu.memory_space<vmem>>, vector<1x64xf32>
    %c10_417 = arith.constant 10 : index
    %c0_418 = arith.constant 0 : index
    %908 = vector.load %arg8[%c10_417, %c0_418] : memref<32x64xf32, #tpu.memory_space<vmem>>, vector<1x64xf32>
    tpu.vector_store %arg8[%c10_417, %c0_418], %907 {strides = array<i32>} : memref<32x64xf32, #tpu.memory_space<vmem>>, vector<1x64xf32>,
    %c11_i32_419 = arith.constant 11 : i32
    %909 = arith.addi %842, %c11_i32_419 : i32
    %910 = arith.index_cast %909 : i32 to index
    %911 = memref.load %arg1[%910] : memref<128xi32, #tpu.memory_space<smem>>
    %912 = arith.index_cast %911 : i32 to index
    %c0_420 = arith.constant 0 : index
    %913 = vector.load %arg7[%912, %c0_420] : memref<40x64xf32, #tpu.memory_space<vmem>>, vector<1x64xf32>
    %c11_421 = arith.constant 11 : index
    %c0_422 = arith.constant 0 : index
    %914 = vector.load %arg8[%c11_421, %c0_422] : memref<32x64xf32, #tpu.memory_space<vmem>>, vector<1x64xf32>
    tpu.vector_store %arg8[%c11_421, %c0_422], %913 {strides = array<i32>} : memref<32x64xf32, #tpu.memory_space<vmem>>, vector<1x64xf32>,
    %c12_i32_423 = arith.constant 12 : i32
    %915 = arith.addi %842, %c12_i32_423 : i32
    %916 = arith.index_cast %915 : i32 to index
    %917 = memref.load %arg1[%916] : memref<128xi32, #tpu.memory_space<smem>>
    %918 = arith.index_cast %917 : i32 to index
    %c0_424 = arith.constant 0 : index
    %919 = vector.load %arg7[%918, %c0_424] : memref<40x64xf32, #tpu.memory_space<vmem>>, vector<1x64xf32>
    %c12_425 = arith.constant 12 : index
    %c0_426 = arith.constant 0 : index
    %920 = vector.load %arg8[%c12_425, %c0_426] : memref<32x64xf32, #tpu.memory_space<vmem>>, vector<1x64xf32>
    tpu.vector_store %arg8[%c12_425, %c0_426], %919 {strides = array<i32>} : memref<32x64xf32, #tpu.memory_space<vmem>>, vector<1x64xf32>,
    %c13_i32_427 = arith.constant 13 : i32
    %921 = arith.addi %842, %c13_i32_427 : i32
    %922 = arith.index_cast %921 : i32 to index
    %923 = memref.load %arg1[%922] : memref<128xi32, #tpu.memory_space<smem>>
    %924 = arith.index_cast %923 : i32 to index
    %c0_428 = arith.constant 0 : index
    %925 = vector.load %arg7[%924, %c0_428] : memref<40x64xf32, #tpu.memory_space<vmem>>, vector<1x64xf32>
    %c13_429 = arith.constant 13 : index
    %c0_430 = arith.constant 0 : index
    %926 = vector.load %arg8[%c13_429, %c0_430] : memref<32x64xf32, #tpu.memory_space<vmem>>, vector<1x64xf32>
    tpu.vector_store %arg8[%c13_429, %c0_430], %925 {strides = array<i32>} : memref<32x64xf32, #tpu.memory_space<vmem>>, vector<1x64xf32>,
    %c14_i32_431 = arith.constant 14 : i32
    %927 = arith.addi %842, %c14_i32_431 : i32
    %928 = arith.index_cast %927 : i32 to index
    %929 = memref.load %arg1[%928] : memref<128xi32, #tpu.memory_space<smem>>
    %930 = arith.index_cast %929 : i32 to index
    %c0_432 = arith.constant 0 : index
    %931 = vector.load %arg7[%930, %c0_432] : memref<40x64xf32, #tpu.memory_space<vmem>>, vector<1x64xf32>
    %c14_433 = arith.constant 14 : index
    %c0_434 = arith.constant 0 : index
    %932 = vector.load %arg8[%c14_433, %c0_434] : memref<32x64xf32, #tpu.memory_space<vmem>>, vector<1x64xf32>
    tpu.vector_store %arg8[%c14_433, %c0_434], %931 {strides = array<i32>} : memref<32x64xf32, #tpu.memory_space<vmem>>, vector<1x64xf32>,
    %c15_i32_435 = arith.constant 15 : i32
    %933 = arith.addi %842, %c15_i32_435 : i32
    %934 = arith.index_cast %933 : i32 to index
    %935 = memref.load %arg1[%934] : memref<128xi32, #tpu.memory_space<smem>>
    %936 = arith.index_cast %935 : i32 to index
    %c0_436 = arith.constant 0 : index
    %937 = vector.load %arg7[%936, %c0_436] : memref<40x64xf32, #tpu.memory_space<vmem>>, vector<1x64xf32>
    %c15_437 = arith.constant 15 : index
    %c0_438 = arith.constant 0 : index
    %938 = vector.load %arg8[%c15_437, %c0_438] : memref<32x64xf32, #tpu.memory_space<vmem>>, vector<1x64xf32>
    tpu.vector_store %arg8[%c15_437, %c0_438], %937 {strides = array<i32>} : memref<32x64xf32, #tpu.memory_space<vmem>>, vector<1x64xf32>,
    %c16_i32_439 = arith.constant 16 : i32
    %939 = arith.addi %842, %c16_i32_439 : i32
    %940 = arith.index_cast %939 : i32 to index
    %941 = memref.load %arg1[%940] : memref<128xi32, #tpu.memory_space<smem>>
    %942 = arith.index_cast %941 : i32 to index
    %c0_440 = arith.constant 0 : index
    %943 = vector.load %arg7[%942, %c0_440] : memref<40x64xf32, #tpu.memory_space<vmem>>, vector<1x64xf32>
    %c16_441 = arith.constant 16 : index
    %c0_442 = arith.constant 0 : index
    %944 = vector.load %arg8[%c16_441, %c0_442] : memref<32x64xf32, #tpu.memory_space<vmem>>, vector<1x64xf32>
    tpu.vector_store %arg8[%c16_441, %c0_442], %943 {strides = array<i32>} : memref<32x64xf32, #tpu.memory_space<vmem>>, vector<1x64xf32>,
    %c17_i32_443 = arith.constant 17 : i32
    %945 = arith.addi %842, %c17_i32_443 : i32
    %946 = arith.index_cast %945 : i32 to index
    %947 = memref.load %arg1[%946] : memref<128xi32, #tpu.memory_space<smem>>
    %948 = arith.index_cast %947 : i32 to index
    %c0_444 = arith.constant 0 : index
    %949 = vector.load %arg7[%948, %c0_444] : memref<40x64xf32, #tpu.memory_space<vmem>>, vector<1x64xf32>
    %c17_445 = arith.constant 17 : index
    %c0_446 = arith.constant 0 : index
    %950 = vector.load %arg8[%c17_445, %c0_446] : memref<32x64xf32, #tpu.memory_space<vmem>>, vector<1x64xf32>
    tpu.vector_store %arg8[%c17_445, %c0_446], %949 {strides = array<i32>} : memref<32x64xf32, #tpu.memory_space<vmem>>, vector<1x64xf32>,
    %c18_i32_447 = arith.constant 18 : i32
    %951 = arith.addi %842, %c18_i32_447 : i32
    %952 = arith.index_cast %951 : i32 to index
    %953 = memref.load %arg1[%952] : memref<128xi32, #tpu.memory_space<smem>>
    %954 = arith.index_cast %953 : i32 to index
    %c0_448 = arith.constant 0 : index
    %955 = vector.load %arg7[%954, %c0_448] : memref<40x64xf32, #tpu.memory_space<vmem>>, vector<1x64xf32>
    %c18_449 = arith.constant 18 : index
    %c0_450 = arith.constant 0 : index
    %956 = vector.load %arg8[%c18_449, %c0_450] : memref<32x64xf32, #tpu.memory_space<vmem>>, vector<1x64xf32>
    tpu.vector_store %arg8[%c18_449, %c0_450], %955 {strides = array<i32>} : memref<32x64xf32, #tpu.memory_space<vmem>>, vector<1x64xf32>,
    %c19_i32_451 = arith.constant 19 : i32
    %957 = arith.addi %842, %c19_i32_451 : i32
    %958 = arith.index_cast %957 : i32 to index
    %959 = memref.load %arg1[%958] : memref<128xi32, #tpu.memory_space<smem>>
    %960 = arith.index_cast %959 : i32 to index
    %c0_452 = arith.constant 0 : index
    %961 = vector.load %arg7[%960, %c0_452] : memref<40x64xf32, #tpu.memory_space<vmem>>, vector<1x64xf32>
    %c19_453 = arith.constant 19 : index
    %c0_454 = arith.constant 0 : index
    %962 = vector.load %arg8[%c19_453, %c0_454] : memref<32x64xf32, #tpu.memory_space<vmem>>, vector<1x64xf32>
    tpu.vector_store %arg8[%c19_453, %c0_454], %961 {strides = array<i32>} : memref<32x64xf32, #tpu.memory_space<vmem>>, vector<1x64xf32>,
    %c20_i32_455 = arith.constant 20 : i32
    %963 = arith.addi %842, %c20_i32_455 : i32
    %964 = arith.index_cast %963 : i32 to index
    %965 = memref.load %arg1[%964] : memref<128xi32, #tpu.memory_space<smem>>
    %966 = arith.index_cast %965 : i32 to index
    %c0_456 = arith.constant 0 : index
    %967 = vector.load %arg7[%966, %c0_456] : memref<40x64xf32, #tpu.memory_space<vmem>>, vector<1x64xf32>
    %c20_457 = arith.constant 20 : index
    %c0_458 = arith.constant 0 : index
    %968 = vector.load %arg8[%c20_457, %c0_458] : memref<32x64xf32, #tpu.memory_space<vmem>>, vector<1x64xf32>
    tpu.vector_store %arg8[%c20_457, %c0_458], %967 {strides = array<i32>} : memref<32x64xf32, #tpu.memory_space<vmem>>, vector<1x64xf32>,
    %c21_i32_459 = arith.constant 21 : i32
    %969 = arith.addi %842, %c21_i32_459 : i32
    %970 = arith.index_cast %969 : i32 to index
    %971 = memref.load %arg1[%970] : memref<128xi32, #tpu.memory_space<smem>>
    %972 = arith.index_cast %971 : i32 to index
    %c0_460 = arith.constant 0 : index
    %973 = vector.load %arg7[%972, %c0_460] : memref<40x64xf32, #tpu.memory_space<vmem>>, vector<1x64xf32>
    %c21_461 = arith.constant 21 : index
    %c0_462 = arith.constant 0 : index
    %974 = vector.load %arg8[%c21_461, %c0_462] : memref<32x64xf32, #tpu.memory_space<vmem>>, vector<1x64xf32>
    tpu.vector_store %arg8[%c21_461, %c0_462], %973 {strides = array<i32>} : memref<32x64xf32, #tpu.memory_space<vmem>>, vector<1x64xf32>,
    %c22_i32_463 = arith.constant 22 : i32
    %975 = arith.addi %842, %c22_i32_463 : i32
    %976 = arith.index_cast %975 : i32 to index
    %977 = memref.load %arg1[%976] : memref<128xi32, #tpu.memory_space<smem>>
    %978 = arith.index_cast %977 : i32 to index
    %c0_464 = arith.constant 0 : index
    %979 = vector.load %arg7[%978, %c0_464] : memref<40x64xf32, #tpu.memory_space<vmem>>, vector<1x64xf32>
    %c22_465 = arith.constant 22 : index
    %c0_466 = arith.constant 0 : index
    %980 = vector.load %arg8[%c22_465, %c0_466] : memref<32x64xf32, #tpu.memory_space<vmem>>, vector<1x64xf32>
    tpu.vector_store %arg8[%c22_465, %c0_466], %979 {strides = array<i32>} : memref<32x64xf32, #tpu.memory_space<vmem>>, vector<1x64xf32>,
    %c23_i32_467 = arith.constant 23 : i32
    %981 = arith.addi %842, %c23_i32_467 : i32
    %982 = arith.index_cast %981 : i32 to index
    %983 = memref.load %arg1[%982] : memref<128xi32, #tpu.memory_space<smem>>
    %984 = arith.index_cast %983 : i32 to index
    %c0_468 = arith.constant 0 : index
    %985 = vector.load %arg7[%984, %c0_468] : memref<40x64xf32, #tpu.memory_space<vmem>>, vector<1x64xf32>
    %c23_469 = arith.constant 23 : index
    %c0_470 = arith.constant 0 : index
    %986 = vector.load %arg8[%c23_469, %c0_470] : memref<32x64xf32, #tpu.memory_space<vmem>>, vector<1x64xf32>
    tpu.vector_store %arg8[%c23_469, %c0_470], %985 {strides = array<i32>} : memref<32x64xf32, #tpu.memory_space<vmem>>, vector<1x64xf32>,
    %c24_i32_471 = arith.constant 24 : i32
    %987 = arith.addi %842, %c24_i32_471 : i32
    %988 = arith.index_cast %987 : i32 to index
    %989 = memref.load %arg1[%988] : memref<128xi32, #tpu.memory_space<smem>>
    %990 = arith.index_cast %989 : i32 to index
    %c0_472 = arith.constant 0 : index
    %991 = vector.load %arg7[%990, %c0_472] : memref<40x64xf32, #tpu.memory_space<vmem>>, vector<1x64xf32>
    %c24_473 = arith.constant 24 : index
    %c0_474 = arith.constant 0 : index
    %992 = vector.load %arg8[%c24_473, %c0_474] : memref<32x64xf32, #tpu.memory_space<vmem>>, vector<1x64xf32>
    tpu.vector_store %arg8[%c24_473, %c0_474], %991 {strides = array<i32>} : memref<32x64xf32, #tpu.memory_space<vmem>>, vector<1x64xf32>,
    %c25_i32_475 = arith.constant 25 : i32
    %993 = arith.addi %842, %c25_i32_475 : i32
    %994 = arith.index_cast %993 : i32 to index
    %995 = memref.load %arg1[%994] : memref<128xi32, #tpu.memory_space<smem>>
    %996 = arith.index_cast %995 : i32 to index
    %c0_476 = arith.constant 0 : index
    %997 = vector.load %arg7[%996, %c0_476] : memref<40x64xf32, #tpu.memory_space<vmem>>, vector<1x64xf32>
    %c25_477 = arith.constant 25 : index
    %c0_478 = arith.constant 0 : index
    %998 = vector.load %arg8[%c25_477, %c0_478] : memref<32x64xf32, #tpu.memory_space<vmem>>, vector<1x64xf32>
    tpu.vector_store %arg8[%c25_477, %c0_478], %997 {strides = array<i32>} : memref<32x64xf32, #tpu.memory_space<vmem>>, vector<1x64xf32>,
    %c26_i32_479 = arith.constant 26 : i32
    %999 = arith.addi %842, %c26_i32_479 : i32
    %1000 = arith.index_cast %999 : i32 to index
    %1001 = memref.load %arg1[%1000] : memref<128xi32, #tpu.memory_space<smem>>
    %1002 = arith.index_cast %1001 : i32 to index
    %c0_480 = arith.constant 0 : index
    %1003 = vector.load %arg7[%1002, %c0_480] : memref<40x64xf32, #tpu.memory_space<vmem>>, vector<1x64xf32>
    %c26_481 = arith.constant 26 : index
    %c0_482 = arith.constant 0 : index
    %1004 = vector.load %arg8[%c26_481, %c0_482] : memref<32x64xf32, #tpu.memory_space<vmem>>, vector<1x64xf32>
    tpu.vector_store %arg8[%c26_481, %c0_482], %1003 {strides = array<i32>} : memref<32x64xf32, #tpu.memory_space<vmem>>, vector<1x64xf32>,
    %c27_i32_483 = arith.constant 27 : i32
    %1005 = arith.addi %842, %c27_i32_483 : i32
    %1006 = arith.index_cast %1005 : i32 to index
    %1007 = memref.load %arg1[%1006] : memref<128xi32, #tpu.memory_space<smem>>
    %1008 = arith.index_cast %1007 : i32 to index
    %c0_484 = arith.constant 0 : index
    %1009 = vector.load %arg7[%1008, %c0_484] : memref<40x64xf32, #tpu.memory_space<vmem>>, vector<1x64xf32>
    %c27_485 = arith.constant 27 : index
    %c0_486 = arith.constant 0 : index
    %1010 = vector.load %arg8[%c27_485, %c0_486] : memref<32x64xf32, #tpu.memory_space<vmem>>, vector<1x64xf32>
    tpu.vector_store %arg8[%c27_485, %c0_486], %1009 {strides = array<i32>} : memref<32x64xf32, #tpu.memory_space<vmem>>, vector<1x64xf32>,
    %c28_i32_487 = arith.constant 28 : i32
    %1011 = arith.addi %842, %c28_i32_487 : i32
    %1012 = arith.index_cast %1011 : i32 to index
    %1013 = memref.load %arg1[%1012] : memref<128xi32, #tpu.memory_space<smem>>
    %1014 = arith.index_cast %1013 : i32 to index
    %c0_488 = arith.constant 0 : index
    %1015 = vector.load %arg7[%1014, %c0_488] : memref<40x64xf32, #tpu.memory_space<vmem>>, vector<1x64xf32>
    %c28_489 = arith.constant 28 : index
    %c0_490 = arith.constant 0 : index
    %1016 = vector.load %arg8[%c28_489, %c0_490] : memref<32x64xf32, #tpu.memory_space<vmem>>, vector<1x64xf32>
    tpu.vector_store %arg8[%c28_489, %c0_490], %1015 {strides = array<i32>} : memref<32x64xf32, #tpu.memory_space<vmem>>, vector<1x64xf32>,
    %c29_i32_491 = arith.constant 29 : i32
    %1017 = arith.addi %842, %c29_i32_491 : i32
    %1018 = arith.index_cast %1017 : i32 to index
    %1019 = memref.load %arg1[%1018] : memref<128xi32, #tpu.memory_space<smem>>
    %1020 = arith.index_cast %1019 : i32 to index
    %c0_492 = arith.constant 0 : index
    %1021 = vector.load %arg7[%1020, %c0_492] : memref<40x64xf32, #tpu.memory_space<vmem>>, vector<1x64xf32>
    %c29_493 = arith.constant 29 : index
    %c0_494 = arith.constant 0 : index
    %1022 = vector.load %arg8[%c29_493, %c0_494] : memref<32x64xf32, #tpu.memory_space<vmem>>, vector<1x64xf32>
    tpu.vector_store %arg8[%c29_493, %c0_494], %1021 {strides = array<i32>} : memref<32x64xf32, #tpu.memory_space<vmem>>, vector<1x64xf32>,
    %c30_i32_495 = arith.constant 30 : i32
    %1023 = arith.addi %842, %c30_i32_495 : i32
    %1024 = arith.index_cast %1023 : i32 to index
    %1025 = memref.load %arg1[%1024] : memref<128xi32, #tpu.memory_space<smem>>
    %1026 = arith.index_cast %1025 : i32 to index
    %c0_496 = arith.constant 0 : index
    %1027 = vector.load %arg7[%1026, %c0_496] : memref<40x64xf32, #tpu.memory_space<vmem>>, vector<1x64xf32>
    %c30_497 = arith.constant 30 : index
    %c0_498 = arith.constant 0 : index
    %1028 = vector.load %arg8[%c30_497, %c0_498] : memref<32x64xf32, #tpu.memory_space<vmem>>, vector<1x64xf32>
    tpu.vector_store %arg8[%c30_497, %c0_498], %1027 {strides = array<i32>} : memref<32x64xf32, #tpu.memory_space<vmem>>, vector<1x64xf32>,
    %c31_i32_499 = arith.constant 31 : i32
    %1029 = arith.addi %842, %c31_i32_499 : i32
    %1030 = arith.index_cast %1029 : i32 to index
    %1031 = memref.load %arg1[%1030] : memref<128xi32, #tpu.memory_space<smem>>
    %1032 = arith.index_cast %1031 : i32 to index
    %c0_500 = arith.constant 0 : index
    %1033 = vector.load %arg7[%1032, %c0_500] : memref<40x64xf32, #tpu.memory_space<vmem>>, vector<1x64xf32>
    %c31_501 = arith.constant 31 : index
    %c0_502 = arith.constant 0 : index
    %1034 = vector.load %arg8[%c31_501, %c0_502] : memref<32x64xf32, #tpu.memory_space<vmem>>, vector<1x64xf32>
    tpu.vector_store %arg8[%c31_501, %c0_502], %1033 {strides = array<i32>} : memref<32x64xf32, #tpu.memory_space<vmem>>, vector<1x64xf32>,
    %c0_503 = arith.constant 0 : index
    %c0_504 = arith.constant 0 : index
    %1035 = vector.load %arg8[%c0_503, %c0_504] : memref<32x64xf32, #tpu.memory_space<vmem>>, vector<32x64xf32>
    %1036 = vector.extract_strided_slice %1035 {offsets = [0, 0], sizes = [32, 32], strides = [1, 1]} : vector<32x64xf32> to vector<32x32xf32>
    %1037 = vector.extract_strided_slice %1035 {offsets = [0, 32], sizes = [32, 32], strides = [1, 1]} : vector<32x64xf32> to vector<32x32xf32>
    %1038 = arith.index_cast %841 : i32 to index
    %c0_505 = arith.constant 0 : index
    %1039 = vector.load %arg2[%1038, %c0_505] : memref<32x32xf32, #tpu.memory_space<vmem>>, vector<8x32xf32>
    %cst_506 = arith.constant dense<0.000000e+00> : vector<8x128xf32>
    %1040 = tpu.matmul %1039, %2, %cst_506 {dimension_numbers = #tpu.dot_dimension_numbers<[1], [0], [0], [1], [0, 0, 1, 1], [], []>} : vector<8x32xf32>, vector<32x128xf32>, vector<8x128xf32> -> vector<8x128xf32>
    %1041 = vector.broadcast %4 : vector<1x128xf32> to vector<8x128xf32>
    %1042 = arith.addf %1040, %1041 : vector<8x128xf32>
    %cst_507 = arith.constant dense<0.000000e+00> : vector<32x128xf32>
    %1043 = tpu.matmul %1037, %3, %cst_507 {dimension_numbers = #tpu.dot_dimension_numbers<[1], [0], [0], [1], [0, 0, 1, 1], [], []>} : vector<32x32xf32>, vector<32x128xf32>, vector<32x128xf32> -> vector<32x128xf32>
    %1044 = vector.extract_strided_slice %1043 {offsets = [0, 0], sizes = [8, 128], strides = [1, 1]} : vector<32x128xf32> to vector<8x128xf32>
    %1045 = vector.extract_strided_slice %1043 {offsets = [8, 0], sizes = [8, 128], strides = [1, 1]} : vector<32x128xf32> to vector<8x128xf32>
    %1046 = arith.addf %1044, %1045 : vector<8x128xf32>
    %1047 = vector.extract_strided_slice %1043 {offsets = [16, 0], sizes = [8, 128], strides = [1, 1]} : vector<32x128xf32> to vector<8x128xf32>
    %1048 = arith.addf %1046, %1047 : vector<8x128xf32>
    %1049 = vector.extract_strided_slice %1043 {offsets = [24, 0], sizes = [8, 128], strides = [1, 1]} : vector<32x128xf32> to vector<8x128xf32>
    %1050 = arith.addf %1048, %1049 : vector<8x128xf32>
    %1051 = vector.extract_strided_slice %1042 {offsets = [0, 0], sizes = [8, 96], strides = [1, 1]} : vector<8x128xf32> to vector<8x96xf32>
    %1052 = vector.extract_strided_slice %1050 {offsets = [0, 0], sizes = [8, 96], strides = [1, 1]} : vector<8x128xf32> to vector<8x96xf32>
    %1053 = arith.addf %1051, %1052 : vector<8x96xf32>
    %1054 = vector.extract_strided_slice %5 {offsets = [0, 0], sizes = [1, 96], strides = [1, 1]} : vector<1x128xf32> to vector<1x96xf32>
    %1055 = vector.broadcast %1054 : vector<1x96xf32> to vector<8x96xf32>
    %1056 = arith.addf %1053, %1055 : vector<8x96xf32>
    %1057 = vector.extract_strided_slice %1056 {offsets = [0, 0], sizes = [8, 64], strides = [1, 1]} : vector<8x96xf32> to vector<8x64xf32>
    %1058 = arith.negf %1057 : vector<8x64xf32>
    %1059 = math.exp %1058 : vector<8x64xf32>
    %cst_508 = arith.constant 1.000000e+00 : f32
    %1060 = vector.broadcast %cst_508 : f32 to vector<8x64xf32>
    %1061 = arith.addf %1060, %1059 : vector<8x64xf32>
    %1062 = arith.divf %1060, %1061 : vector<8x64xf32>
    %1063 = vector.extract_strided_slice %1062 {offsets = [0, 0], sizes = [8, 32], strides = [1, 1]} : vector<8x64xf32> to vector<8x32xf32>
    %1064 = vector.extract_strided_slice %1062 {offsets = [0, 32], sizes = [8, 32], strides = [1, 1]} : vector<8x64xf32> to vector<8x32xf32>
    %1065 = vector.extract_strided_slice %1056 {offsets = [0, 64], sizes = [8, 32], strides = [1, 1]} : vector<8x96xf32> to vector<8x32xf32>
    %1066 = math.tanh %1065 : vector<8x32xf32>
    %1067 = vector.extract_strided_slice %1042 {offsets = [0, 96], sizes = [8, 32], strides = [1, 1]} : vector<8x128xf32> to vector<8x32xf32>
    %1068 = vector.extract_strided_slice %5 {offsets = [0, 96], sizes = [1, 32], strides = [1, 1]} : vector<1x128xf32> to vector<1x32xf32>
    %1069 = vector.broadcast %1068 : vector<1x32xf32> to vector<8x32xf32>
    %1070 = arith.addf %1067, %1069 : vector<8x32xf32>
    %1071 = vector.extract_strided_slice %1043 {offsets = [0, 96], sizes = [32, 32], strides = [1, 1]} : vector<32x128xf32> to vector<32x32xf32>
    %1072 = vector.extract_strided_slice %1071 {offsets = [0, 0], sizes = [8, 32], strides = [1, 1]} : vector<32x32xf32> to vector<8x32xf32>
    %1073 = arith.addf %1072, %1070 : vector<8x32xf32>
    %1074 = arith.negf %1073 : vector<8x32xf32>
    %1075 = math.exp %1074 : vector<8x32xf32>
    %cst_509 = arith.constant 1.000000e+00 : f32
    %1076 = vector.broadcast %cst_509 : f32 to vector<8x32xf32>
    %1077 = arith.addf %1076, %1075 : vector<8x32xf32>
    %1078 = arith.divf %1076, %1077 : vector<8x32xf32>
    %1079 = vector.extract_strided_slice %1036 {offsets = [0, 0], sizes = [8, 32], strides = [1, 1]} : vector<32x32xf32> to vector<8x32xf32>
    %1080 = arith.mulf %1078, %1079 : vector<8x32xf32>
    %1081 = vector.extract_strided_slice %1071 {offsets = [8, 0], sizes = [8, 32], strides = [1, 1]} : vector<32x32xf32> to vector<8x32xf32>
    %1082 = arith.addf %1081, %1070 : vector<8x32xf32>
    %1083 = arith.negf %1082 : vector<8x32xf32>
    %1084 = math.exp %1083 : vector<8x32xf32>
    %cst_510 = arith.constant 1.000000e+00 : f32
    %1085 = vector.broadcast %cst_510 : f32 to vector<8x32xf32>
    %1086 = arith.addf %1085, %1084 : vector<8x32xf32>
    %1087 = arith.divf %1085, %1086 : vector<8x32xf32>
    %1088 = vector.extract_strided_slice %1036 {offsets = [8, 0], sizes = [8, 32], strides = [1, 1]} : vector<32x32xf32> to vector<8x32xf32>
    %1089 = arith.mulf %1087, %1088 : vector<8x32xf32>
    %1090 = arith.addf %1080, %1089 : vector<8x32xf32>
    %1091 = vector.extract_strided_slice %1071 {offsets = [16, 0], sizes = [8, 32], strides = [1, 1]} : vector<32x32xf32> to vector<8x32xf32>
    %1092 = arith.addf %1091, %1070 : vector<8x32xf32>
    %1093 = arith.negf %1092 : vector<8x32xf32>
    %1094 = math.exp %1093 : vector<8x32xf32>
    %cst_511 = arith.constant 1.000000e+00 : f32
    %1095 = vector.broadcast %cst_511 : f32 to vector<8x32xf32>
    %1096 = arith.addf %1095, %1094 : vector<8x32xf32>
    %1097 = arith.divf %1095, %1096 : vector<8x32xf32>
    %1098 = vector.extract_strided_slice %1036 {offsets = [16, 0], sizes = [8, 32], strides = [1, 1]} : vector<32x32xf32> to vector<8x32xf32>
    %1099 = arith.mulf %1097, %1098 : vector<8x32xf32>
    %1100 = arith.addf %1090, %1099 : vector<8x32xf32>
    %1101 = vector.extract_strided_slice %1071 {offsets = [24, 0], sizes = [8, 32], strides = [1, 1]} : vector<32x32xf32> to vector<8x32xf32>
    %1102 = arith.addf %1101, %1070 : vector<8x32xf32>
    %1103 = arith.negf %1102 : vector<8x32xf32>
    %1104 = math.exp %1103 : vector<8x32xf32>
    %cst_512 = arith.constant 1.000000e+00 : f32
    %1105 = vector.broadcast %cst_512 : f32 to vector<8x32xf32>
    %1106 = arith.addf %1105, %1104 : vector<8x32xf32>
    %1107 = arith.divf %1105, %1106 : vector<8x32xf32>
    %1108 = vector.extract_strided_slice %1036 {offsets = [24, 0], sizes = [8, 32], strides = [1, 1]} : vector<32x32xf32> to vector<8x32xf32>
    %1109 = arith.mulf %1107, %1108 : vector<8x32xf32>
    %1110 = arith.addf %1100, %1109 : vector<8x32xf32>
    %1111 = arith.mulf %1063, %1066 : vector<8x32xf32>
    %1112 = arith.addf %1111, %1110 : vector<8x32xf32>
    %1113 = math.tanh %1112 : vector<8x32xf32>
    %1114 = arith.mulf %1064, %1113 : vector<8x32xf32>
    %1115 = tpu.concatenate %1112, %1114 in 1 : vector<8x32xf32>, vector<8x32xf32> -> vector<8x64xf32>
    %1116 = arith.index_cast %841 : i32 to index
    %c0_513 = arith.constant 0 : index
    %1117 = vector.load %arg7[%1116, %c0_513] : memref<40x64xf32, #tpu.memory_space<vmem>>, vector<8x64xf32>
    tpu.vector_store %arg7[%1116, %c0_513], %1115 {strides = array<i32>} : memref<40x64xf32, #tpu.memory_space<vmem>>, vector<8x64xf32>,
    %c4_i32_514 = arith.constant 4 : i32
    return
  }
  func.func @transform_0(%arg0: i32, %arg1: memref<128xi32, #tpu.memory_space<smem>>) -> (i32, i32) {
    %c0_i32 = arith.constant 0 : i32
    %c0_i32_0 = arith.constant 0 : i32
    %c0_i32_1 = arith.constant 0 : i32
    return %c0_i32, %c0_i32_0 : i32, i32
  }
  func.func @transform_1(%arg0: i32, %arg1: memref<128xi32, #tpu.memory_space<smem>>) -> (i32, i32) {
    %c0_i32 = arith.constant 0 : i32
    %c0_i32_0 = arith.constant 0 : i32
    %c0_i32_1 = arith.constant 0 : i32
    return %c0_i32, %c0_i32_0 : i32, i32
  }
  func.func @transform_2(%arg0: i32, %arg1: memref<128xi32, #tpu.memory_space<smem>>) -> (i32, i32) {
    %c0_i32 = arith.constant 0 : i32
    %c0_i32_0 = arith.constant 0 : i32
    %c0_i32_1 = arith.constant 0 : i32
    return %c0_i32, %c0_i32_0 : i32, i32
  }
  func.func @transform_3(%arg0: i32, %arg1: memref<128xi32, #tpu.memory_space<smem>>) -> (i32, i32) {
    %c0_i32 = arith.constant 0 : i32
    %c0_i32_0 = arith.constant 0 : i32
    %c0_i32_1 = arith.constant 0 : i32
    return %c0_i32, %c0_i32_0 : i32, i32
  }
  func.func @transform_4(%arg0: i32, %arg1: memref<128xi32, #tpu.memory_space<smem>>) -> (i32, i32) {
    %c0_i32 = arith.constant 0 : i32
    %c0_i32_0 = arith.constant 0 : i32
    %c0_i32_1 = arith.constant 0 : i32
    return %c0_i32, %c0_i32_0 : i32, i32
  }
  func.func @transform_5(%arg0: i32, %arg1: memref<128xi32, #tpu.memory_space<smem>>) -> (i32, i32) {
    %c0_i32 = arith.constant 0 : i32
    %c0_i32_0 = arith.constant 0 : i32
    %c0_i32_1 = arith.constant 0 : i32
    return %c0_i32, %c0_i32_0 : i32, i32
  }
}

</mosaic_0001>

<bundles_post_ra>
// kernel: run.1
= control target key start
LH: loop header
LB: loop body
LE: loop exit
PB: predicated region body
PF: predicated region fallthrough
CT: control target
= control target key end

     0   :  { %s2012_s24 = smov [#allocation4]   ;;  %s2777_s0 = inlined_call_operand.vmem [shape: s32[128], index: 0, kind: input, shape index: {}]   ;;  %s2778_s1 = inlined_call_operand.vmem [shape: f32[32,32], index: 1, kind: input, shape index: {}]   ;;  %s2779_s2 = inlined_call_operand.vmem [shape: f32[32,128], index: 2, kind: input, shape index: {}]   ;;  %s2780_s3 = inlined_call_operand.vmem [shape: f32[32,128], index: 3, kind: input, shape index: {}]   ;;  %s2781_s4 = inlined_call_operand.vmem [shape: f32[1,128], index: 4, kind: input, shape index: {}]   ;;  %s2782_s5 = inlined_call_operand.vmem [shape: f32[1,128], index: 5, kind: input, shape index: {}]   ;;  %s2783_s6 = inlined_call_operand.hbm [shape: f32[40,64], index: 6, kind: output, shape index: {}]  }
   0x1   :  { %2790 = sst [smem:[#allocation9_spill]] %s2783_s6  ;;  %s12_s23 = sshll.u32 %s2777_s0, 4  ;;  %s13_s23 = int_to_ptr.vmem [resolvable:$true] %s12_s23 }
   0x2   :  { %15 = dma.vmem_to_smem %s13_s23, 16, %s2012_s24, [#allocation3] }
   0x3   :  { %2008 = dma.done.wait [#allocation3], 16 }
   0x4   :  { %2009 = vsyncadd [#allocation3], 4294967280 }
   0x5   :  { %18 = sfence }
   0x6   :  { %vm30_vm0 = vcmask 523264   ;;  %s47_s25 = sld [smem:[#allocation4]]  ;;  %v2013_v0 = vmov 0.0  }
   0x7   :  { %31 = vst.msk [vmem:[#allocation5] sm:$0xff] %vm30_vm0, %v2013_v0  ;;  %s1694_s26 = sld [smem:[#allocation4 + $0x1]] }
   0x8   :  { %32 = vst.msk [vmem:[#allocation5 + $0x8] sm:$0xff] %vm30_vm0, %v2013_v0  ;;  %s1695_s27 = sld [smem:[#allocation4 + $0x2]] }
   0x9   :  { %33 = vst.msk [vmem:[#allocation5 + $0x10] sm:$0xff] %vm30_vm0, %v2013_v0  ;;  %s1696_s28 = sld [smem:[#allocation4 + $0x3]] }
   0xa   :  { %19 = vsyncpa [#allocation6], 0  ;;  %34 = vst.msk [vmem:[#allocation5 + $0x18] sm:$0xff] %vm30_vm0, %v2013_v0  ;;  %s1697_s0 = sld [smem:[#allocation4 + $0x4]]  ;;  %vm50_vm1 = vcmask 516096   ;;  %v39_v22 = vld [vmem:[%s2779_s2 + $0x18] sm:$0xff] }
   0xb   :  { %35 = vst.msk [vmem:[#allocation5 + $0x20] sm:$0xff] %vm30_vm0, %v2013_v0  ;;  %s1698_s29 = sld [smem:[#allocation4 + $0x5]]  ;;  %v2101_v23 = vld [vmem:[%s2779_s2 + $0x10] sm:$0xff]  ;;  %231 = vmatpush.msra.mxu1 %v39_v22  ;;  %607 = vmatpush.msra.mxu2 %v39_v22  ;;  %v2110_v24 = vld [vmem:[%s2779_s2 + $0x8] sm:$0xff]  ;;  %v43_v26 = vld [vmem:[%s2780_s3 + $0x18] sm:$0xff]  ;;  %vm215_vm2 = vcmask 261120  }
   0xc   :  { %s1699_s30 = sld [smem:[#allocation4 + $0x6]]  ;;  %s48_s12 = scalar_lea.vmem [#allocation5], %s47_s25  ;;  %1355 = vmatpush.msra.mxu0 %v39_v22  ;;  %v36_v27 = vld [vmem:[%s2779_s2] sm:$0xff]  ;;  %647 = vmatpush.msra.mxu3 %v43_v26  ;;  %v42_v29 = vld [vmem:[%s2780_s3 + $0x10] sm:$0xff]  ;;  %v41_v32 = vld [vmem:[%s2780_s3 + $0x8] sm:$0xff] }
   0xd   :  { %s1700_s7 = sld [smem:[#allocation4 + $0x7]]  ;;  %s54_s13 = scalar_lea.vmem [#allocation5], %s1694_s26  ;;  %232 = vmatpush.msra.mxu1 %v2101_v23  ;;  %608 = vmatpush.msra.mxu2 %v2101_v23  ;;  %v211_v28 = vld [vmem:[%s2778_s1] sm:$0xff] }
   0xe   :  { %s1701_s8 = sld [smem:[#allocation4 + $0x8]]  ;;  %s59_s14 = scalar_lea.vmem [#allocation5], %s1695_s27  ;;  %648 = vmatpush.msra.mxu3 %v42_v29  ;;  %1356 = vmatpush.msra.mxu0 %v2101_v23  ;;  %v40_v35 = vld [vmem:[%s2780_s3] sm:$0xff] }
   0xf   :  { %s2063_s9 = sld [smem:[#allocation4 + $0x9]]  ;;  %s64_s15 = scalar_lea.vmem [#allocation5], %s1696_s28  ;;  %233 = vmatpush.msra.mxu1 %v2110_v24  ;;  %609 = vmatpush.msra.mxu2 %v2110_v24  ;;  %v2188_v52 = vld [vmem:[%s2781_s4] ss:$0 sm:$0xff] }
  0x10   :  { %s2065_s10 = sld [smem:[#allocation4 + $0xa]]  ;;  %s69_s16 = scalar_lea.vmem [#allocation5], %s1697_s0  ;;  %649 = vmatpush.msra.mxu3 %v41_v32  ;;  %1357 = vmatpush.msra.mxu0 %v2110_v24  ;;  %v2194_v54 = vld [vmem:[%s2782_s5] ss:$0 sm:$0xff] }
  0x11   :  { %s2067_s11 = sld [smem:[#allocation4 + $0xb]]  ;;  %s74_s17 = scalar_lea.vmem [#allocation5], %s1698_s29  ;;  %234 = vmatpush.msra.mxu1 %v36_v27  ;;  %610 = vmatpush.msra.mxu2 %v36_v27 }
  0x12   :  { %v49_v1 = vld [vmem:[%s48_s12] sm:$0x1]  ;;  %s79_s18 = scalar_lea.vmem [#allocation5], %s1699_s30  ;;  %s1705_s23 = sld [smem:[#allocation4 + $0xc]]  ;;  %1725 = vmatmul.msk.f32.vlgmr.msra.gmra.mxu1 %vm215_vm2, %v211_v28  ;;  %650 = vmatpush.msra.mxu3 %v40_v35 }
  0x13   :  { %v55_v2 = vld [vmem:[%s54_s13] sm:$0x1]  ;;  %51 = vst.msk [vmem:[#allocation2] sm:$0x1] %vm50_vm1, %v49_v1  ;;  %s84_s19 = scalar_lea.vmem [#allocation5], %s1700_s7  ;;  %s1706_s25 = sld [smem:[#allocation4 + $0xd]]  ;;  %271 = vmatpush.msrb.mxu1 %v43_v26  ;;  %1021 = vmatpush.msrb.mxu2 %v43_v26 }
  0x14   :  { %v60_v3 = vld [vmem:[%s59_s14] sm:$0x1]  ;;  %56 = vst.msk [vmem:[#allocation2 + $0x1] sm:$0x1] %vm50_vm1, %v55_v2  ;;  %s89_s20 = scalar_lea.vmem [#allocation5], %s1701_s8  ;;  %s1707_s26 = sld [smem:[#allocation4 + $0xe]]  ;;  %981 = vmatpush.msrb.mxu3 %v39_v22  ;;  %1358 = vmatpush.msra.mxu0 %v36_v27 }
  0x15   :  { %v65_v4 = vld [vmem:[%s64_s15] sm:$0x1]  ;;  %61 = vst.msk [vmem:[#allocation2 + $0x2] sm:$0x1] %vm50_vm1, %v60_v3  ;;  %s94_s21 = scalar_lea.vmem [#allocation5], %s2063_s9  ;;  %s1708_s27 = sld [smem:[#allocation4 + $0xf]]  ;;  %272 = vmatpush.msrb.mxu1 %v42_v29  ;;  %1022 = vmatpush.msrb.mxu2 %v42_v29 }
  0x16   :  { %v70_v5 = vld [vmem:[%s69_s16] sm:$0x1]  ;;  %66 = vst.msk [vmem:[#allocation2 + $0x3] sm:$0x1] %vm50_vm1, %v65_v4  ;;  %s99_s22 = scalar_lea.vmem [#allocation5], %s2065_s10  ;;  %s1709_s28 = sld [smem:[#allocation4 + $0x10]]  ;;  %982 = vmatpush.msrb.mxu3 %v2101_v23  ;;  %1395 = vmatpush.msrb.mxu0 %v43_v26 }
  0x17   :  { %v75_v6 = vld [vmem:[%s74_s17] sm:$0x1]  ;;  %71 = vst.msk [vmem:[#allocation2 + $0x4] sm:$0x1] %vm50_vm1, %v70_v5  ;;  %s104_s24 = scalar_lea.vmem [#allocation5], %s2067_s11  ;;  %s1710_s0 = sld [smem:[#allocation4 + $0x11]]  ;;  %273 = vmatpush.msrb.mxu1 %v41_v32  ;;  %1023 = vmatpush.msrb.mxu2 %v41_v32 }
  0x18   :  { %v80_v7 = vld [vmem:[%s79_s18] sm:$0x1]  ;;  %76 = vst.msk [vmem:[#allocation2 + $0x5] sm:$0x1] %vm50_vm1, %v75_v6  ;;  %s1711_s29 = sld [smem:[#allocation4 + $0x12]]  ;;  %s109_s30 = scalar_lea.vmem [#allocation5], %s1705_s23  ;;  %983 = vmatpush.msrb.mxu3 %v2110_v24  ;;  %1396 = vmatpush.msrb.mxu0 %v42_v29 }
  0x19   :  { %v85_v8 = vld [vmem:[%s84_s19] sm:$0x1]  ;;  %81 = vst.msk [vmem:[#allocation2 + $0x6] sm:$0x1] %vm50_vm1, %v80_v7  ;;  %s1712_s7 = sld [smem:[#allocation4 + $0x13]]  ;;  %s2788_s8 = smov 96   ;;  %274 = vmatpush.msrb.mxu1 %v40_v35  ;;  %1024 = vmatpush.msrb.mxu2 %v40_v35 }
  0x1a   :  { %v90_v9 = vld [vmem:[%s89_s20] sm:$0x1]  ;;  %86 = vst.msk [vmem:[#allocation2 + $0x7] sm:$0x1] %vm50_vm1, %v85_v8  ;;  %s114_s9 = scalar_lea.vmem [#allocation5], %s1706_s25  ;;  %s119_s10 = scalar_lea.vmem [#allocation5], %s1707_s26  ;;  %984 = vmatpush.msrb.mxu3 %v36_v27  ;;  %1397 = vmatpush.msrb.mxu0 %v41_v32 }
  0x1b   :  { %v95_v10 = vld [vmem:[%s94_s21] sm:$0x1]  ;;  %91 = vst.msk [vmem:[#allocation2 + $0x8] sm:$0x1] %vm50_vm1, %v90_v9  ;;  %s124_s11 = scalar_lea.vmem [#allocation5], %s1708_s27  ;;  %s1713_s16 = sld [smem:[#allocation4 + $0x14]] }
  0x1c   :  { %v100_v11 = vld [vmem:[%s99_s22] sm:$0x1]  ;;  %96 = vst.msk [vmem:[#allocation2 + $0x9] sm:$0x1] %vm50_vm1, %v95_v10  ;;  %s129_s12 = scalar_lea.vmem [#allocation5], %s1709_s28  ;;  %s2093_s17 = sld [smem:[#allocation4 + $0x15]]  ;;  %1398 = vmatpush.msrb.mxu0 %v40_v35 }
  0x1d   :  { %v105_v12 = vld [vmem:[%s104_s24] sm:$0x1]  ;;  %101 = vst.msk [vmem:[#allocation2 + $0xa] sm:$0x1] %vm50_vm1, %v100_v11  ;;  %s134_s13 = scalar_lea.vmem [#allocation5], %s1710_s0  ;;  %s2103_s22 = sld [smem:[#allocation4 + $0x16]] }
  0x1e   :  { %106 = vst.msk [vmem:[#allocation2 + $0xb] sm:$0x1] %vm50_vm1, %v105_v12  ;;  %v110_v14 = vld [vmem:[%s109_s30] sm:$0x1]  ;;  %s139_s14 = scalar_lea.vmem [#allocation5], %s1711_s29  ;;  %s2105_s23 = sld [smem:[#allocation4 + $0x17]] }
  0x1f   :  { %111 = vst.msk [vmem:[#allocation2 + $0xc] sm:$0x1] %vm50_vm1, %v110_v14  ;;  %v115_v15 = vld [vmem:[%s114_s9] sm:$0x1]  ;;  %s144_s15 = scalar_lea.vmem [#allocation5], %s1712_s7  ;;  %s2112_s26 = sld [smem:[#allocation4 + $0x18]] }
  0x20   :  { %116 = vst.msk [vmem:[#allocation2 + $0xd] sm:$0x1] %vm50_vm1, %v115_v15  ;;  %v120_v16 = vld [vmem:[%s119_s10] sm:$0x1]  ;;  %s2120_s0 = sld [smem:[#allocation4 + $0x19]] }
  0x21   :  { %v207_v13 = vld [vmem:[#allocation2] sm:$0xff]  ;;  %121 = vst.msk [vmem:[#allocation2 + $0xe] sm:$0x1] %vm50_vm1, %v120_v16  ;;  %s2125_s7 = sld [smem:[#allocation4 + $0x1a]] }
  0x22   :  { %243 = vrot.lane.b32.xlu0 %v207_v13, %s2788_s8  ;;  %v125_v17 = vld [vmem:[%s124_s11] sm:$0x1]  ;;  %s2135_s2 = sld [smem:[#allocation4 + $0x1b]] }
  0x23   :  { %126 = vst.msk [vmem:[#allocation2 + $0xf] sm:$0x1] %vm50_vm1, %v125_v17  ;;  %v130_v18 = vld [vmem:[%s129_s12] sm:$0x1]  ;;  %s1721_s24 = sld [smem:[#allocation4 + $0x1c]]  ;;  %s2786_s12 = smov 64  }
  0x24   :  { %131 = vst.msk [vmem:[#allocation2 + $0x10] sm:$0x1] %vm50_vm1, %v130_v18  ;;  %v135_v19 = vld [vmem:[%s134_s13] sm:$0x1]  ;;  %s149_s13 = scalar_lea.vmem [#allocation5], %s1713_s16  ;;  %s159_s16 = scalar_lea.vmem [#allocation5], %s2103_s22 }
  0x25   :  { %136 = vst.msk [vmem:[#allocation2 + $0x11] sm:$0x1] %vm50_vm1, %v135_v19  ;;  %v140_v20 = vld [vmem:[%s139_s14] sm:$0x1]  ;;  %s154_s14 = scalar_lea.vmem [#allocation5], %s2093_s17  ;;  %s164_s19 = scalar_lea.vmem [#allocation5], %s2105_s23 }
  0x26   :  { %141 = vst.msk [vmem:[#allocation2 + $0x12] sm:$0x1] %vm50_vm1, %v140_v20  ;;  %v145_v21 = vld [vmem:[%s144_s15] sm:$0x1]  ;;  %s169_s21 = scalar_lea.vmem [#allocation5], %s2112_s26  ;;  %s174_s22 = scalar_lea.vmem [#allocation5], %s2120_s0 }
  0x27   :  { %146 = vst.msk [vmem:[#allocation2 + $0x13] sm:$0x1] %vm50_vm1, %v145_v21  ;;  %v150_v30 = vld [vmem:[%s149_s13] sm:$0x1]  ;;  %s179_s23 = scalar_lea.vmem [#allocation5], %s2125_s7  ;;  %s1722_s25 = sld [smem:[#allocation4 + $0x1d]] }
  0x28   :  { %151 = vst.msk [vmem:[#allocation2 + $0x14] sm:$0x1] %vm50_vm1, %v150_v30  ;;  %v155_v31 = vld [vmem:[%s154_s14] sm:$0x1]  ;;  %s184_s3 = scalar_lea.vmem [#allocation5], %s2135_s2  ;;  %s1723_s26 = sld [smem:[#allocation4 + $0x1e]] }
  0x29   :  { %156 = vst.msk [vmem:[#allocation2 + $0x15] sm:$0x1] %vm50_vm1, %v155_v31  ;;  %v160_v33 = vld [vmem:[%s159_s16] sm:$0x1]  ;;  %s1724_s27 = sld [smem:[#allocation4 + $0x1f]]  ;;  %s189_s28 = scalar_lea.vmem [#allocation5], %s1721_s24 }
  0x2a   :  { %v208_v25 = vld [vmem:[#allocation2 + $0x8] sm:$0xff]  ;;  %161 = vst.msk [vmem:[#allocation2 + $0x16] sm:$0x1] %vm50_vm1, %v160_v33  ;;  %v165_v34 = vld [vmem:[%s164_s19] sm:$0x1]  ;;  %s2784_s13 = smov 32  }
  0x2b   :  { %245 = vrot.lane.b32.xlu0 %v208_v25, %s2788_s8  ;;  %166 = vst.msk [vmem:[#allocation2 + $0x17] sm:$0x1] %vm50_vm1, %v165_v34  ;;  %v170_v36 = vld [vmem:[%s169_s21] sm:$0x1]  ;;  %s1751_s2 = sld [smem:[#allocation4 + $0x30]] }
  0x2c   :  { %171 = vst.msk [vmem:[#allocation2 + $0x18] sm:$0x1] %vm50_vm1, %v170_v36  ;;  %v175_v37 = vld [vmem:[%s174_s22] sm:$0x1]  ;;  %s1752_s14 = sld [smem:[#allocation4 + $0x31]] }
  0x2d   :  { %176 = vst.msk [vmem:[#allocation2 + $0x19] sm:$0x1] %vm50_vm1, %v175_v37  ;;  %v180_v38 = vld [vmem:[%s179_s23] sm:$0x1]  ;;  %s194_s0 = scalar_lea.vmem [#allocation5], %s1722_s25  ;;  %s1753_s15 = sld [smem:[#allocation4 + $0x32]] }
  0x2e   :  { %181 = vst.msk [vmem:[#allocation2 + $0x1a] sm:$0x1] %vm50_vm1, %v180_v38  ;;  %v185_v39 = vld [vmem:[%s184_s3] sm:$0x1]  ;;  %s199_s29 = scalar_lea.vmem [#allocation5], %s1723_s26  ;;  %s2228_s18 = sld [smem:[#allocation4 + $0x33]] }
  0x2f   :  { %186 = vst.msk [vmem:[#allocation2 + $0x1b] sm:$0x1] %vm50_vm1, %v185_v39  ;;  %v190_v41 = vld [vmem:[%s189_s28] sm:$0x1]  ;;  %s204_s30 = scalar_lea.vmem [#allocation5], %s1724_s27  ;;  %s2230_s16 = sld [smem:[#allocation4 + $0x34]] }
  0x30   :  { %191 = vst.msk [vmem:[#allocation2 + $0x1c] sm:$0x1] %vm50_vm1, %v190_v41  ;;  %v195_v42 = vld [vmem:[%s194_s0] sm:$0x1]  ;;  %s2232_s19 = sld [smem:[#allocation4 + $0x35]] }
  0x31   :  { %196 = vst.msk [vmem:[#allocation2 + $0x1d] sm:$0x1] %vm50_vm1, %v195_v42  ;;  %v200_v43 = vld [vmem:[%s199_s29] sm:$0x1]  ;;  %s2234_s17 = sld [smem:[#allocation4 + $0x36]]  ;;  %s508_s7 = scalar_lea.vmem [#allocation5], %s1751_s2 }
  0x32   :  { %v209_v40 = vld [vmem:[#allocation2 + $0x10] sm:$0xff]  ;;  %201 = vst.msk [vmem:[#allocation2 + $0x1e] sm:$0x1] %vm50_vm1, %v200_v43  ;;  %v205_v44 = vld [vmem:[%s204_s30] sm:$0x1]  ;;  %s2236_s20 = sld [smem:[#allocation4 + $0x37]] }
  0x33   :  { %247 = vrot.lane.b32.xlu1 %v209_v40, %s2788_s8  ;;  %206 = vst.msk [vmem:[#allocation2 + $0x1f] sm:$0x1] %vm50_vm1, %v205_v44  ;;  %s2238_s21 = sld [smem:[#allocation4 + $0x28]]  ;;  %s513_s9 = scalar_lea.vmem [#allocation5], %s1752_s14 }
  0x34   :  { %s2240_s22 = sld [smem:[#allocation4 + $0x29]]  ;;  %s518_s10 = scalar_lea.vmem [#allocation5], %s1753_s15 }
  0x35   :  { %s2242_s23 = sld [smem:[#allocation4 + $0x2a]]  ;;  %s523_s11 = scalar_lea.vmem [#allocation5], %s2228_s18 }
  0x36   :  { %s2244_s3 = sld [smem:[#allocation4 + $0x2b]]  ;;  %s533_s2 = scalar_lea.vmem [#allocation5], %s2232_s19 }
  0x37   :  { %s2246_s24 = sld [smem:[#allocation4 + $0x2c]]  ;;  %s538_s15 = scalar_lea.vmem [#allocation5], %s2234_s17 }
  0x38   :  { %s2249_s25 = sld [smem:[#allocation4 + $0x2d]]  ;;  %s543_s18 = scalar_lea.vmem [#allocation5], %s2236_s20 }
  0x39   :  { %s2252_s26 = sld [smem:[#allocation4 + $0x2e]] }
  0x3a   :  { %v210_v45 = vld [vmem:[#allocation2 + $0x18] sm:$0xff]  ;;  %s2254_s27 = sld [smem:[#allocation4 + $0x2f]] }
  0x3b   :  { %249 = vrot.lane.b32.xlu1 %v210_v45, %s2788_s8  ;;  %s2256_s28 = sld [smem:[#allocation4 + $0x20]]  ;;  %s478_s17 = scalar_lea.vmem [#allocation5], %s2242_s23 }
  0x3c   :  { %s2258_s0 = sld [smem:[#allocation4 + $0x21]] }
  0x3d   :  { %s2260_s29 = sld [smem:[#allocation4 + $0x22]] }
  0x3e   :  { %s2262_s30 = sld [smem:[#allocation4 + $0x23]] }
  0x3f   :  { %s2272_s14 = sld [smem:[#allocation4 + $0x25]] }
  0x40   :  { %s2282_s19 = sld [smem:[#allocation4 + $0x27]] }
  0x41   :  { %s2288_s20 = sld [smem:[#allocation4 + $0x38]] }
  0x42   :  { %s2298_s23 = sld [smem:[#allocation4 + $0x3a]] }
  0x8f   :  { %v236_v50 = vpop.f32.mrf.mxu1 }
  0x90   :  { %v237_v53 = vadd.f32 %v2188_v52, %v236_v50 }
  0x92   :  { %v316_v55 = vadd.f32 %v2194_v54, %v237_v53 }
  0x94   :  { %v2169_v46 = vpop.permute.xlu0 %243 }
  0x95   :  { %1726 = vmatmul.msk.f32.vlgmr.msrb.gmra.mxu1 %vm215_vm2, %v2169_v46 }
  0x9d   :  { %v2173_v47 = vpop.permute.xlu0 %245 }
  0x9e   :  { %1727 = vmatmul.msk.f32.gmra.mxu1 %vm215_vm2, %v2173_v47 }
  0xa5   :  { %v2177_v48 = vpop.permute.xlu1 %247 }
  0xa6   :  { %1728 = vmatmul.msk.f32.gmra.mxu1 %vm215_vm2, %v2177_v48 }
  0xad   :  { %v2181_v49 = vpop.permute.xlu1 %249 }
  0xae   :  { %1729 = vmatmul.msk.f32.gmra.mxu1 %vm215_vm2, %v2181_v49 }
 0x112   :  { %v276_v51 = vpop.f32.mrf.mxu1 }
 0x113   :  { %v317_v58 = vadd.f32 %v316_v55, %v276_v51 }
 0x115   :  { %v1731_v60 = vmul.f32 -1.442695, %v317_v58 }
 0x11b   :  { %v279_v56 = vpop.f32.mrf.mxu1 }
 0x11c   :  { %v339_v57 = vadd.f32 %v316_v55, %v279_v56  ;;  %v288_v5 = vadd.f32 %v279_v56, %v276_v51 }
 0x11e   :  { %v1732_v59 = vmul.f32 -1.442695, %v339_v57 }
 0x120   :  { %1874 = vpow2.f32 %v1732_v59 }
 0x121   :  { %1876 = vpow2.f32 %v1731_v60 }
 0x123   :  { %v282_v61 = vpop.f32.mrf.mxu1 }
 0x124   :  { %v362_v63 = vadd.f32 %v316_v55, %v282_v61  ;;  %v289_v7 = vadd.f32 %v288_v5, %v282_v61 }
 0x126   :  { %v1875_v62 = vpop.eup %1874  ;;  %v1733_v1 = vmul.f32 -1.442695, %v362_v63 }
 0x127   :  { %v1877_v0 = vpop.eup %1876  ;;  %v343_v2 = vadd.f32 1.0, %v1875_v62 }
 0x128   :  { %1878 = vpow2.f32 %v1733_v1  ;;  %v2197_v3 = vadd.f32 1.0, %v1877_v0 }
 0x129   :  { %1880 = vrcp.f32 %v343_v2  ;;  %vm349_vm5 = vweird.f32 %v343_v2  ;;  %v355_v30 = vand.u32 2147483648, %v343_v2  ;;  %v353_v32 = vand.u32 2147483647, %v343_v2 }
 0x12a   :  { %1882 = vrcp.f32 %v2197_v3  ;;  %vm327_vm7 = vweird.f32 %v2197_v3  ;;  %v333_v34 = vand.u32 2147483648, %v2197_v3  ;;  %v331_v38 = vand.u32 2147483647, %v2197_v3 }
 0x12b   :  { %v285_v9 = vpop.f32.mrf.mxu1  ;;  %v356_v42 = vor.u32 1.1754944e-38, %v355_v30  ;;  %vm354_vm12 = vcmp.eq.f32.partialorder %v353_v32, 8.507059e+37 }
 0x12c   :  { %v290_v10 = vadd.f32 %v289_v7, %v285_v9  ;;  %v385_v11 = vadd.f32 %v316_v55, %v285_v9  ;;  %v334_v50 = vor.u32 1.1754944e-38, %v333_v34  ;;  %vm332_vm13 = vcmp.eq.f32.partialorder %v331_v38, 8.507059e+37 }
 0x12e   :  { %v1879_v4 = vpop.eup %1878  ;;  %v291_v14 = vadd.f32 %v290_v10, %v237_v53  ;;  %v1734_v15 = vmul.f32 -1.442695, %v385_v11 }
 0x12f   :  { %v366_v6 = vadd.f32 1.0, %v1879_v4  ;;  %v1881_v8 = vpop.eup %1880 }
 0x130   :  { %v1883_v12 = vpop.eup %1882  ;;  %v345_v13 = vmul.f32 %v1881_v8, %v343_v2  ;;  %v2202_v17 = vadd.f32 %v2194_v54, %v291_v14  ;;  %vm350_vm3 = vweird.f32 %v1881_v8 }
 0x131   :  { %1884 = vrcp.f32 %v366_v6  ;;  %v323_v16 = vmul.f32 %v1883_v12, %v2197_v3  ;;  %vm328_vm4 = vweird.f32 %v1883_v12  ;;  %vm2208_vm8 = vmor %vm349_vm5, %vm350_vm3  ;;  %v378_v36 = vand.u32 2147483648, %v366_v6 }
 0x132   :  { %1886 = vpow2.f32 %v1734_v15  ;;  %v346_v19 = vsub.f32 1.0, %v345_v13  ;;  %vm2212_vm9 = vmor %vm327_vm7, %vm328_vm4  ;;  %vm372_vm10 = vweird.f32 %v366_v6  ;;  %v376_v40 = vand.u32 2147483647, %v366_v6 }
 0x133   :  { %1888 = vtanh.f32 %v2202_v17  ;;  %v324_v21 = vsub.f32 1.0, %v323_v16  ;;  %v379_v53 = vor.u32 1.1754944e-38, %v378_v36 }
 0x134   :  { %v347_v24 = vmul.f32 %v1881_v8, %v346_v19  ;;  %vm377_vm14 = vcmp.eq.f32.partialorder %v376_v40, 8.507059e+37 }
 0x135   :  { %v325_v27 = vmul.f32 %v1883_v12, %v324_v21 }
 0x136   :  { %v348_v29 = vadd.f32 %v1881_v8, %v347_v24 }
 0x137   :  { %v1885_v18 = vpop.eup %1884  ;;  %v326_v31 = vadd.f32 %v1883_v12, %v325_v27 }
 0x138   :  { %v368_v20 = vmul.f32 %v1885_v18, %v366_v6  ;;  %v1887_v23 = vpop.eup %1886  ;;  %vm373_vm6 = vweird.f32 %v1885_v18  ;;  %v352_v39 = vsel %vm2208_vm8, %v1881_v8, %v348_v29 }
 0x139   :  { %v389_v25 = vadd.f32 1.0, %v1887_v23  ;;  %v1889_v26 = vpop.eup %1888  ;;  %vm374_vm11 = vmor %vm372_vm10, %vm373_vm6  ;;  %v330_v44 = vsel %vm2212_vm9, %v1883_v12, %v326_v31  ;;  %v357_v51 = vsel %vm354_vm12, %v356_v42, %v352_v39 }
 0x13a   :  { %v369_v22 = vsub.f32 1.0, %v368_v20  ;;  %409 = vrot.lane.b32.xlu2 %v1889_v26, %s2786_s12  ;;  %v335_v56 = vsel %vm332_vm13, %v334_v50, %v330_v44  ;;  %v360_v59 = vmul.f32 %v357_v51, %v2173_v47  ;;  %v1730_v47 = vmul.f32 -1.442695, %v2202_v17  ;;  %s2268_s12 = sld [smem:[#allocation4 + $0x24]] }
 0x13b   :  { %1890 = vrcp.f32 %v389_v25  ;;  %v401_v58 = vand.u32 2147483648, %v389_v25  ;;  %v399_v61 = vand.u32 2147483647, %v389_v25  ;;  %v338_v62 = vmul.f32 %v335_v56, %v2169_v46 }
 0x13c   :  { %v370_v28 = vmul.f32 %v1885_v18, %v369_v22  ;;  %vm395_vm3 = vweird.f32 %v389_v25  ;;  %1892 = vpow2.f32 %v1730_v47 }
 0x13d   :  { %v402_v1 = vor.u32 1.1754944e-38, %v401_v58  ;;  %v361_v2 = vadd.f32 %v360_v59, %v338_v62  ;;  %vm400_vm5 = vcmp.eq.f32.partialorder %v399_v61, 8.507059e+37 }
 0x13e   :  { %v371_v33 = vadd.f32 %v1885_v18, %v370_v28 }
 0x140   :  { %v375_v45 = vsel %vm374_vm11, %v1885_v18, %v371_v33 }
 0x141   :  { %v1891_v41 = vpop.eup %1890  ;;  %v380_v57 = vsel %vm377_vm14, %v379_v53, %v375_v45 }
 0x142   :  { %v391_v43 = vmul.f32 %v1891_v41, %v389_v25  ;;  %vm396_vm15 = vweird.f32 %v1891_v41  ;;  %v383_v63 = vmul.f32 %v380_v57, %v2177_v48  ;;  %v1893_v46 = vpop.eup %1892 }
 0x143   :  { %vm397_vm4 = vmor %vm395_vm3, %vm396_vm15  ;;  %v299_v48 = vadd.f32 1.0, %v1893_v46 }
 0x144   :  { %v392_v55 = vsub.f32 1.0, %v391_v43  ;;  %v384_v5 = vadd.f32 %v383_v63, %v361_v2 }
 0x145   :  { %1894 = vrcp.f32 %v299_v48  ;;  %v311_v14 = vand.u32 2147483648, %v299_v48  ;;  %vm305_vm7 = vweird.f32 %v299_v48 }
 0x146   :  { %v393_v60 = vmul.f32 %v1891_v41, %v392_v55 }
 0x147   :  { %v312_v16 = vor.u32 1.1754944e-38, %v311_v14 }
 0x148   :  { %v394_v0 = vadd.f32 %v1891_v41, %v393_v60 }
 0x14a   :  { %v398_v3 = vsel %vm397_vm4, %v1891_v41, %v394_v0 }
 0x14b   :  { %v403_v4 = vsel %vm400_vm5, %v402_v1, %v398_v3  ;;  %v1895_v8 = vpop.eup %1894  ;;  %v1767_v3 = vld [vmem:[%s2778_s1 + $0x8] sm:$0xff] }
 0x14c   :  { %v406_v6 = vmul.f32 %v403_v4, %v2181_v49  ;;  %v301_v9 = vmul.f32 %v1895_v8, %v299_v48  ;;  %vm306_vm6 = vweird.f32 %v1895_v8  ;;  %v309_v49 = vand.u32 2147483647, %v299_v48  ;;  %1768 = vmatmul.msk.f32.vlgmr.msra.gmra.mxu2 %vm215_vm2, %v1767_v3 }
 0x14d   :  { %vm307_vm8 = vmor %vm305_vm7, %vm306_vm6 }
 0x14e   :  { %v407_v7 = vadd.f32 %v406_v6, %v384_v5  ;;  %v302_v10 = vsub.f32 1.0, %v301_v9  ;;  %vm310_vm9 = vcmp.eq.f32.partialorder %v309_v49, 8.507059e+37 }
 0x150   :  { %414 = vrot.lane.b32.xlu2 %v407_v7, %s2784_s13  ;;  %v303_v11 = vmul.f32 %v1895_v8, %v302_v10 }
 0x152   :  { %v304_v12 = vadd.f32 %v1895_v8, %v303_v11 }
 0x154   :  { %v308_v15 = vsel %vm307_vm8, %v1895_v8, %v304_v12 }
 0x155   :  { %v313_v18 = vsel %vm310_vm9, %v312_v16, %v308_v15 }
 0x194   :  { %v410_v13 = vpop.permute.xlu2 %409 }
 0x195   :  { %v412_v17 = vmul.f32 %v410_v13, %v313_v18 }
 0x1aa   :  { %v415_v19 = vpop.permute.xlu2 %414 }
 0x1ab   :  { %v417_v20 = vadd.f32 %v415_v19, %v412_v17 }
 0x1ad   :  { %1896 = vtanh.f32 %v417_v20 }
 0x1b3   :  { %v1897_v21 = vpop.eup %1896 }
 0x1b4   :  { %420 = vrot.lane.b32.xlu0 %v1897_v21, %s2784_s13  ;;  %s528_s13 = scalar_lea.vmem [#allocation5], %s2230_s16  ;;  %s468_s16 = scalar_lea.vmem [#allocation5], %s2238_s21 }
 0x1b5   :  { %s2292_s21 = sld [smem:[#allocation4 + $0x39]] }
 0x1cf   :  { %v612_v47 = vpop.f32.mrf.mxu2 }
 0x1d0   :  { %v613_v46 = vadd.f32 %v2188_v52, %v612_v47 }
 0x1d2   :  { %v689_v48 = vadd.f32 %v2194_v54, %v613_v46 }
 0x226   :  { %v421_v22 = vpop.permute.xlu0 %420 }
 0x227   :  { %v423_v23 = vmul.f32 %v421_v22, %v313_v18 }
 0x229   :  { %v424_v24 = vsel %vm215_vm2, %v417_v20, %v423_v23 }
 0x22a   :  { %425 = vst.msk [vmem:[#allocation5] sm:$0xff] %vm30_vm0, %v424_v24 }
 0x231   :  { %v509_v25 = vld [vmem:[%s508_s7] sm:$0x1]  ;;  %s473_s7 = scalar_lea.vmem [#allocation5], %s2240_s22  ;;  %s493_s22 = scalar_lea.vmem [#allocation5], %s2249_s25 }
 0x232   :  { %v514_v26 = vld [vmem:[%s513_s9] sm:$0x1]  ;;  %510 = vst.msk [vmem:[#allocation2 + $0x10] sm:$0x1] %vm50_vm1, %v509_v25  ;;  %s483_s9 = scalar_lea.vmem [#allocation5], %s2244_s3  ;;  %s2302_s3 = sld [smem:[#allocation4 + $0x3b]] }
 0x233   :  { %v519_v27 = vld [vmem:[%s518_s10] sm:$0x1]  ;;  %515 = vst.msk [vmem:[#allocation2 + $0x11] sm:$0x1] %vm50_vm1, %v514_v26  ;;  %s488_s10 = scalar_lea.vmem [#allocation5], %s2246_s24  ;;  %s428_s24 = scalar_lea.vmem [#allocation5], %s2256_s28 }
 0x234   :  { %v524_v28 = vld [vmem:[%s523_s11] sm:$0x1]  ;;  %520 = vst.msk [vmem:[#allocation2 + $0x12] sm:$0x1] %vm50_vm1, %v519_v27  ;;  %s498_s11 = scalar_lea.vmem [#allocation5], %s2252_s26  ;;  %s2308_s25 = sld [smem:[#allocation4 + $0x3c]] }
 0x235   :  { %v529_v29 = vld [vmem:[%s528_s13] sm:$0x1]  ;;  %525 = vst.msk [vmem:[#allocation2 + $0x13] sm:$0x1] %vm50_vm1, %v524_v28  ;;  %s2278_s13 = sld [smem:[#allocation4 + $0x26]]  ;;  %s433_s26 = scalar_lea.vmem [#allocation5], %s2258_s0 }
 0x236   :  { %v534_v30 = vld [vmem:[%s533_s2] sm:$0x1]  ;;  %530 = vst.msk [vmem:[#allocation2 + $0x14] sm:$0x1] %vm50_vm1, %v529_v29  ;;  %s503_s2 = scalar_lea.vmem [#allocation5], %s2254_s27  ;;  %s438_s27 = scalar_lea.vmem [#allocation5], %s2260_s29 }
 0x237   :  { %v539_v31 = vld [vmem:[%s538_s15] sm:$0x1]  ;;  %535 = vst.msk [vmem:[#allocation2 + $0x15] sm:$0x1] %vm50_vm1, %v534_v30  ;;  %s2315_s15 = sld [smem:[#allocation4 + $0x3d]]  ;;  %s443_s28 = scalar_lea.vmem [#allocation5], %s2262_s30 }
 0x238   :  { %v544_v32 = vld [vmem:[%s543_s18] sm:$0x1]  ;;  %540 = vst.msk [vmem:[#allocation2 + $0x16] sm:$0x1] %vm50_vm1, %v539_v31  ;;  %s2319_s18 = sld [smem:[#allocation4 + $0x3e]]  ;;  %s448_s0 = scalar_lea.vmem [#allocation5], %s2268_s12 }
 0x239   :  { %v469_v33 = vld [vmem:[%s468_s16] sm:$0x1]  ;;  %545 = vst.msk [vmem:[#allocation2 + $0x17] sm:$0x1] %vm50_vm1, %v544_v32  ;;  %s2323_s16 = sld [smem:[#allocation4 + $0x3f]]  ;;  %s453_s29 = scalar_lea.vmem [#allocation5], %s2272_s14 }
 0x23a   :  { %v474_v34 = vld [vmem:[%s473_s7] sm:$0x1]  ;;  %470 = vst.msk [vmem:[#allocation2 + $0x8] sm:$0x1] %vm50_vm1, %v469_v33  ;;  %s463_s30 = scalar_lea.vmem [#allocation5], %s2282_s19  ;;  %s548_s12 = scalar_lea.vmem [#allocation5], %s2288_s20 }
 0x23b   :  { %v479_v35 = vld [vmem:[%s478_s17] sm:$0x1]  ;;  %475 = vst.msk [vmem:[#allocation2 + $0x9] sm:$0x1] %vm50_vm1, %v474_v34  ;;  %s458_s7 = scalar_lea.vmem [#allocation5], %s2278_s13  ;;  %s553_s14 = scalar_lea.vmem [#allocation5], %s2292_s21 }
 0x23c   :  { %v484_v36 = vld [vmem:[%s483_s9] sm:$0x1]  ;;  %480 = vst.msk [vmem:[#allocation2 + $0xa] sm:$0x1] %vm50_vm1, %v479_v35  ;;  %s558_s13 = scalar_lea.vmem [#allocation5], %s2298_s23  ;;  %s563_s19 = scalar_lea.vmem [#allocation5], %s2302_s3 }
 0x23d   :  { %v489_v37 = vld [vmem:[%s488_s10] sm:$0x1]  ;;  %485 = vst.msk [vmem:[#allocation2 + $0xb] sm:$0x1] %vm50_vm1, %v484_v36  ;;  %s568_s17 = scalar_lea.vmem [#allocation5], %s2308_s25  ;;  %s573_s20 = scalar_lea.vmem [#allocation5], %s2315_s15 }
 0x23e   :  { %v494_v38 = vld [vmem:[%s493_s22] sm:$0x1]  ;;  %490 = vst.msk [vmem:[#allocation2 + $0xc] sm:$0x1] %vm50_vm1, %v489_v37  ;;  %s578_s9 = scalar_lea.vmem [#allocation5], %s2319_s18  ;;  %s2795_s23 = smov 64  }
 0x23f   :  { %v499_v39 = vld [vmem:[%s498_s11] sm:$0x1]  ;;  %495 = vst.msk [vmem:[#allocation2 + $0xd] sm:$0x1] %vm50_vm1, %v494_v38  ;;  %s583_s21 = scalar_lea.vmem [#allocation5], %s2323_s16  ;;  %s2800_s11 = smov 32  }
 0x240   :  { %v504_v40 = vld [vmem:[%s503_s2] sm:$0x1]  ;;  %v588_v42 = vld [vmem:[#allocation2 + $0x10] sm:$0xff]  ;;  %500 = vst.msk [vmem:[#allocation2 + $0xe] sm:$0x1] %vm50_vm1, %v499_v39  ;;  %s1794_s3 = sld [smem:[#allocation4 + $0x50]] }
 0x241   :  { %v429_v41 = vld [vmem:[%s428_s24] sm:$0x1]  ;;  %623 = vrot.lane.b32.xlu0 %v588_v42, %s2788_s8  ;;  %505 = vst.msk [vmem:[#allocation2 + $0xf] sm:$0x1] %vm50_vm1, %v504_v40  ;;  %s1795_s2 = sld [smem:[#allocation4 + $0x51]] }
 0x242   :  { %v434_v43 = vld [vmem:[%s433_s26] sm:$0x1]  ;;  %430 = vst.msk [vmem:[#allocation2] sm:$0x1] %vm50_vm1, %v429_v41  ;;  %s1796_s24 = sld [smem:[#allocation4 + $0x52]] }
 0x243   :  { %v439_v44 = vld [vmem:[%s438_s27] sm:$0x1]  ;;  %435 = vst.msk [vmem:[#allocation2 + $0x1] sm:$0x1] %vm50_vm1, %v434_v43  ;;  %s2406_s25 = sld [smem:[#allocation4 + $0x53]] }
 0x244   :  { %v444_v45 = vld [vmem:[%s443_s28] sm:$0x1]  ;;  %440 = vst.msk [vmem:[#allocation2 + $0x2] sm:$0x1] %vm50_vm1, %v439_v44  ;;  %s2408_s26 = sld [smem:[#allocation4 + $0x54]] }
 0x245   :  { %v449_v50 = vld [vmem:[%s448_s0] sm:$0x1]  ;;  %445 = vst.msk [vmem:[#allocation2 + $0x3] sm:$0x1] %vm50_vm1, %v444_v45  ;;  %s2410_s27 = sld [smem:[#allocation4 + $0x55]] }
 0x246   :  { %v454_v51 = vld [vmem:[%s453_s29] sm:$0x1]  ;;  %450 = vst.msk [vmem:[#allocation2 + $0x4] sm:$0x1] %vm50_vm1, %v449_v50  ;;  %s2412_s15 = sld [smem:[#allocation4 + $0x56]] }
 0x247   :  { %v459_v53 = vld [vmem:[%s458_s7] sm:$0x1]  ;;  %455 = vst.msk [vmem:[#allocation2 + $0x5] sm:$0x1] %vm50_vm1, %v454_v51  ;;  %s2414_s28 = sld [smem:[#allocation4 + $0x57]] }
 0x248   :  { %v464_v55 = vld [vmem:[%s463_s30] sm:$0x1]  ;;  %v587_v57 = vld [vmem:[#allocation2 + $0x8] sm:$0xff]  ;;  %460 = vst.msk [vmem:[#allocation2 + $0x6] sm:$0x1] %vm50_vm1, %v459_v53  ;;  %s2416_s18 = sld [smem:[#allocation4 + $0x48]] }
 0x249   :  { %v549_v56 = vld [vmem:[%s548_s12] sm:$0x1]  ;;  %621 = vrot.lane.b32.xlu2 %v587_v57, %s2788_s8  ;;  %465 = vst.msk [vmem:[#allocation2 + $0x7] sm:$0x1] %vm50_vm1, %v464_v55  ;;  %s2418_s0 = sld [smem:[#allocation4 + $0x49]]  ;;  %s892_s10 = scalar_lea.vmem [#allocation5], %s1796_s24 }
 0x24a   :  { %v554_v58 = vld [vmem:[%s553_s14] sm:$0x1]  ;;  %550 = vst.msk [vmem:[#allocation2 + $0x18] sm:$0x1] %vm50_vm1, %v549_v56  ;;  %s2420_s16 = sld [smem:[#allocation4 + $0x4a]]  ;;  %s897_s22 = scalar_lea.vmem [#allocation5], %s2406_s25 }
 0x24b   :  { %v559_v59 = vld [vmem:[%s558_s13] sm:$0x1]  ;;  %555 = vst.msk [vmem:[#allocation2 + $0x19] sm:$0x1] %vm50_vm1, %v554_v58  ;;  %s2422_s29 = sld [smem:[#allocation4 + $0x4b]]  ;;  %s902_s6 = scalar_lea.vmem [#allocation5], %s2408_s26 }
 0x24c   :  { %v564_v60 = vld [vmem:[%s563_s19] sm:$0x1]  ;;  %560 = vst.msk [vmem:[#allocation2 + $0x1a] sm:$0x1] %vm50_vm1, %v559_v59  ;;  %s2424_s7 = sld [smem:[#allocation4 + $0x4c]]  ;;  %s912_s24 = scalar_lea.vmem [#allocation5], %s2412_s15 }
 0x24d   :  { %v569_v61 = vld [vmem:[%s568_s17] sm:$0x1]  ;;  %565 = vst.msk [vmem:[#allocation2 + $0x1b] sm:$0x1] %vm50_vm1, %v564_v60  ;;  %s2426_s30 = sld [smem:[#allocation4 + $0x4d]] }
 0x24e   :  { %v574_v62 = vld [vmem:[%s573_s20] sm:$0x1]  ;;  %570 = vst.msk [vmem:[#allocation2 + $0x1c] sm:$0x1] %vm50_vm1, %v569_v61  ;;  %s2430_s12 = sld [smem:[#allocation4 + $0x4e]] }
 0x24f   :  { %v579_v63 = vld [vmem:[%s578_s9] sm:$0x1]  ;;  %575 = vst.msk [vmem:[#allocation2 + $0x1d] sm:$0x1] %vm50_vm1, %v574_v62  ;;  %s2432_s14 = sld [smem:[#allocation4 + $0x4f]]  ;;  %s882_s9 = scalar_lea.vmem [#allocation5], %s1794_s3 }
 0x250   :  { %v584_v0 = vld [vmem:[%s583_s21] sm:$0x1]  ;;  %580 = vst.msk [vmem:[#allocation2 + $0x1e] sm:$0x1] %vm50_vm1, %v579_v63  ;;  %s2434_s13 = sld [smem:[#allocation4 + $0x40]]  ;;  %s887_s21 = scalar_lea.vmem [#allocation5], %s1795_s2 }
 0x251   :  { %v586_v1 = vld [vmem:[#allocation2] sm:$0xff]  ;;  %585 = vst.msk [vmem:[#allocation2 + $0x1f] sm:$0x1] %vm50_vm1, %v584_v0  ;;  %s2436_s19 = sld [smem:[#allocation4 + $0x41]]  ;;  %s907_s3 = scalar_lea.vmem [#allocation5], %s2410_s27 }
 0x252   :  { %619 = vrot.lane.b32.xlu1 %v586_v1, %s2788_s8  ;;  %s2438_s17 = sld [smem:[#allocation4 + $0x42]]  ;;  %s847_s27 = scalar_lea.vmem [#allocation5], %s2418_s0 }
 0x253   :  { %s2440_s20 = sld [smem:[#allocation4 + $0x43]] }
 0x254   :  { %s2450_s2 = sld [smem:[#allocation4 + $0x45]] }
 0x255   :  { %s2454_s25 = sld [smem:[#allocation4 + $0x46]] }
 0x256   :  { %s2460_s26 = sld [smem:[#allocation4 + $0x47]] }
 0x257   :  { %s2464_s15 = sld [smem:[#allocation4 + $0x58]] }
 0x258   :  { %v589_v2 = vld [vmem:[#allocation2 + $0x18] sm:$0xff]  ;;  %s2474_s0 = sld [smem:[#allocation4 + $0x5a]] }
 0x25a   :  { %625 = vrot.lane.b32.xlu1 %v589_v2, %s2788_s8  ;;  %s2444_s8 = sld [smem:[#allocation4 + $0x44]] }
 0x2a3   :  { %v2361_v5 = vpop.permute.xlu2 %621 }
 0x2b3   :  { %v2365_v6 = vpop.permute.xlu0 %623 }
 0x2c4   :  { %v2357_v4 = vpop.permute.xlu1 %619 }
 0x2c5   :  { %1769 = vmatmul.msk.f32.vlgmr.msra.gmra.mxu3 %vm215_vm2, %v2357_v4 }
 0x2cc   :  { %v2369_v7 = vpop.permute.xlu1 %625 }
 0x2cd   :  { %1770 = vmatmul.msk.f32.gmra.mxu3 %vm215_vm2, %v2361_v5 }
 0x2d5   :  { %1771 = vmatmul.msk.f32.gmra.mxu3 %vm215_vm2, %v2365_v6 }
 0x2dd   :  { %1772 = vmatmul.msk.f32.gmra.mxu3 %vm215_vm2, %v2369_v7 }
 0x348   :  { %v652_v8 = vpop.f32.mrf.mxu3 }
 0x349   :  { %v690_v9 = vadd.f32 %v689_v48, %v652_v8 }
 0x34b   :  { %v1774_v10 = vmul.f32 -1.442695, %v690_v9 }
 0x34d   :  { %1898 = vpow2.f32 %v1774_v10 }
 0x350   :  { %v655_v11 = vpop.f32.mrf.mxu3 }
 0x351   :  { %v712_v12 = vadd.f32 %v689_v48, %v655_v11  ;;  %v664_v19 = vadd.f32 %v655_v11, %v652_v8 }
 0x353   :  { %v1775_v13 = vmul.f32 -1.442695, %v712_v12  ;;  %v1899_v14 = vpop.eup %1898 }
 0x354   :  { %v2375_v49 = vadd.f32 1.0, %v1899_v14 }
 0x355   :  { %1900 = vpow2.f32 %v1775_v13 }
 0x356   :  { %1902 = vrcp.f32 %v2375_v49  ;;  %vm700_vm14 = vweird.f32 %v2375_v49  ;;  %v704_v51 = vand.u32 2147483647, %v2375_v49  ;;  %v706_v53 = vand.u32 2147483648, %v2375_v49 }
 0x358   :  { %v658_v15 = vpop.f32.mrf.mxu3  ;;  %v707_v2 = vor.u32 1.1754944e-38, %v706_v53  ;;  %vm705_vm7 = vcmp.eq.f32.partialorder %v704_v51, 8.507059e+37 }
 0x359   :  { %v735_v16 = vadd.f32 %v689_v48, %v658_v15  ;;  %v665_v20 = vadd.f32 %v664_v19, %v658_v15 }
 0x35b   :  { %v1901_v18 = vpop.eup %1900  ;;  %v1776_v17 = vmul.f32 -1.442695, %v735_v16 }
 0x35c   :  { %v716_v52 = vadd.f32 1.0, %v1901_v18  ;;  %v1903_v24 = vpop.eup %1902 }
 0x35d   :  { %1904 = vpow2.f32 %v1776_v17  ;;  %v696_v30 = vmul.f32 %v1903_v24, %v2375_v49  ;;  %vm701_vm11 = vweird.f32 %v1903_v24 }
 0x35e   :  { %1906 = vrcp.f32 %v716_v52  ;;  %vm722_vm12 = vweird.f32 %v716_v52  ;;  %v726_v45 = vand.u32 2147483647, %v716_v52  ;;  %vm2391_vm3 = vmor %vm700_vm14, %vm701_vm11 }
 0x35f   :  { %v697_v34 = vsub.f32 1.0, %v696_v30 }
 0x360   :  { %v661_v21 = vpop.f32.mrf.mxu3  ;;  %vm727_vm6 = vcmp.eq.f32.partialorder %v726_v45, 8.507059e+37 }
 0x361   :  { %v666_v22 = vadd.f32 %v665_v20, %v661_v21  ;;  %v758_v23 = vadd.f32 %v689_v48, %v661_v21  ;;  %v698_v40 = vmul.f32 %v1903_v24, %v697_v34 }
 0x363   :  { %v1905_v25 = vpop.eup %1904  ;;  %v667_v26 = vadd.f32 %v666_v22, %v613_v46  ;;  %v1777_v27 = vmul.f32 -1.442695, %v758_v23  ;;  %v699_v44 = vadd.f32 %v1903_v24, %v698_v40 }
 0x364   :  { %v1907_v28 = vpop.eup %1906  ;;  %v739_v29 = vadd.f32 1.0, %v1905_v25 }
 0x365   :  { %v718_v31 = vmul.f32 %v1907_v28, %v716_v52  ;;  %v2380_v32 = vadd.f32 %v2194_v54, %v667_v26  ;;  %1908 = vpow2.f32 %v1777_v27  ;;  %vm723_vm10 = vweird.f32 %v1907_v28 }
 0x366   :  { %1910 = vrcp.f32 %v739_v29  ;;  %v728_v54 = vand.u32 2147483648, %v716_v52  ;;  %vm2387_vm15 = vmor %vm722_vm12, %vm723_vm10  ;;  %v751_v56 = vand.u32 2147483648, %v739_v29  ;;  %vm745_vm4 = vweird.f32 %v739_v29 }
 0x367   :  { %v719_v33 = vsub.f32 1.0, %v718_v31  ;;  %1912 = vtanh.f32 %v2380_v32  ;;  %v749_v60 = vand.u32 2147483647, %v739_v29  ;;  %v703_v0 = vsel %vm2391_vm3, %v1903_v24, %v699_v44 }
 0x368   :  { %v729_v62 = vor.u32 1.1754944e-38, %v728_v54  ;;  %v752_v47 = vor.u32 1.1754944e-38, %v751_v56  ;;  %v708_v48 = vsel %vm705_vm7, %v707_v2, %v703_v0 }
 0x369   :  { %v720_v36 = vmul.f32 %v1907_v28, %v719_v33  ;;  %vm750_vm8 = vcmp.eq.f32.partialorder %v749_v60, 8.507059e+37  ;;  %v711_v13 = vmul.f32 %v708_v48, %v2357_v4 }
 0x36b   :  { %v1909_v35 = vpop.eup %1908  ;;  %v721_v43 = vadd.f32 %v1907_v28, %v720_v36 }
 0x36c   :  { %v1911_v37 = vpop.eup %1910  ;;  %v762_v38 = vadd.f32 1.0, %v1909_v35 }
 0x36d   :  { %v1913_v39 = vpop.eup %1912  ;;  %v741_v41 = vmul.f32 %v1911_v37, %v739_v29  ;;  %vm746_vm13 = vweird.f32 %v1911_v37  ;;  %v725_v58 = vsel %vm2387_vm15, %v1907_v28, %v721_v43 }
 0x36e   :  { %1914 = vrcp.f32 %v762_v38  ;;  %782 = vrot.lane.b32.xlu2 %v1913_v39, %s2795_s23  ;;  %vm747_vm5 = vmor %vm745_vm4, %vm746_vm13  ;;  %v730_v3 = vsel %vm727_vm6, %v729_v62, %v725_v58  ;;  %v774_v9 = vand.u32 2147483648, %v762_v38  ;;  %v772_v12 = vand.u32 2147483647, %v762_v38  ;;  %v1810_v62 = vld [vmem:[%s2778_s1 + $0x10] sm:$0xff] }
 0x36f   :  { %v742_v42 = vsub.f32 1.0, %v741_v41  ;;  %v733_v10 = vmul.f32 %v730_v3, %v2361_v5  ;;  %vm768_vm10 = vweird.f32 %v762_v38  ;;  %v1773_v5 = vmul.f32 -1.442695, %v2380_v32  ;;  %1811 = vmatmul.msk.f32.vlgmr.msrb.gmra.mxu3 %vm215_vm2, %v1810_v62 }
 0x370   :  { %v775_v15 = vor.u32 1.1754944e-38, %v774_v9  ;;  %vm773_vm12 = vcmp.eq.f32.partialorder %v772_v12, 8.507059e+37 }
 0x371   :  { %v743_v50 = vmul.f32 %v1911_v37, %v742_v42  ;;  %v734_v16 = vadd.f32 %v733_v10, %v711_v13  ;;  %1916 = vpow2.f32 %v1773_v5 }
 0x373   :  { %v744_v59 = vadd.f32 %v1911_v37, %v743_v50 }
 0x374   :  { %v1915_v61 = vpop.eup %1914 }
 0x375   :  { %v764_v63 = vmul.f32 %v1915_v61, %v762_v38  ;;  %v748_v1 = vsel %vm747_vm5, %v1911_v37, %v744_v59  ;;  %vm769_vm9 = vweird.f32 %v1915_v61 }
 0x376   :  { %v753_v8 = vsel %vm750_vm8, %v752_v47, %v748_v1  ;;  %vm770_vm11 = vmor %vm768_vm10, %vm769_vm9 }
 0x377   :  { %v765_v46 = vsub.f32 1.0, %v764_v63  ;;  %v756_v14 = vmul.f32 %v753_v8, %v2365_v6  ;;  %v1917_v4 = vpop.eup %1916 }
 0x378   :  { %v672_v21 = vadd.f32 1.0, %v1917_v4  ;;  %v2560_v4 = vld [vmem:[%s2782_s5] ss:$0 sm:$0xff]  ;;  %s1838_s5 = sld [smem:[#allocation4 + $0x71]] }
 0x379   :  { %v766_v11 = vmul.f32 %v1915_v61, %v765_v46  ;;  %v757_v52 = vadd.f32 %v756_v14, %v734_v16 }
 0x37a   :  { %1918 = vrcp.f32 %v672_v21  ;;  %v684_v26 = vand.u32 2147483648, %v672_v21  ;;  %vm678_vm14 = vweird.f32 %v672_v21  ;;  %v682_v27 = vand.u32 2147483647, %v672_v21 }
 0x37b   :  { %v767_v49 = vadd.f32 %v1915_v61, %v766_v11 }
 0x37c   :  { %v685_v29 = vor.u32 1.1754944e-38, %v684_v26  ;;  %vm683_vm3 = vcmp.eq.f32.partialorder %v682_v27, 8.507059e+37 }
 0x37d   :  { %v771_v18 = vsel %vm770_vm11, %v1915_v61, %v767_v49 }
 0x37e   :  { %v776_v17 = vsel %vm773_vm12, %v775_v15, %v771_v18 }
 0x37f   :  { %v779_v19 = vmul.f32 %v776_v17, %v2369_v7 }
 0x380   :  { %v1919_v6 = vpop.eup %1918 }
 0x381   :  { %v780_v20 = vadd.f32 %v779_v19, %v757_v52  ;;  %v674_v22 = vmul.f32 %v1919_v6, %v672_v21  ;;  %vm679_vm13 = vweird.f32 %v1919_v6 }
 0x382   :  { %vm680_vm15 = vmor %vm678_vm14, %vm679_vm13 }
 0x383   :  { %787 = vrot.lane.b32.xlu0 %v780_v20, %s2800_s11  ;;  %v675_v23 = vsub.f32 1.0, %v674_v22  ;;  %v2554_v20 = vld [vmem:[%s2781_s4] ss:$0 sm:$0xff]  ;;  %s1837_s4 = sld [smem:[#allocation4 + $0x70]] }
 0x385   :  { %v676_v24 = vmul.f32 %v1919_v6, %v675_v23 }
 0x387   :  { %v677_v25 = vadd.f32 %v1919_v6, %v676_v24 }
 0x389   :  { %v681_v7 = vsel %vm680_vm15, %v1919_v6, %v677_v25 }
 0x38a   :  { %v686_v30 = vsel %vm683_vm3, %v685_v29, %v681_v7 }
 0x3c8   :  { %v783_v28 = vpop.permute.xlu2 %782 }
 0x3c9   :  { %v785_v31 = vmul.f32 %v783_v28, %v686_v30 }
 0x3f2   :  { %v986_v19 = vpop.f32.mrf.mxu3 }
 0x3f3   :  { %v987_v5 = vadd.f32 %v2554_v20, %v986_v19 }
 0x3f5   :  { %v788_v32 = vpop.permute.xlu0 %787  ;;  %v1063_v21 = vadd.f32 %v2560_v4, %v987_v5 }
 0x3f6   :  { %v790_v33 = vadd.f32 %v788_v32, %v785_v31 }
 0x3f8   :  { %1920 = vtanh.f32 %v790_v33 }
 0x3fe   :  { %v1921_v34 = vpop.eup %1920 }
 0x3ff   :  { %793 = vrot.lane.b32.xlu1 %v1921_v34, %s2800_s11 }
 0x471   :  { %v794_v35 = vpop.permute.xlu1 %793 }
 0x472   :  { %v796_v36 = vmul.f32 %v794_v35, %v686_v30 }
 0x474   :  { %v797_v37 = vsel %vm215_vm2, %v790_v33, %v796_v36 }
 0x475   :  { %799 = vst.msk [vmem:[#allocation5 + $0x8] sm:$0xff] %vm30_vm0, %v797_v37 }
 0x47c   :  { %v883_v38 = vld [vmem:[%s882_s9] sm:$0x1]  ;;  %s917_s9 = scalar_lea.vmem [#allocation5], %s2414_s28  ;;  %s857_s28 = scalar_lea.vmem [#allocation5], %s2422_s29 }
 0x47d   :  { %v888_v39 = vld [vmem:[%s887_s21] sm:$0x1]  ;;  %884 = vst.msk [vmem:[#allocation2 + $0x10] sm:$0x1] %vm50_vm1, %v883_v38  ;;  %s852_s21 = scalar_lea.vmem [#allocation5], %s2420_s16  ;;  %s872_s16 = scalar_lea.vmem [#allocation5], %s2430_s12 }
 0x47e   :  { %v893_v40 = vld [vmem:[%s892_s10] sm:$0x1]  ;;  %889 = vst.msk [vmem:[#allocation2 + $0x11] sm:$0x1] %vm50_vm1, %v888_v39  ;;  %s862_s10 = scalar_lea.vmem [#allocation5], %s2424_s7  ;;  %s2480_s29 = sld [smem:[#allocation4 + $0x5b]] }
 0x47f   :  { %v898_v41 = vld [vmem:[%s897_s22] sm:$0x1]  ;;  %894 = vst.msk [vmem:[#allocation2 + $0x12] sm:$0x1] %vm50_vm1, %v893_v40  ;;  %s867_s22 = scalar_lea.vmem [#allocation5], %s2426_s30  ;;  %s2484_s7 = sld [smem:[#allocation4 + $0x5c]] }
 0x480   :  { %v903_v42 = vld [vmem:[%s902_s6] sm:$0x1]  ;;  %899 = vst.msk [vmem:[#allocation2 + $0x13] sm:$0x1] %vm50_vm1, %v898_v41  ;;  %s842_s6 = scalar_lea.vmem [#allocation5], %s2416_s18  ;;  %s2470_s18 = sld [smem:[#allocation4 + $0x59]] }
 0x481   :  { %v908_v43 = vld [vmem:[%s907_s3] sm:$0x1]  ;;  %904 = vst.msk [vmem:[#allocation2 + $0x14] sm:$0x1] %vm50_vm1, %v903_v42  ;;  %s877_s3 = scalar_lea.vmem [#allocation5], %s2432_s14  ;;  %s807_s30 = scalar_lea.vmem [#allocation5], %s2436_s19 }
 0x482   :  { %v913_v54 = vld [vmem:[%s912_s24] sm:$0x1]  ;;  %909 = vst.msk [vmem:[#allocation2 + $0x15] sm:$0x1] %vm50_vm1, %v908_v43  ;;  %s802_s24 = scalar_lea.vmem [#allocation5], %s2434_s13  ;;  %s812_s14 = scalar_lea.vmem [#allocation5], %s2438_s17 }
 0x483   :  { %v918_v44 = vld [vmem:[%s917_s9] sm:$0x1]  ;;  %914 = vst.msk [vmem:[#allocation2 + $0x16] sm:$0x1] %vm50_vm1, %v913_v54  ;;  %s2496_s13 = sld [smem:[#allocation4 + $0x5d]]  ;;  %s817_s19 = scalar_lea.vmem [#allocation5], %s2440_s20 }
 0x484   :  { %v843_v45 = vld [vmem:[%s842_s6] sm:$0x1]  ;;  %919 = vst.msk [vmem:[#allocation2 + $0x17] sm:$0x1] %vm50_vm1, %v918_v44  ;;  %s2801_s6 = smov 96   ;;  %s2505_s17 = sld [smem:[#allocation4 + $0x5f]] }
 0x485   :  { %v848_v50 = vld [vmem:[%s847_s27] sm:$0x1]  ;;  %844 = vst.msk [vmem:[#allocation2 + $0x8] sm:$0x1] %vm50_vm1, %v843_v45  ;;  %s2501_s27 = sld [smem:[#allocation4 + $0x5e]]  ;;  %s837_s20 = scalar_lea.vmem [#allocation5], %s2460_s26 }
 0x486   :  { %v853_v51 = vld [vmem:[%s852_s21] sm:$0x1]  ;;  %849 = vst.msk [vmem:[#allocation2 + $0x9] sm:$0x1] %vm50_vm1, %v848_v50  ;;  %s822_s21 = scalar_lea.vmem [#allocation5], %s2444_s8  ;;  %s922_s8 = scalar_lea.vmem [#allocation5], %s2464_s15 }
 0x487   :  { %v858_v53 = vld [vmem:[%s857_s28] sm:$0x1]  ;;  %854 = vst.msk [vmem:[#allocation2 + $0xa] sm:$0x1] %vm50_vm1, %v853_v51  ;;  %s827_s28 = scalar_lea.vmem [#allocation5], %s2450_s2  ;;  %s927_s2 = scalar_lea.vmem [#allocation5], %s2470_s18 }
 0x488   :  { %v863_v55 = vld [vmem:[%s862_s10] sm:$0x1]  ;;  %859 = vst.msk [vmem:[#allocation2 + $0xb] sm:$0x1] %vm50_vm1, %v858_v53  ;;  %s832_s10 = scalar_lea.vmem [#allocation5], %s2454_s25  ;;  %s932_s25 = scalar_lea.vmem [#allocation5], %s2474_s0 }
 0x489   :  { %v868_v56 = vld [vmem:[%s867_s22] sm:$0x1]  ;;  %864 = vst.msk [vmem:[#allocation2 + $0xc] sm:$0x1] %vm50_vm1, %v863_v55  ;;  %s937_s26 = scalar_lea.vmem [#allocation5], %s2480_s29  ;;  %s942_s15 = scalar_lea.vmem [#allocation5], %s2484_s7 }
 0x48a   :  { %v873_v57 = vld [vmem:[%s872_s16] sm:$0x1]  ;;  %869 = vst.msk [vmem:[#allocation2 + $0xd] sm:$0x1] %vm50_vm1, %v868_v56  ;;  %s947_s18 = scalar_lea.vmem [#allocation5], %s2496_s13  ;;  %s957_s0 = scalar_lea.vmem [#allocation5], %s2505_s17 }
 0x48b   :  { %v878_v58 = vld [vmem:[%s877_s3] sm:$0x1]  ;;  %v962_v60 = vld [vmem:[#allocation2 + $0x10] sm:$0xff]  ;;  %874 = vst.msk [vmem:[#allocation2 + $0xe] sm:$0x1] %vm50_vm1, %v873_v57  ;;  %s952_s22 = scalar_lea.vmem [#allocation5], %s2501_s27 }
 0x48c   :  { %v803_v59 = vld [vmem:[%s802_s24] sm:$0x1]  ;;  %997 = vrot.lane.b32.xlu1 %v962_v60, %s2801_s6  ;;  %879 = vst.msk [vmem:[#allocation2 + $0xf] sm:$0x1] %vm50_vm1, %v878_v58  ;;  %s1839_s24 = sld [smem:[#allocation4 + $0x72]] }
 0x48d   :  { %v808_v61 = vld [vmem:[%s807_s30] sm:$0x1]  ;;  %804 = vst.msk [vmem:[#allocation2] sm:$0x1] %vm50_vm1, %v803_v59  ;;  %s2594_s30 = sld [smem:[#allocation4 + $0x73]] }
 0x48e   :  { %v813_v63 = vld [vmem:[%s812_s14] sm:$0x1]  ;;  %809 = vst.msk [vmem:[#allocation2 + $0x1] sm:$0x1] %vm50_vm1, %v808_v61  ;;  %s2596_s12 = sld [smem:[#allocation4 + $0x74]] }
 0x48f   :  { %v818_v0 = vld [vmem:[%s817_s19] sm:$0x1]  ;;  %814 = vst.msk [vmem:[#allocation2 + $0x2] sm:$0x1] %vm50_vm1, %v813_v63  ;;  %s2598_s9 = sld [smem:[#allocation4 + $0x75]] }
 0x490   :  { %v823_v1 = vld [vmem:[%s822_s21] sm:$0x1]  ;;  %819 = vst.msk [vmem:[#allocation2 + $0x3] sm:$0x1] %vm50_vm1, %v818_v0  ;;  %s2600_s14 = sld [smem:[#allocation4 + $0x76]] }
 0x491   :  { %v828_v2 = vld [vmem:[%s827_s28] sm:$0x1]  ;;  %824 = vst.msk [vmem:[#allocation2 + $0x4] sm:$0x1] %vm50_vm1, %v823_v1  ;;  %s2602_s13 = sld [smem:[#allocation4 + $0x77]] }
 0x492   :  { %v833_v3 = vld [vmem:[%s832_s10] sm:$0x1]  ;;  %829 = vst.msk [vmem:[#allocation2 + $0x5] sm:$0x1] %vm50_vm1, %v828_v2  ;;  %s2604_s19 = sld [smem:[#allocation4 + $0x68]] }
 0x493   :  { %v838_v47 = vld [vmem:[%s837_s20] sm:$0x1]  ;;  %v961_v48 = vld [vmem:[#allocation2 + $0x8] sm:$0xff]  ;;  %834 = vst.msk [vmem:[#allocation2 + $0x6] sm:$0x1] %vm50_vm1, %v833_v3  ;;  %s2606_s27 = sld [smem:[#allocation4 + $0x69]] }
 0x494   :  { %v923_v46 = vld [vmem:[%s922_s8] sm:$0x1]  ;;  %995 = vrot.lane.b32.xlu0 %v961_v48, %s2801_s6  ;;  %839 = vst.msk [vmem:[#allocation2 + $0x7] sm:$0x1] %vm50_vm1, %v838_v47  ;;  %s2608_s21 = sld [smem:[#allocation4 + $0x6a]]  ;;  %s1271_s16 = scalar_lea.vmem [#allocation5], %s2594_s30 }
 0x495   :  { %v928_v8 = vld [vmem:[%s927_s2] sm:$0x1]  ;;  %924 = vst.msk [vmem:[#allocation2 + $0x18] sm:$0x1] %vm50_vm1, %v923_v46  ;;  %s2610_s17 = sld [smem:[#allocation4 + $0x6b]]  ;;  %s1276_s29 = scalar_lea.vmem [#allocation5], %s2596_s12 }
 0x496   :  { %v933_v9 = vld [vmem:[%s932_s25] sm:$0x1]  ;;  %929 = vst.msk [vmem:[#allocation2 + $0x19] sm:$0x1] %vm50_vm1, %v928_v8  ;;  %s2612_s28 = sld [smem:[#allocation4 + $0x6c]]  ;;  %s1281_s7 = scalar_lea.vmem [#allocation5], %s2598_s9 }
 0x497   :  { %v938_v10 = vld [vmem:[%s937_s26] sm:$0x1]  ;;  %934 = vst.msk [vmem:[#allocation2 + $0x1a] sm:$0x1] %vm50_vm1, %v933_v9  ;;  %s2615_s10 = sld [smem:[#allocation4 + $0x6d]] }
 0x498   :  { %v943_v11 = vld [vmem:[%s942_s15] sm:$0x1]  ;;  %939 = vst.msk [vmem:[#allocation2 + $0x1b] sm:$0x1] %vm50_vm1, %v938_v10  ;;  %s2618_s20 = sld [smem:[#allocation4 + $0x6e]]  ;;  %s1216_s12 = scalar_lea.vmem [#allocation5], %s2604_s19 }
 0x499   :  { %v948_v12 = vld [vmem:[%s947_s18] sm:$0x1]  ;;  %944 = vst.msk [vmem:[#allocation2 + $0x1c] sm:$0x1] %vm50_vm1, %v943_v11  ;;  %s2620_s8 = sld [smem:[#allocation4 + $0x6f]]  ;;  %s1256_s18 = scalar_lea.vmem [#allocation5], %s1837_s4 }
 0x49a   :  { %v953_v13 = vld [vmem:[%s952_s22] sm:$0x1]  ;;  %949 = vst.msk [vmem:[#allocation2 + $0x1d] sm:$0x1] %vm50_vm1, %v948_v12  ;;  %s2622_s2 = sld [smem:[#allocation4 + $0x60]]  ;;  %s1261_s22 = scalar_lea.vmem [#allocation5], %s1838_s5 }
 0x49b   :  { %v958_v14 = vld [vmem:[%s957_s0] sm:$0x1]  ;;  %954 = vst.msk [vmem:[#allocation2 + $0x1e] sm:$0x1] %vm50_vm1, %v953_v13  ;;  %s2624_s25 = sld [smem:[#allocation4 + $0x61]]  ;;  %s1266_s0 = scalar_lea.vmem [#allocation5], %s1839_s24 }
 0x49c   :  { %v960_v49 = vld [vmem:[#allocation2] sm:$0xff]  ;;  %959 = vst.msk [vmem:[#allocation2 + $0x1f] sm:$0x1] %vm50_vm1, %v958_v14  ;;  %s2626_s26 = sld [smem:[#allocation4 + $0x62]]  ;;  %s1286_s5 = scalar_lea.vmem [#allocation5], %s2600_s14 }
 0x49d   :  { %993 = vrot.lane.b32.xlu2 %v960_v49, %s2801_s6  ;;  %s2628_s15 = sld [smem:[#allocation4 + $0x63]]  ;;  %s1291_s24 = scalar_lea.vmem [#allocation5], %s2602_s13 }
 0x49e   :  { %s2634_s3 = sld [smem:[#allocation4 + $0x64]]  ;;  %s1226_s14 = scalar_lea.vmem [#allocation5], %s2608_s21 }
 0x49f   :  { %s2638_s4 = sld [smem:[#allocation4 + $0x65]] }
 0x4a0   :  { %s2644_s30 = sld [smem:[#allocation4 + $0x66]] }
 0x4a1   :  { %s2648_s9 = sld [smem:[#allocation4 + $0x67]] }
 0x4a2   :  { %s2654_s13 = sld [smem:[#allocation4 + $0x78]] }
 0x4a3   :  { %v963_v15 = vld [vmem:[#allocation2 + $0x18] sm:$0xff]  ;;  %s2658_s19 = sld [smem:[#allocation4 + $0x79]] }
 0x4a4   :  { %s2664_s21 = sld [smem:[#allocation4 + $0x7a]] }
 0x4a5   :  { %999 = vrot.lane.b32.xlu2 %v963_v15, %s2801_s6 }
 0x4f7   :  { %v2535_v16 = vpop.permute.xlu2 %993 }
 0x4f8   :  { %1812 = vmatmul.msk.f32.vlgmr.msrb.gmra.mxu2 %vm215_vm2, %v2535_v16 }
 0x4fe   :  { %v2543_v17 = vpop.permute.xlu1 %997 }
 0x4ff   :  { %v2547_v52 = vpop.permute.xlu2 %999 }
 0x506   :  { %v2539_v18 = vpop.permute.xlu0 %995 }
 0x507   :  { %1813 = vmatmul.msk.f32.gmra.mxu2 %vm215_vm2, %v2539_v18 }
 0x50f   :  { %1814 = vmatmul.msk.f32.gmra.mxu2 %vm215_vm2, %v2543_v17 }
 0x517   :  { %1815 = vmatmul.msk.f32.gmra.mxu2 %vm215_vm2, %v2547_v52 }
 0x57b   :  { %v1026_v6 = vpop.f32.mrf.mxu2 }
 0x57c   :  { %v1064_v22 = vadd.f32 %v1063_v21, %v1026_v6 }
 0x57e   :  { %v1817_v23 = vmul.f32 -1.442695, %v1064_v22 }
 0x580   :  { %1922 = vpow2.f32 %v1817_v23 }
 0x586   :  { %v1923_v27 = vpop.eup %1922 }
 0x587   :  { %v2563_v7 = vadd.f32 1.0, %v1923_v27 }
 0x589   :  { %vm1074_vm8 = vweird.f32 %v2563_v7  ;;  %v1078_v3 = vand.u32 2147483647, %v2563_v7  ;;  %v1080_v47 = vand.u32 2147483648, %v2563_v7 }
 0x58a   :  { %v1029_v24 = vpop.f32.mrf.mxu2 }
 0x58b   :  { %v1086_v25 = vadd.f32 %v1063_v21, %v1029_v24  ;;  %v1038_v33 = vadd.f32 %v1029_v24, %v1026_v6  ;;  %v1081_v19 = vor.u32 1.1754944e-38, %v1080_v47  ;;  %vm1079_vm14 = vcmp.eq.f32.partialorder %v1078_v3, 8.507059e+37 }
 0x58d   :  { %v1818_v26 = vmul.f32 -1.442695, %v1086_v25 }
 0x58f   :  { %1924 = vpow2.f32 %v1818_v26 }
 0x590   :  { %1926 = vrcp.f32 %v2563_v7 }
 0x592   :  { %v1032_v28 = vpop.f32.mrf.mxu2 }
 0x593   :  { %v1109_v29 = vadd.f32 %v1063_v21, %v1032_v28  ;;  %v1039_v34 = vadd.f32 %v1038_v33, %v1032_v28 }
 0x595   :  { %v1925_v30 = vpop.eup %1924  ;;  %v1819_v31 = vmul.f32 -1.442695, %v1109_v29 }
 0x596   :  { %v1090_v32 = vadd.f32 1.0, %v1925_v30  ;;  %v1927_v36 = vpop.eup %1926 }
 0x597   :  { %1928 = vpow2.f32 %v1819_v31  ;;  %v1070_v43 = vmul.f32 %v1927_v36, %v2563_v7  ;;  %vm1075_vm5 = vweird.f32 %v1927_v36 }
 0x598   :  { %1930 = vrcp.f32 %v1090_v32  ;;  %v1102_v0 = vand.u32 2147483648, %v1090_v32  ;;  %vm1096_vm6 = vweird.f32 %v1090_v32  ;;  %v1100_v1 = vand.u32 2147483647, %v1090_v32  ;;  %vm2579_vm10 = vmor %vm1074_vm8, %vm1075_vm5 }
 0x599   :  { %v1071_v51 = vsub.f32 1.0, %v1070_v43 }
 0x59a   :  { %v1035_v35 = vpop.f32.mrf.mxu2  ;;  %v1103_v13 = vor.u32 1.1754944e-38, %v1102_v0  ;;  %vm1101_vm13 = vcmp.eq.f32.partialorder %v1100_v1, 8.507059e+37 }
 0x59b   :  { %v1040_v37 = vadd.f32 %v1039_v34, %v1035_v35  ;;  %v1132_v38 = vadd.f32 %v1063_v21, %v1035_v35  ;;  %v1072_v57 = vmul.f32 %v1927_v36, %v1071_v51 }
 0x59d   :  { %v1929_v39 = vpop.eup %1928  ;;  %v1041_v40 = vadd.f32 %v1040_v37, %v987_v5  ;;  %v1820_v41 = vmul.f32 -1.442695, %v1132_v38  ;;  %v1073_v63 = vadd.f32 %v1927_v36, %v1072_v57 }
 0x59e   :  { %v1931_v42 = vpop.eup %1930  ;;  %v1113_v54 = vadd.f32 1.0, %v1929_v39 }
 0x59f   :  { %v1092_v44 = vmul.f32 %v1931_v42, %v1090_v32  ;;  %v2568_v45 = vadd.f32 %v2560_v4, %v1041_v40  ;;  %1932 = vpow2.f32 %v1820_v41  ;;  %vm1097_vm4 = vweird.f32 %v1931_v42 }
 0x5a0   :  { %1934 = vrcp.f32 %v1113_v54  ;;  %vm2575_vm9 = vmor %vm1096_vm6, %vm1097_vm4  ;;  %v1125_v48 = vand.u32 2147483648, %v1113_v54  ;;  %vm1119_vm11 = vweird.f32 %v1113_v54  ;;  %v1123_v11 = vand.u32 2147483647, %v1113_v54 }
 0x5a1   :  { %v1093_v50 = vsub.f32 1.0, %v1092_v44  ;;  %1936 = vtanh.f32 %v2568_v45  ;;  %v1077_v49 = vsel %vm2579_vm10, %v1927_v36, %v1073_v63 }
 0x5a2   :  { %v1126_v21 = vor.u32 1.1754944e-38, %v1125_v48  ;;  %vm1124_vm15 = vcmp.eq.f32.partialorder %v1123_v11, 8.507059e+37  ;;  %v1082_v22 = vsel %vm1079_vm14, %v1081_v19, %v1077_v49 }
 0x5a3   :  { %v1094_v55 = vmul.f32 %v1931_v42, %v1093_v50  ;;  %v1085_v7 = vmul.f32 %v1082_v22, %v2535_v16 }
 0x5a5   :  { %v1933_v53 = vpop.eup %1932  ;;  %v1095_v62 = vadd.f32 %v1931_v42, %v1094_v55 }
 0x5a6   :  { %v1935_v56 = vpop.eup %1934  ;;  %v1136_v58 = vadd.f32 1.0, %v1933_v53 }
 0x5a7   :  { %v1937_v59 = vpop.eup %1936  ;;  %v1115_v60 = vmul.f32 %v1935_v56, %v1113_v54  ;;  %vm1120_vm7 = vweird.f32 %v1935_v56  ;;  %v1099_v9 = vsel %vm2575_vm9, %v1931_v42, %v1095_v62 }
 0x5a8   :  { %1938 = vrcp.f32 %v1136_v58  ;;  %1156 = vrot.lane.b32.xlu0 %v1937_v59, %s2795_s23  ;;  %vm1121_vm12 = vmor %vm1119_vm11, %vm1120_vm7  ;;  %v1104_v5 = vsel %vm1101_vm13, %v1103_v13, %v1099_v9  ;;  %v1148_v24 = vand.u32 2147483648, %v1136_v58  ;;  %v1146_v27 = vand.u32 2147483647, %v1136_v58 }
 0x5a9   :  { %v1116_v61 = vsub.f32 1.0, %v1115_v60  ;;  %v1107_v25 = vmul.f32 %v1104_v5, %v2539_v18  ;;  %vm1142_vm4 = vweird.f32 %v1136_v58  ;;  %v1816_v18 = vmul.f32 -1.442695, %v2568_v45 }
 0x5aa   :  { %v1149_v30 = vor.u32 1.1754944e-38, %v1148_v24  ;;  %vm1147_vm6 = vcmp.eq.f32.partialorder %v1146_v27, 8.507059e+37 }
 0x5ab   :  { %v1117_v2 = vmul.f32 %v1935_v56, %v1116_v61  ;;  %v1108_v31 = vadd.f32 %v1107_v25, %v1085_v7  ;;  %1940 = vpow2.f32 %v1816_v18 }
 0x5ad   :  { %v1118_v10 = vadd.f32 %v1935_v56, %v1117_v2 }
 0x5ae   :  { %v1939_v12 = vpop.eup %1938 }
 0x5af   :  { %v1138_v14 = vmul.f32 %v1939_v12, %v1136_v58  ;;  %v1122_v15 = vsel %vm1121_vm12, %v1935_v56, %v1118_v10  ;;  %vm1143_vm3 = vweird.f32 %v1939_v12 }
 0x5b0   :  { %v1127_v23 = vsel %vm1124_vm15, %v1126_v21, %v1122_v15  ;;  %vm1144_vm5 = vmor %vm1142_vm4, %vm1143_vm3 }
 0x5b1   :  { %v1139_v6 = vsub.f32 1.0, %v1138_v14  ;;  %v1130_v28 = vmul.f32 %v1127_v23, %v2543_v17  ;;  %v1941_v16 = vpop.eup %1940 }
 0x5b2   :  { %v1046_v37 = vadd.f32 1.0, %v1941_v16 }
 0x5b3   :  { %v1140_v26 = vmul.f32 %v1939_v12, %v1139_v6  ;;  %v1131_v34 = vadd.f32 %v1130_v28, %v1108_v31 }
 0x5b4   :  { %1942 = vrcp.f32 %v1046_v37  ;;  %v1058_v42 = vand.u32 2147483648, %v1046_v37  ;;  %vm1052_vm8 = vweird.f32 %v1046_v37  ;;  %v1056_v43 = vand.u32 2147483647, %v1046_v37 }
 0x5b5   :  { %v1141_v29 = vadd.f32 %v1939_v12, %v1140_v26 }
 0x5b6   :  { %v1059_v44 = vor.u32 1.1754944e-38, %v1058_v42  ;;  %vm1057_vm10 = vcmp.eq.f32.partialorder %v1056_v43, 8.507059e+37 }
 0x5b7   :  { %v1145_v32 = vsel %vm1144_vm5, %v1939_v12, %v1141_v29 }
 0x5b8   :  { %v1150_v33 = vsel %vm1147_vm6, %v1149_v30, %v1145_v32  ;;  %v1853_v32 = vld [vmem:[%s2778_s1 + $0x18] sm:$0xff]  ;;  %s2017_s1 = smov [#allocation5]  }
 0x5b9   :  { %v1153_v35 = vmul.f32 %v1150_v33, %v2547_v52  ;;  %1854 = vmatmul.msk.f32.vlgmr.msra.gmra.mxu0 %vm215_vm2, %v1853_v32 }
 0x5ba   :  { %v1943_v17 = vpop.eup %1942 }
 0x5bb   :  { %v1154_v36 = vadd.f32 %v1153_v35, %v1131_v34  ;;  %v1048_v38 = vmul.f32 %v1943_v17, %v1046_v37  ;;  %vm1053_vm7 = vweird.f32 %v1943_v17 }
 0x5bc   :  { %vm1054_vm9 = vmor %vm1052_vm8, %vm1053_vm7 }
 0x5bd   :  { %1161 = vrot.lane.b32.xlu1 %v1154_v36, %s2800_s11  ;;  %v1049_v39 = vsub.f32 1.0, %v1048_v38 }
 0x5bf   :  { %v1050_v40 = vmul.f32 %v1943_v17, %v1049_v39 }
 0x5c1   :  { %v1051_v41 = vadd.f32 %v1943_v17, %v1050_v40 }
 0x5c3   :  { %v1055_v52 = vsel %vm1054_vm9, %v1943_v17, %v1051_v41 }
 0x5c4   :  { %v1060_v50 = vsel %vm1057_vm10, %v1059_v44, %v1055_v52 }
 0x61a   :  { %v1157_v54 = vpop.permute.xlu0 %1156 }
 0x61b   :  { %v1159_v45 = vmul.f32 %v1157_v54, %v1060_v50 }
 0x62f   :  { %v1162_v51 = vpop.permute.xlu1 %1161 }
 0x630   :  { %v1164_v53 = vadd.f32 %v1162_v51, %v1159_v45 }
 0x632   :  { %1944 = vtanh.f32 %v1164_v53 }
 0x636   :  { %v1360_v18 = vpop.f32.mrf.mxu0 }
 0x637   :  { %v1361_v16 = vadd.f32 %v2554_v20, %v1360_v18 }
 0x638   :  { %v1945_v55 = vpop.eup %1944 }
 0x639   :  { %1167 = vrot.lane.b32.xlu2 %v1945_v55, %s2800_s11  ;;  %v1437_v37 = vadd.f32 %v2560_v4, %v1361_v16 }
 0x693   :  { %v1168_v56 = vpop.permute.xlu2 %1167 }
 0x694   :  { %v1170_v57 = vmul.f32 %v1168_v56, %v1060_v50 }
 0x696   :  { %v1171_v58 = vsel %vm215_vm2, %v1164_v53, %v1170_v57 }
 0x697   :  { %1173 = vst.msk [vmem:[#allocation5 + $0x10] sm:$0xff] %vm30_vm0, %v1171_v58 }
 0x69e   :  { %v1257_v59 = vld [vmem:[%s1256_s18] sm:$0x1]  ;;  %s1221_s18 = scalar_lea.vmem [#allocation5], %s2606_s27  ;;  %s1241_s27 = scalar_lea.vmem [#allocation5], %s2615_s10 }
 0x69f   :  { %v1262_v60 = vld [vmem:[%s1261_s22] sm:$0x1]  ;;  %1258 = vst.msk [vmem:[#allocation2 + $0x10] sm:$0x1] %vm50_vm1, %v1257_v59  ;;  %s1231_s22 = scalar_lea.vmem [#allocation5], %s2610_s17  ;;  %s2668_s17 = sld [smem:[#allocation4 + $0x7b]] }
 0x6a0   :  { %v1267_v61 = vld [vmem:[%s1266_s0] sm:$0x1]  ;;  %1263 = vst.msk [vmem:[#allocation2 + $0x11] sm:$0x1] %vm50_vm1, %v1262_v60  ;;  %s1236_s0 = scalar_lea.vmem [#allocation5], %s2612_s28  ;;  %s1176_s28 = scalar_lea.vmem [#allocation5], %s2622_s2 }
 0x6a1   :  { %v1272_v62 = vld [vmem:[%s1271_s16] sm:$0x1]  ;;  %1268 = vst.msk [vmem:[#allocation2 + $0x12] sm:$0x1] %vm50_vm1, %v1267_v61  ;;  %s1246_s16 = scalar_lea.vmem [#allocation5], %s2618_s20  ;;  %s2674_s10 = sld [smem:[#allocation4 + $0x7c]] }
 0x6a2   :  { %v1277_v63 = vld [vmem:[%s1276_s29] sm:$0x1]  ;;  %1273 = vst.msk [vmem:[#allocation2 + $0x13] sm:$0x1] %vm50_vm1, %v1272_v62  ;;  %s1251_s29 = scalar_lea.vmem [#allocation5], %s2620_s8  ;;  %s1181_s20 = scalar_lea.vmem [#allocation5], %s2624_s25 }
 0x6a3   :  { %v1282_v0 = vld [vmem:[%s1281_s7] sm:$0x1]  ;;  %1278 = vst.msk [vmem:[#allocation2 + $0x14] sm:$0x1] %vm50_vm1, %v1277_v63  ;;  %s1186_s8 = scalar_lea.vmem [#allocation5], %s2626_s26  ;;  %s2681_s7 = sld [smem:[#allocation4 + $0x7d]] }
 0x6a4   :  { %v1287_v1 = vld [vmem:[%s1286_s5] sm:$0x1]  ;;  %1283 = vst.msk [vmem:[#allocation2 + $0x15] sm:$0x1] %vm50_vm1, %v1282_v0  ;;  %s1191_s2 = scalar_lea.vmem [#allocation5], %s2628_s15  ;;  %s2685_s5 = sld [smem:[#allocation4 + $0x7e]] }
 0x6a5   :  { %v1292_v2 = vld [vmem:[%s1291_s24] sm:$0x1]  ;;  %1288 = vst.msk [vmem:[#allocation2 + $0x16] sm:$0x1] %vm50_vm1, %v1287_v1  ;;  %s1196_s25 = scalar_lea.vmem [#allocation5], %s2634_s3  ;;  %s2689_s24 = sld [smem:[#allocation4 + $0x7f]] }
 0x6a6   :  { %v1217_v3 = vld [vmem:[%s1216_s12] sm:$0x1]  ;;  %1293 = vst.msk [vmem:[#allocation2 + $0x17] sm:$0x1] %vm50_vm1, %v1292_v2  ;;  %s1201_s26 = scalar_lea.vmem [#allocation5], %s2638_s4  ;;  %s1206_s12 = scalar_lea.vmem [#allocation5], %s2644_s30 }
 0x6a7   :  { %v1222_v47 = vld [vmem:[%s1221_s18] sm:$0x1]  ;;  %1218 = vst.msk [vmem:[#allocation2 + $0x8] sm:$0x1] %vm50_vm1, %v1217_v3  ;;  %s1211_s15 = scalar_lea.vmem [#allocation5], %s2648_s9  ;;  %s1296_s3 = scalar_lea.vmem [#allocation5], %s2654_s13 }
 0x6a8   :  { %v1227_v46 = vld [vmem:[%s1226_s14] sm:$0x1]  ;;  %1223 = vst.msk [vmem:[#allocation2 + $0x9] sm:$0x1] %vm50_vm1, %v1222_v47  ;;  %s1301_s4 = scalar_lea.vmem [#allocation5], %s2658_s19  ;;  %s1306_s30 = scalar_lea.vmem [#allocation5], %s2664_s21 }
 0x6a9   :  { %v1232_v48 = vld [vmem:[%s1231_s22] sm:$0x1]  ;;  %1228 = vst.msk [vmem:[#allocation2 + $0xa] sm:$0x1] %vm50_vm1, %v1227_v46  ;;  %s1311_s9 = scalar_lea.vmem [#allocation5], %s2668_s17  ;;  %s1316_s18 = scalar_lea.vmem [#allocation5], %s2674_s10 }
 0x6aa   :  { %v1237_v8 = vld [vmem:[%s1236_s0] sm:$0x1]  ;;  %1233 = vst.msk [vmem:[#allocation2 + $0xb] sm:$0x1] %vm50_vm1, %v1232_v48  ;;  %s1321_s14 = scalar_lea.vmem [#allocation5], %s2681_s7  ;;  %s1326_s13 = scalar_lea.vmem [#allocation5], %s2685_s5 }
 0x6ab   :  { %v1242_v9 = vld [vmem:[%s1241_s27] sm:$0x1]  ;;  %1238 = vst.msk [vmem:[#allocation2 + $0xc] sm:$0x1] %vm50_vm1, %v1237_v8  ;;  %s1331_s22 = scalar_lea.vmem [#allocation5], %s2689_s24  ;;  %s2810_s21 = sld [smem:[#allocation9_spill]] }
 0x6ac   :  { %v1247_v10 = vld [vmem:[%s1246_s16] sm:$0x1]  ;;  %1243 = vst.msk [vmem:[#allocation2 + $0xd] sm:$0x1] %vm50_vm1, %v1242_v9  ;;  %s2018_s17 = smov 128  }
 0x6ad   :  { %v1252_v11 = vld [vmem:[%s1251_s29] sm:$0x1]  ;;  %v1336_v13 = vld [vmem:[#allocation2 + $0x10] sm:$0xff]  ;;  %1248 = vst.msk [vmem:[#allocation2 + $0xe] sm:$0x1] %vm50_vm1, %v1247_v10  ;;  %s2019_s29 = smov 8  }
 0x6ae   :  { %v1177_v12 = vld [vmem:[%s1176_s28] sm:$0x1]  ;;  %1371 = vrot.lane.b32.xlu2 %v1336_v13, %s2801_s6  ;;  %1253 = vst.msk [vmem:[#allocation2 + $0xf] sm:$0x1] %vm50_vm1, %v1252_v11 }
 0x6af   :  { %v1182_v14 = vld [vmem:[%s1181_s20] sm:$0x1]  ;;  %1178 = vst.msk [vmem:[#allocation2] sm:$0x1] %vm50_vm1, %v1177_v12 }
 0x6b0   :  { %v1187_v49 = vld [vmem:[%s1186_s8] sm:$0x1]  ;;  %1183 = vst.msk [vmem:[#allocation2 + $0x1] sm:$0x1] %vm50_vm1, %v1182_v14 }
 0x6b1   :  { %v1192_v15 = vld [vmem:[%s1191_s2] sm:$0x1]  ;;  %1188 = vst.msk [vmem:[#allocation2 + $0x2] sm:$0x1] %vm50_vm1, %v1187_v49  ;;  %s1554_s16 = sshll.u32 %s2810_s21, 4  ;;  %s1555_s16 = int_to_ptr.hbm [resolvable:$true] %s1554_s16 }
 0x6b2   :  { %v1197_v19 = vld [vmem:[%s1196_s25] sm:$0x1]  ;;  %1193 = vst.msk [vmem:[#allocation2 + $0x3] sm:$0x1] %vm50_vm1, %v1192_v15 }
 0x6b3   :  { %v1202_v5 = vld [vmem:[%s1201_s26] sm:$0x1]  ;;  %1198 = vst.msk [vmem:[#allocation2 + $0x4] sm:$0x1] %vm50_vm1, %v1197_v19 }
 0x6b4   :  { %v1207_v21 = vld [vmem:[%s1206_s12] sm:$0x1]  ;;  %1203 = vst.msk [vmem:[#allocation2 + $0x5] sm:$0x1] %vm50_vm1, %v1202_v5 }
 0x6b5   :  { %v1212_v6 = vld [vmem:[%s1211_s15] sm:$0x1]  ;;  %v1335_v23 = vld [vmem:[#allocation2 + $0x8] sm:$0xff]  ;;  %1208 = vst.msk [vmem:[#allocation2 + $0x6] sm:$0x1] %vm50_vm1, %v1207_v21 }
 0x6b6   :  { %v1297_v22 = vld [vmem:[%s1296_s3] sm:$0x1]  ;;  %1369 = vrot.lane.b32.xlu1 %v1335_v23, %s2801_s6  ;;  %1213 = vst.msk [vmem:[#allocation2 + $0x7] sm:$0x1] %vm50_vm1, %v1212_v6 }
 0x6b7   :  { %v1302_v24 = vld [vmem:[%s1301_s4] sm:$0x1]  ;;  %1298 = vst.msk [vmem:[#allocation2 + $0x18] sm:$0x1] %vm50_vm1, %v1297_v22 }
 0x6b8   :  { %v1307_v25 = vld [vmem:[%s1306_s30] sm:$0x1]  ;;  %1303 = vst.msk [vmem:[#allocation2 + $0x19] sm:$0x1] %vm50_vm1, %v1302_v24 }
 0x6b9   :  { %v1312_v26 = vld [vmem:[%s1311_s9] sm:$0x1]  ;;  %1308 = vst.msk [vmem:[#allocation2 + $0x1a] sm:$0x1] %vm50_vm1, %v1307_v25 }
 0x6ba   :  { %v1317_v27 = vld [vmem:[%s1316_s18] sm:$0x1]  ;;  %1313 = vst.msk [vmem:[#allocation2 + $0x1b] sm:$0x1] %vm50_vm1, %v1312_v26 }
 0x6bb   :  { %v1322_v7 = vld [vmem:[%s1321_s14] sm:$0x1]  ;;  %1318 = vst.msk [vmem:[#allocation2 + $0x1c] sm:$0x1] %vm50_vm1, %v1317_v27 }
 0x6bc   :  { %v1327_v28 = vld [vmem:[%s1326_s13] sm:$0x1]  ;;  %1323 = vst.msk [vmem:[#allocation2 + $0x1d] sm:$0x1] %vm50_vm1, %v1322_v7 }
 0x6bd   :  { %v1332_v29 = vld [vmem:[%s1331_s22] sm:$0x1]  ;;  %1328 = vst.msk [vmem:[#allocation2 + $0x1e] sm:$0x1] %vm50_vm1, %v1327_v28 }
 0x6be   :  { %v1334_v30 = vld [vmem:[#allocation2] sm:$0xff]  ;;  %1333 = vst.msk [vmem:[#allocation2 + $0x1f] sm:$0x1] %vm50_vm1, %v1332_v29 }
 0x6bf   :  { %1367 = vrot.lane.b32.xlu0 %v1334_v30, %s2801_s6 }
 0x6c5   :  { %v1337_v31 = vld [vmem:[#allocation2 + $0x18] sm:$0xff] }
 0x6c7   :  { %1373 = vrot.lane.b32.xlu0 %v1337_v31, %s2801_s6 }
 0x708   :  { %v2731_v35 = vpop.permute.xlu2 %1371 }
 0x728   :  { %v2727_v34 = vpop.permute.xlu1 %1369 }
 0x731   :  { %v2723_v33 = vpop.permute.xlu0 %1367 }
 0x732   :  { %1855 = vmatmul.msk.f32.vlgmr.msrb.gmra.mxu0 %vm215_vm2, %v2723_v33 }
 0x739   :  { %v2735_v36 = vpop.permute.xlu0 %1373 }
 0x73a   :  { %1856 = vmatmul.msk.f32.gmra.mxu0 %vm215_vm2, %v2727_v34 }
 0x742   :  { %1857 = vmatmul.msk.f32.gmra.mxu0 %vm215_vm2, %v2731_v35 }
 0x74a   :  { %1858 = vmatmul.msk.f32.gmra.mxu0 %vm215_vm2, %v2735_v36 }
 0x7af   :  { %v1400_v17 = vpop.f32.mrf.mxu0 }
 0x7b0   :  { %v1438_v38 = vadd.f32 %v1437_v37, %v1400_v17 }
 0x7b2   :  { %v1860_v39 = vmul.f32 -1.442695, %v1438_v38 }
 0x7b4   :  { %1946 = vpow2.f32 %v1860_v39 }
 0x7b7   :  { %v1403_v40 = vpop.f32.mrf.mxu0 }
 0x7b8   :  { %v1460_v41 = vadd.f32 %v1437_v37, %v1403_v40  ;;  %v1412_v51 = vadd.f32 %v1403_v40, %v1400_v17 }
 0x7ba   :  { %v1861_v42 = vmul.f32 -1.442695, %v1460_v41  ;;  %v1947_v43 = vpop.eup %1946 }
 0x7bb   :  { %v2741_v52 = vadd.f32 1.0, %v1947_v43 }
 0x7bc   :  { %1948 = vpow2.f32 %v1861_v42 }
 0x7bd   :  { %1950 = vrcp.f32 %v2741_v52  ;;  %vm1448_vm14 = vweird.f32 %v2741_v52  ;;  %v1452_v5 = vand.u32 2147483647, %v2741_v52  ;;  %v1454_v21 = vand.u32 2147483648, %v2741_v52 }
 0x7bf   :  { %v1406_v54 = vpop.f32.mrf.mxu0  ;;  %v1455_v31 = vor.u32 1.1754944e-38, %v1454_v21  ;;  %vm1453_vm7 = vcmp.eq.f32.partialorder %v1452_v5, 8.507059e+37 }
 0x7c0   :  { %v1483_v44 = vadd.f32 %v1437_v37, %v1406_v54  ;;  %v1413_v53 = vadd.f32 %v1412_v51, %v1406_v54 }
 0x7c2   :  { %v1949_v50 = vpop.eup %1948  ;;  %v1862_v45 = vmul.f32 -1.442695, %v1483_v44 }
 0x7c3   :  { %v1464_v20 = vadd.f32 1.0, %v1949_v50  ;;  %v1951_v58 = vpop.eup %1950 }
 0x7c4   :  { %1952 = vpow2.f32 %v1862_v45  ;;  %v1444_v0 = vmul.f32 %v1951_v58, %v2741_v52  ;;  %vm1449_vm11 = vweird.f32 %v1951_v58 }
 0x7c5   :  { %1954 = vrcp.f32 %v1464_v20  ;;  %vm1470_vm12 = vweird.f32 %v1464_v20  ;;  %v1474_v15 = vand.u32 2147483647, %v1464_v20  ;;  %vm2757_vm3 = vmor %vm1448_vm14, %vm1449_vm11 }
 0x7c6   :  { %v1445_v47 = vsub.f32 1.0, %v1444_v0 }
 0x7c7   :  { %v1409_v55 = vpop.f32.mrf.mxu0  ;;  %vm1475_vm6 = vcmp.eq.f32.partialorder %v1474_v15, 8.507059e+37 }
 0x7c8   :  { %v1414_v56 = vadd.f32 %v1413_v53, %v1409_v55  ;;  %v1506_v57 = vadd.f32 %v1437_v37, %v1409_v55  ;;  %v1446_v11 = vmul.f32 %v1951_v58, %v1445_v47 }
 0x7ca   :  { %v1953_v59 = vpop.eup %1952  ;;  %v1415_v60 = vadd.f32 %v1414_v56, %v1361_v16  ;;  %v1863_v61 = vmul.f32 -1.442695, %v1506_v57  ;;  %v1447_v49 = vadd.f32 %v1951_v58, %v1446_v11 }
 0x7cb   :  { %v1955_v62 = vpop.eup %1954  ;;  %v1487_v63 = vadd.f32 1.0, %v1953_v59 }
 0x7cc   :  { %v1466_v1 = vmul.f32 %v1955_v62, %v1464_v20  ;;  %v2746_v2 = vadd.f32 %v2560_v4, %v1415_v60  ;;  %1956 = vpow2.f32 %v1863_v61  ;;  %vm1471_vm1 = vweird.f32 %v1955_v62 }
 0x7cd   :  { %1958 = vrcp.f32 %v1487_v63  ;;  %v1476_v4 = vand.u32 2147483648, %v1464_v20  ;;  %vm2753_vm15 = vmor %vm1470_vm12, %vm1471_vm1  ;;  %v1499_v22 = vand.u32 2147483648, %v1487_v63  ;;  %vm1493_vm4 = vweird.f32 %v1487_v63 }
 0x7ce   :  { %v1467_v3 = vsub.f32 1.0, %v1466_v1  ;;  %1960 = vtanh.f32 %v2746_v2  ;;  %v1497_v26 = vand.u32 2147483647, %v1487_v63  ;;  %v1451_v29 = vsel %vm2757_vm3, %v1951_v58, %v1447_v49 }
 0x7cf   :  { %v1477_v7 = vor.u32 1.1754944e-38, %v1476_v4  ;;  %v1500_v18 = vor.u32 1.1754944e-38, %v1499_v22  ;;  %v1456_v37 = vsel %vm1453_vm7, %v1455_v31, %v1451_v29 }
 0x7d0   :  { %v1468_v48 = vmul.f32 %v1955_v62, %v1467_v3  ;;  %vm1498_vm8 = vcmp.eq.f32.partialorder %v1497_v26, 8.507059e+37  ;;  %v1459_v42 = vmul.f32 %v1456_v37, %v2723_v33 }
 0x7d2   :  { %v1957_v46 = vpop.eup %1956  ;;  %v1469_v14 = vadd.f32 %v1955_v62, %v1468_v48 }
 0x7d3   :  { %v1959_v8 = vpop.eup %1958  ;;  %v1510_v9 = vadd.f32 1.0, %v1957_v46 }
 0x7d4   :  { %v1961_v10 = vpop.eup %1960  ;;  %v1489_v12 = vmul.f32 %v1959_v8, %v1487_v63  ;;  %vm1494_vm13 = vweird.f32 %v1959_v8  ;;  %v1473_v24 = vsel %vm2753_vm15, %v1955_v62, %v1469_v14 }
 0x7d5   :  { %1962 = vrcp.f32 %v1510_v9  ;;  %1530 = vrot.lane.b32.xlu1 %v1961_v10, %s2795_s23  ;;  %vm1495_vm5 = vmor %vm1493_vm4, %vm1494_vm13  ;;  %v1478_v32 = vsel %vm1475_vm6, %v1477_v7, %v1473_v24  ;;  %v1522_v38 = vand.u32 2147483648, %v1510_v9  ;;  %v1520_v41 = vand.u32 2147483647, %v1510_v9  ;;  %s1552_s23 = sshll.u32 %s2017_s1, 4  ;;  %s1553_s23 = int_to_ptr.vmem [resolvable:$true] %s1552_s23 }
 0x7d6   :  { %v1490_v13 = vsub.f32 1.0, %v1489_v12  ;;  %v1481_v39 = vmul.f32 %v1478_v32, %v2727_v34  ;;  %vm1516_vm10 = vweird.f32 %v1510_v9  ;;  %v1859_v34 = vmul.f32 -1.442695, %v2746_v2 }
 0x7d7   :  { %v1523_v54 = vor.u32 1.1754944e-38, %v1522_v38  ;;  %vm1521_vm11 = vcmp.eq.f32.partialorder %v1520_v41, 8.507059e+37 }
 0x7d8   :  { %v1491_v19 = vmul.f32 %v1959_v8, %v1490_v13  ;;  %v1482_v44 = vadd.f32 %v1481_v39, %v1459_v42  ;;  %1964 = vpow2.f32 %v1859_v34 }
 0x7da   :  { %v1492_v25 = vadd.f32 %v1959_v8, %v1491_v19 }
 0x7db   :  { %v1963_v27 = vpop.eup %1962 }
 0x7dc   :  { %v1512_v28 = vmul.f32 %v1963_v27, %v1510_v9  ;;  %v1496_v30 = vsel %vm1495_vm5, %v1959_v8, %v1492_v25  ;;  %vm1517_vm9 = vweird.f32 %v1963_v27 }
 0x7dd   :  { %v1501_v17 = vsel %vm1498_vm8, %v1500_v18, %v1496_v30  ;;  %vm1518_vm1 = vmor %vm1516_vm10, %vm1517_vm9 }
 0x7de   :  { %v1513_v16 = vsub.f32 1.0, %v1512_v28  ;;  %v1504_v43 = vmul.f32 %v1501_v17, %v2731_v35  ;;  %v1965_v33 = vpop.eup %1964 }
 0x7df   :  { %v1420_v55 = vadd.f32 1.0, %v1965_v33 }
 0x7e0   :  { %v1514_v40 = vmul.f32 %v1963_v27, %v1513_v16  ;;  %v1505_v20 = vadd.f32 %v1504_v43, %v1482_v44 }
 0x7e1   :  { %1966 = vrcp.f32 %v1420_v55  ;;  %v1432_v60 = vand.u32 2147483648, %v1420_v55  ;;  %vm1426_vm13 = vweird.f32 %v1420_v55  ;;  %v1430_v61 = vand.u32 2147483647, %v1420_v55 }
 0x7e2   :  { %v1515_v52 = vadd.f32 %v1963_v27, %v1514_v40 }
 0x7e3   :  { %v1433_v62 = vor.u32 1.1754944e-38, %v1432_v60  ;;  %vm1431_vm15 = vcmp.eq.f32.partialorder %v1430_v61, 8.507059e+37 }
 0x7e4   :  { %v1519_v50 = vsel %vm1518_vm1, %v1963_v27, %v1515_v52 }
 0x7e5   :  { %v1524_v45 = vsel %vm1521_vm11, %v1523_v54, %v1519_v50 }
 0x7e6   :  { %v1527_v51 = vmul.f32 %v1524_v45, %v2735_v36 }
 0x7e7   :  { %v1967_v35 = vpop.eup %1966 }
 0x7e8   :  { %v1528_v53 = vadd.f32 %v1527_v51, %v1505_v20  ;;  %v1422_v56 = vmul.f32 %v1967_v35, %v1420_v55  ;;  %vm1427_vm12 = vweird.f32 %v1967_v35 }
 0x7e9   :  { %vm1428_vm14 = vmor %vm1426_vm13, %vm1427_vm12 }
 0x7ea   :  { %1535 = vrot.lane.b32.xlu2 %v1528_v53, %s2800_s11  ;;  %v1423_v57 = vsub.f32 1.0, %v1422_v56 }
 0x7ec   :  { %v1424_v58 = vmul.f32 %v1967_v35, %v1423_v57 }
 0x7ee   :  { %v1425_v59 = vadd.f32 %v1967_v35, %v1424_v58 }
 0x7f0   :  { %v1429_v36 = vsel %vm1428_vm14, %v1967_v35, %v1425_v59 }
 0x7f1   :  { %v1434_v0 = vsel %vm1431_vm15, %v1433_v62, %v1429_v36 }
 0x844   :  { %v1536_v2 = vpop.permute.xlu2 %1535 }
 0x847   :  { %v1531_v63 = vpop.permute.xlu1 %1530 }
 0x848   :  { %v1533_v1 = vmul.f32 %v1531_v63, %v1434_v0 }
 0x84a   :  { %v1538_v3 = vadd.f32 %v1536_v2, %v1533_v1 }
 0x84c   :  { %1968 = vtanh.f32 %v1538_v3 }
 0x852   :  { %v1969_v47 = vpop.eup %1968 }
 0x853   :  { %1541 = vrot.lane.b32.xlu0 %v1969_v47, %s2800_s11 }
 0x8c5   :  { %v1542_v46 = vpop.permute.xlu0 %1541 }
 0x8c6   :  { %v1544_v48 = vmul.f32 %v1542_v46, %v1434_v0 }
 0x8c8   :  { %v1545_v8 = vsel %vm215_vm2, %v1538_v3, %v1544_v48 }
 0x8c9   :  { %1547 = vst.msk [vmem:[#allocation5 + $0x18] sm:$0xff] %vm30_vm0, %v1545_v8 }
 0x8ca   :  { %1560 = dma.vmem_to_hbm [thread:$0]  %s1553_s23, 640, %s1555_s16, [#allocation6], %s2018_s17, %s2018_s17, %s2019_s29  }
 0x8cb   :  { %2010 = dma.done.wait [#allocation6], 640  }
 0x8cc   :  { %2011 = vsyncadd [#allocation6], 4294966656 }
 0x8cd   :  { %1565 = vsyncpa [#allocation6], 1 }

</bundles_post_ra>
